<compile_context>
chip_gen: v7x
topology: tpu7x:2x2x1
jax: 0.10.0
libtpu: 0.0.40
codegen_flags: <defaults>
</compile_context>

<pallas_src>
import numpy as np

import jax
import jax.numpy as jnp
from jax.experimental import pallas as pl
from jax.experimental.pallas import tpu as pltpu

# ----------------------------- hyperparameters -----------------------------
IN_C = 1           # input_channels
OUT_C1 = 16        # out_channels1
OUT_C2 = 32        # out_channels2 (must be 32 so "32 * H * W" is consistent)
K = 3              # kernel_size
STRIDE = 2         # stride (encoder conv1)
PADDING = 1        # padding (encoder conv1); positionally becomes conv2's stride
LATENT = 8         # latent_size
H_IN = W_IN = 16   # input spectrogram spatial size
BATCH = 2

H1 = (H_IN + 2 * PADDING - K) // STRIDE + 1      # 8   (after conv1)
H_ENC = (H1 - K) // PADDING + 1                  # 6   (after conv2: stride=PADDING, pad=0)
FLAT = OUT_C2 * H_ENC * H_ENC                    # 1152 = 32 * H * W
H_DEC1 = (H_ENC - 1) * 2 - 2 * 1 + K             # 11  (after convt1)
H_DEC2 = (H_DEC1 - 1) * 2 - 2 * 1 + K + 1        # 22  (after convt2, output_padding=1)


# ------------------------------ Pallas kernel -------------------------------
def _cvae_kernel(
    x_ref, eps_ref,
    r1_ref, m1_ref, b1_ref,
    r2_ref, m2_ref, b2_ref,
    esel_ref, wmu_ref, wlv_ref, bmu_ref, blv_ref,
    fsel_ref, wdec_ref, bdec_ref,
    r3_ref, m3_ref, b3_ref,
    r4_ref, m4_ref, b4_ref,
    recon_ref, mu_o_ref, logvar_o_ref,
):
    """Entire SpectrogramCVAE forward in one kernel (2-D MXU matmuls only)."""

    def mm(a, b):
        return jnp.dot(a, b, preferred_element_type=jnp.float32)

    def conv_rows(inp, r_ref, m_ref, b_ref):
        # One (transposed-)conv layer in the (N*H, W*C) layout:
        #   out = bias + sum_kh  R_kh @ inp @ M_kh
        acc = mm(mm(r_ref[0], inp), m_ref[0])
        for kh in range(1, K):
            acc = acc + mm(mm(r_ref[kh], inp), m_ref[kh])
        return acc + b_ref[...]

    # ------------------------------ encoder ------------------------------
    x2d = x_ref[...]                                               # (N*16, 16)
    a1 = jnp.maximum(conv_rows(x2d, r1_ref, m1_ref, b1_ref), 0.0)  # (N*8, 8*16)
    a2 = jnp.maximum(conv_rows(a1, r2_ref, m2_ref, b2_ref), 0.0)   # (N*6, 6*32)

    # Flatten + Linear(1152 -> 2*latent), decomposed over the 6 image rows h.
    mu = None
    logvar = None
    for h in range(H_ENC):
        rows_h = mm(esel_ref[h], a2)                               # (N, 6*32)
        t_mu = mm(rows_h, wmu_ref[h])                              # (N, latent)
        t_lv = mm(rows_h, wlv_ref[h])
        mu = t_mu if mu is None else mu + t_mu
        logvar = t_lv if logvar is None else logvar + t_lv
    mu = mu + bmu_ref[...]
    logvar = logvar + blv_ref[...]
    mu_o_ref[...] = mu
    logvar_o_ref[...] = logvar

    # -------------------------- reparameterize ---------------------------
    z = mu + eps_ref[...] * jnp.exp(0.5 * logvar)                  # (N, latent)

    # ------------------------------ decoder ------------------------------
    # Linear(latent -> 1152) + ReLU + Unflatten, emitted directly in the
    # (N*6, 6*32) layout (one (latent, 192) weight block per image row h).
    d = None
    for h in range(H_ENC):
        g_h = mm(z, wdec_ref[h]) + bdec_ref[h]                     # (N, 6*32)
        t = mm(fsel_ref[h], g_h)                                   # (N*6, 6*32)
        d = t if d is None else d + t
    d = jnp.maximum(d, 0.0)

    a3 = jnp.maximum(conv_rows(d, r3_ref, m3_ref, b3_ref), 0.0)    # (N*11, 11*16)
    pre = conv_rows(a3, r4_ref, m4_ref, b4_ref)                    # (N*22, 22)
    recon_ref[...] = 1.0 / (1.0 + jnp.exp(-pre))


# ------------------- init-time constant / weight packing --------------------
def _row_select_mats(batch, ih, oh, stride, pad, transposed):
    """R[kh] (batch*oh, batch*ih): 0/1 row gather for kernel row kh."""
    R = np.zeros((K, batch * oh, batch * ih), np.float32)
    for kh in range(K):
        for b in range(batch):
            if not transposed:
                for o in range(oh):
                    i = o * stride - pad + kh
                    if 0 <= i < ih:
                        R[kh, b * oh + o, b * ih + i] = 1.0
            else:
                for i in range(ih):
                    o = i * stride - pad + kh
                    if 0 <= o < oh:
                        R[kh, b * oh + o, b * ih + i] = 1.0
    return R


def _col_weight_mats(w, iw, ow, stride, pad, transposed):
    """M[kh] (iw*c_in, ow*c_out): width gather fused with the conv weights.

    `w` is in PyTorch layout: (c_out, c_in, K, K) for Conv2d and
    (c_in, c_out, K, K) for ConvTranspose2d.
    """
    w = np.asarray(w, np.float32)
    c_in, c_out = (w.shape[0], w.shape[1]) if transposed else (w.shape[1], w.shape[0])
    M = np.zeros((K, iw * c_in, ow * c_out), np.float32)
    for kh in range(K):
        for kw in range(K):
            blk = w[:, :, kh, kw] if transposed else w[:, :, kh, kw].T   # (c_in, c_out)
            if not transposed:
                for o in range(ow):
                    i = o * stride - pad + kw
                    if 0 <= i < iw:
                        M[kh, i * c_in:(i + 1) * c_in, o * c_out:(o + 1) * c_out] += blk
            else:
                for i in range(iw):
                    o = i * stride - pad + kw
                    if 0 <= o < ow:
                        M[kh, i * c_in:(i + 1) * c_in, o * c_out:(o + 1) * c_out] += blk
    return M


def _bias_row(b, ow):
    """(1, ow*c_out) bias row: entry [0, o*c_out + c] = b[c]."""
    b = np.asarray(b, np.float32)
    return np.tile(b, ow).reshape(1, ow * b.shape[0])


def _enc_fc_blocks(wfc, bfc, batch):
    """Split Linear(1152 -> 2*latent) into per-image-row (192, latent) blocks,
    separately for the mu and logvar halves, plus 0/1 row selectors."""
    wfc = np.asarray(wfc, np.float32)          # (2*latent, 1152), torch (out, in)
    bfc = np.asarray(bfc, np.float32)
    hw = H_ENC * H_ENC
    w_mu = np.zeros((H_ENC, H_ENC * OUT_C2, LATENT), np.float32)
    w_lv = np.zeros((H_ENC, H_ENC * OUT_C2, LATENT), np.float32)
    for h in range(H_ENC):
        for w in range(H_ENC):
            for c in range(OUT_C2):
                q = c * hw + h * H_ENC + w     # torch Flatten index (c, h, w)
                w_mu[h, w * OUT_C2 + c, :] = wfc[:LATENT, q]
                w_lv[h, w * OUT_C2 + c, :] = wfc[LATENT:, q]
    e_sel = np.zeros((H_ENC, batch, batch * H_ENC), np.float32)
    for h in range(H_ENC):
        for n in range(batch):
            e_sel[h, n, n * H_ENC + h] = 1.0
    b_mu = bfc[:LATENT].reshape(1, LATENT)
    b_lv = bfc[LATENT:].reshape(1, LATENT)
    return e_sel, w_mu, w_lv, b_mu, b_lv


def _dec_fc_blocks(wd, bd, batch):
    """Split Linear(latent -> 1152) so its output lands directly in the
    (N*6, 6*32) layout: one (latent, 192) weight / (1, 192) bias block and a
    0/1 row placer per image row h."""
    wd = np.asarray(wd, np.float32)            # (1152, latent), torch (out, in)
    bd = np.asarray(bd, np.float32)
    hw = H_ENC * H_ENC
    w_dec = np.zeros((H_ENC, LATENT, H_ENC * OUT_C2), np.float32)
    b_dec = np.zeros((H_ENC, 1, H_ENC * OUT_C2), np.float32)
    for h in range(H_ENC):
        for w in range(H_ENC):
            for c in range(OUT_C2):
                q = c * hw + h * H_ENC + w     # torch Unflatten index (c, h, w)
                w_dec[h, :, w * OUT_C2 + c] = wd[q, :]
                b_dec[h, 0, w * OUT_C2 + c] = bd[q]
    f_sel = np.zeros((H_ENC, batch * H_ENC, batch), np.float32)
    for h in range(H_ENC):
        for n in range(batch):
            f_sel[h, n * H_ENC + h, n] = 1.0
    return f_sel, w_dec, b_dec


def init_raw_params(key):
    """Parameters in the PyTorch module's own layouts."""
    ks = jax.random.split(key, 12)
    w = lambda k, shape: 0.05 * jax.random.normal(k, shape, dtype=jnp.float32)
    return {
        "conv1_w": w(ks[0], (OUT_C1, IN_C, K, K)),    "conv1_b": w(ks[1], (OUT_C1,)),
        "conv2_w": w(ks[2], (OUT_C2, OUT_C1, K, K)),  "conv2_b": w(ks[3], (OUT_C2,)),
        "enc_fc_w": w(ks[4], (2 * LATENT, FLAT)),     "enc_fc_b": w(ks[5], (2 * LATENT,)),
        "dec_fc_w": w(ks[6], (FLAT, LATENT)),         "dec_fc_b": w(ks[7], (FLAT,)),
        # ConvTranspose2d weights: (in_channels, out_channels, kH, kW)
        "convt1_w": w(ks[8], (OUT_C2, OUT_C1, K, K)), "convt1_b": w(ks[9], (OUT_C1,)),
        "convt2_w": w(ks[10], (OUT_C1, IN_C, K, K)),  "convt2_b": w(ks[11], (IN_C,)),
    }


def prepare_params(raw, batch):
    """Fold all weight reshapes / gathers into kernel-ready constants (once)."""
    r = {k: np.asarray(v, np.float32) for k, v in raw.items()}
    p = {}
    # encoder Conv2d(1, 16, 3, stride=2, padding=1): 16x16 -> 8x8
    p["R1"] = _row_select_mats(batch, H_IN, H1, STRIDE, PADDING, False)
    p["M1"] = _col_weight_mats(r["conv1_w"], W_IN, H1, STRIDE, PADDING, False)
    p["B1"] = _bias_row(r["conv1_b"], H1)
    # encoder Conv2d(16, 32, 3, <stride=PADDING>, padding=0): 8x8 -> 6x6
    p["R2"] = _row_select_mats(batch, H1, H_ENC, PADDING, 0, False)
    p["M2"] = _col_weight_mats(r["conv2_w"], H1, H_ENC, PADDING, 0, False)
    p["B2"] = _bias_row(r["conv2_b"], H_ENC)
    # encoder Linear(1152 -> 2*latent), pre-split into mu / logvar halves
    p["E"], p["Wmu"], p["Wlv"], p["bmu"], p["blv"] = _enc_fc_blocks(
        r["enc_fc_w"], r["enc_fc_b"], batch)
    # decoder Linear(latent -> 1152) + Unflatten
    p["F"], p["Wdec"], p["Bdec"] = _dec_fc_blocks(r["dec_fc_w"], r["dec_fc_b"], batch)
    # decoder ConvTranspose2d(32, 16, 3, stride=2, padding=1): 6x6 -> 11x11
    p["R3"] = _row_select_mats(batch, H_ENC, H_DEC1, 2, 1, True)
    p["M3"] = _col_weight_mats(r["convt1_w"], H_ENC, H_DEC1, 2, 1, True)
    p["B3"] = _bias_row(r["convt1_b"], H_DEC1)
    # decoder ConvTranspose2d(16, 1, 3, stride=2, padding=1, output_padding=1): 11x11 -> 22x22
    p["R4"] = _row_select_mats(batch, H_DEC1, H_DEC2, 2, 1, True)
    p["M4"] = _col_weight_mats(r["convt2_w"], H_DEC1, H_DEC2, 2, 1, True)
    p["B4"] = _bias_row(r["convt2_b"], H_DEC2)
    return {k: jnp.asarray(v) for k, v in p.items()}


# --------------------------------- wrapper ----------------------------------
def _full_spec(shape):
    nd = len(shape)
    return pl.BlockSpec(shape, lambda i, _nd=nd: (0,) * _nd)


def fused_forward(prep, x, eps):
    """recon (N,1,22,22), mu (N,latent), logvar (N,latent) -- one pallas_call."""
    batch = x.shape[0]
    x2d = x.astype(jnp.float32).reshape(batch * H_IN, W_IN)   # free layout view
    eps = eps.astype(jnp.float32)

    args = (
        x2d, eps,
        prep["R1"], prep["M1"], prep["B1"],
        prep["R2"], prep["M2"], prep["B2"],
        prep["E"], prep["Wmu"], prep["Wlv"], prep["bmu"], prep["blv"],
        prep["F"], prep["Wdec"], prep["Bdec"],
        prep["R3"], prep["M3"], prep["B3"],
        prep["R4"], prep["M4"], prep["B4"],
    )
    out_shape = (
        jax.ShapeDtypeStruct((batch * H_DEC2, H_DEC2), jnp.float32),  # recon rows
        jax.ShapeDtypeStruct((batch, LATENT), jnp.float32),           # mu
        jax.ShapeDtypeStruct((batch, LATENT), jnp.float32),           # logvar
    )
    recon_rows, mu, logvar = pl.pallas_call(
        _cvae_kernel,
        out_shape=out_shape,
        grid=(1,),
        in_specs=[_full_spec(a.shape) for a in args],
        out_specs=[_full_spec(s.shape) for s in out_shape],
        compiler_params=pltpu.CompilerParams(dimension_semantics=("arbitrary",)),
    )(*args)
    recon = recon_rows.reshape(batch, IN_C, H_DEC2, H_DEC2)   # free layout view
    return recon, mu, logvar


# ------------------------- NumPy reference (the spec) ------------------------
def _np_conv2d(x, w, b, stride, padding):
    n, _, hh, ww = x.shape
    oc, ic, kh_, kw_ = w.shape
    xp = np.pad(x, ((0, 0), (0, 0), (padding, padding), (padding, padding)))
    oh = (hh + 2 * padding - kh_) // stride + 1
    ow = (ww + 2 * padding - kw_) // stride + 1
    out = np.zeros((n, oc, oh, ow), np.float64)
    for kh in range(kh_):
        for kw in range(kw_):
            patch = xp[:, :, kh:kh + stride * oh:stride, kw:kw + stride * ow:stride]
            out += np.einsum("nchw,oc->nohw", patch, w[:, :, kh, kw])
    return out + b[None, :, None, None]


def _np_conv_transpose2d(x, w, b, stride, padding, output_padding):
    n, ic, hh, ww = x.shape
    _, oc, kh_, kw_ = w.shape
    oh = (hh - 1) * stride - 2 * padding + kh_ + output_padding
    ow = (ww - 1) * stride - 2 * padding + kw_ + output_padding
    out = np.zeros((n, oc, oh, ow), np.float64)
    for kh in range(kh_):
        for kw in range(kw_):
            contrib = np.einsum("nchw,co->nohw", x, w[:, :, kh, kw])
            for ih in range(hh):
                o_h = ih * stride - padding + kh
                if not 0 <= o_h < oh:
                    continue
                for iw in range(ww):
                    o_w = iw * stride - padding + kw
                    if not 0 <= o_w < ow:
                        continue
                    out[:, :, o_h, o_w] += contrib[:, :, ih, iw]
    return out + b[None, :, None, None]


def numpy_reference_forward(raw, x, eps):
    p = {k: np.asarray(v, np.float64) for k, v in raw.items()}
    x = np.asarray(x, np.float64)
    eps = np.asarray(eps, np.float64)
    relu = lambda a: np.maximum(a, 0.0)
    h = relu(_np_conv2d(x, p["conv1_w"], p["conv1_b"], STRIDE, PADDING))
    h = relu(_np_conv2d(h, p["conv2_w"], p["conv2_b"], PADDING, 0))   # stride=padding bug
    flat = h.reshape(x.shape[0], -1)
    henc = flat @ p["enc_fc_w"].T + p["enc_fc_b"]
    mu, logvar = henc[:, :LATENT], henc[:, LATENT:]
    z = mu + eps * np.exp(0.5 * logvar)
    g = relu(z @ p["dec_fc_w"].T + p["dec_fc_b"])
    u = g.reshape(x.shape[0], OUT_C2, H_ENC, H_ENC)
    v = relu(_np_conv_transpose2d(u, p["convt1_w"], p["convt1_b"], 2, 1, 0))
    r = 1.0 / (1.0 + np.exp(-_np_conv_transpose2d(v, p["convt2_w"], p["convt2_b"], 2, 1, 1)))
    return r, mu, logvar


# ----------------------------------- main ------------------------------------
if __name__ == "__main__":
    key = jax.random.PRNGKey(0)
    kx, keps = jax.random.split(key)
    x = jax.random.normal(kx, (BATCH, IN_C, H_IN, W_IN), dtype=jnp.float32)
    eps = jax.random.normal(keps, (BATCH, LATENT), dtype=jnp.float32)

    raw = init_raw_params(jax.random.PRNGKey(42))
    prep = prepare_params(raw, BATCH)

    fwd = jax.jit(fused_forward)
    recon, mu, logvar = jax.block_until_ready(fwd(prep, x, eps))

    # shape / sanity checks (same semantics as the PyTorch module)
    assert recon.shape == (BATCH, IN_C, H_DEC2, H_DEC2)
    assert mu.shape == (BATCH, LATENT) and logvar.shape == (BATCH, LATENT)
    assert bool(jnp.all(jnp.isfinite(recon)))
    assert bool(jnp.all((recon >= 0.0) & (recon <= 1.0)))   # sigmoid output

    # numerical check against a straightforward NumPy transcription of the module
    r_np, mu_np, lv_np = numpy_reference_forward(raw, x, eps)
    assert np.max(np.abs(np.asarray(mu, np.float64) - mu_np)) < 5e-3
    assert np.max(np.abs(np.asarray(logvar, np.float64) - lv_np)) < 5e-3
    assert np.max(np.abs(np.asarray(recon, np.float64) - r_np)) < 5e-3

    print("KERNEL_OK")
</pallas_src>

<mosaic_0001>
module attributes {stable_mosaic.version = 11 : i64} {
  func.func @_cvae_kernel(%arg0: i32, %arg1: memref<32x16xf32, #tpu.memory_space<vmem>>, %arg2: memref<2x8xf32, #tpu.memory_space<vmem>>, %arg3: memref<3x16x32xf32, #tpu.memory_space<vmem>>, %arg4: memref<3x16x128xf32, #tpu.memory_space<vmem>>, %arg5: memref<1x128xf32, #tpu.memory_space<vmem>>, %arg6: memref<3x12x16xf32, #tpu.memory_space<vmem>>, %arg7: memref<3x128x192xf32, #tpu.memory_space<vmem>>, %arg8: memref<1x192xf32, #tpu.memory_space<vmem>>, %arg9: memref<6x2x12xf32, #tpu.memory_space<vmem>>, %arg10: memref<6x192x8xf32, #tpu.memory_space<vmem>>, %arg11: memref<6x192x8xf32, #tpu.memory_space<vmem>>, %arg12: memref<1x8xf32, #tpu.memory_space<vmem>>, %arg13: memref<1x8xf32, #tpu.memory_space<vmem>>, %arg14: memref<6x12x2xf32, #tpu.memory_space<vmem>>, %arg15: memref<6x8x192xf32, #tpu.memory_space<vmem>>, %arg16: memref<6x1x192xf32, #tpu.memory_space<vmem>>, %arg17: memref<3x22x12xf32, #tpu.memory_space<vmem>>, %arg18: memref<3x192x176xf32, #tpu.memory_space<vmem>>, %arg19: memref<1x176xf32, #tpu.memory_space<vmem>>, %arg20: memref<3x44x22xf32, #tpu.memory_space<vmem>>, %arg21: memref<3x176x22xf32, #tpu.memory_space<vmem>>, %arg22: memref<1x22xf32, #tpu.memory_space<vmem>>, %arg23: memref<44x22xf32, #tpu.memory_space<vmem>>, %arg24: memref<2x8xf32, #tpu.memory_space<vmem>>, %arg25: memref<2x8xf32, #tpu.memory_space<vmem>>) attributes {dimension_semantics = [#tpu.dimension_semantics<arbitrary>], iteration_bounds = array<i64: 1>, scalar_prefetch = 0 : i64, scratch_operands = 0 : i64, tpu.core_type = #tpu.core_type<tc>, window_params = [{pipeline_mode = #tpu.pipeline_mode<synchronous>, transform_indices = @transform_0, window_bounds = array<i64: 32, 16>}, {pipeline_mode = #tpu.pipeline_mode<synchronous>, transform_indices = @transform_1, window_bounds = array<i64: 2, 8>}, {pipeline_mode = #tpu.pipeline_mode<synchronous>, transform_indices = @transform_2, window_bounds = array<i64: 3, 16, 32>}, {pipeline_mode = #tpu.pipeline_mode<synchronous>, transform_indices = @transform_3, window_bounds = array<i64: 3, 16, 128>}, {pipeline_mode = #tpu.pipeline_mode<synchronous>, transform_indices = @transform_4, window_bounds = array<i64: 1, 128>}, {pipeline_mode = #tpu.pipeline_mode<synchronous>, transform_indices = @transform_5, window_bounds = array<i64: 3, 12, 16>}, {pipeline_mode = #tpu.pipeline_mode<synchronous>, transform_indices = @transform_6, window_bounds = array<i64: 3, 128, 192>}, {pipeline_mode = #tpu.pipeline_mode<synchronous>, transform_indices = @transform_7, window_bounds = array<i64: 1, 192>}, {pipeline_mode = #tpu.pipeline_mode<synchronous>, transform_indices = @transform_8, window_bounds = array<i64: 6, 2, 12>}, {pipeline_mode = #tpu.pipeline_mode<synchronous>, transform_indices = @transform_9, window_bounds = array<i64: 6, 192, 8>}, {pipeline_mode = #tpu.pipeline_mode<synchronous>, transform_indices = @transform_10, window_bounds = array<i64: 6, 192, 8>}, {pipeline_mode = #tpu.pipeline_mode<synchronous>, transform_indices = @transform_11, window_bounds = array<i64: 1, 8>}, {pipeline_mode = #tpu.pipeline_mode<synchronous>, transform_indices = @transform_12, window_bounds = array<i64: 1, 8>}, {pipeline_mode = #tpu.pipeline_mode<synchronous>, transform_indices = @transform_13, window_bounds = array<i64: 6, 12, 2>}, {pipeline_mode = #tpu.pipeline_mode<synchronous>, transform_indices = @transform_14, window_bounds = array<i64: 6, 8, 192>}, {pipeline_mode = #tpu.pipeline_mode<synchronous>, transform_indices = @transform_15, window_bounds = array<i64: 6, 1, 192>}, {pipeline_mode = #tpu.pipeline_mode<synchronous>, transform_indices = @transform_16, window_bounds = array<i64: 3, 22, 12>}, {pipeline_mode = #tpu.pipeline_mode<synchronous>, transform_indices = @transform_17, window_bounds = array<i64: 3, 192, 176>}, {pipeline_mode = #tpu.pipeline_mode<synchronous>, transform_indices = @transform_18, window_bounds = array<i64: 1, 176>}, {pipeline_mode = #tpu.pipeline_mode<synchronous>, transform_indices = @transform_19, window_bounds = array<i64: 3, 44, 22>}, {pipeline_mode = #tpu.pipeline_mode<synchronous>, transform_indices = @transform_20, window_bounds = array<i64: 3, 176, 22>}, {pipeline_mode = #tpu.pipeline_mode<synchronous>, transform_indices = @transform_21, window_bounds = array<i64: 1, 22>}, {pipeline_mode = #tpu.pipeline_mode<synchronous>, transform_indices = @transform_22, window_bounds = array<i64: 44, 22>}, {pipeline_mode = #tpu.pipeline_mode<synchronous>, transform_indices = @transform_23, window_bounds = array<i64: 2, 8>}, {pipeline_mode = #tpu.pipeline_mode<synchronous>, transform_indices = @transform_24, window_bounds = array<i64: 2, 8>}]} {
    %c0 = arith.constant 0 : index
    %c0_0 = arith.constant 0 : index
    %0 = vector.load %arg1[%c0, %c0_0] : memref<32x16xf32, #tpu.memory_space<vmem>>, vector<32x16xf32>
    %c0_1 = arith.constant 0 : index
    %c0_2 = arith.constant 0 : index
    %c0_3 = arith.constant 0 : index
    %1 = vector.load %arg3[%c0_1, %c0_2, %c0_3] : memref<3x16x32xf32, #tpu.memory_space<vmem>>, vector<1x16x32xf32>
    %2 = vector.shape_cast %1 : vector<1x16x32xf32> to vector<16x32xf32>
    %cst = arith.constant dense<0.000000e+00> : vector<16x16xf32>
    %3 = tpu.matmul %2, %0, %cst {dimension_numbers = #tpu.dot_dimension_numbers<[1], [0], [0], [1], [0, 0, 1, 1], [], []>} : vector<16x32xf32>, vector<32x16xf32>, vector<16x16xf32> -> vector<16x16xf32>
    %c0_4 = arith.constant 0 : index
    %c0_5 = arith.constant 0 : index
    %c0_6 = arith.constant 0 : index
    %4 = vector.load %arg4[%c0_4, %c0_5, %c0_6] : memref<3x16x128xf32, #tpu.memory_space<vmem>>, vector<1x16x128xf32>
    %5 = vector.shape_cast %4 : vector<1x16x128xf32> to vector<16x128xf32>
    %cst_7 = arith.constant dense<0.000000e+00> : vector<16x128xf32>
    %6 = tpu.matmul %3, %5, %cst_7 {dimension_numbers = #tpu.dot_dimension_numbers<[1], [0], [0], [1], [0, 0, 1, 1], [], []>} : vector<16x16xf32>, vector<16x128xf32>, vector<16x128xf32> -> vector<16x128xf32>
    %c1 = arith.constant 1 : index
    %c0_8 = arith.constant 0 : index
    %c0_9 = arith.constant 0 : index
    %7 = vector.load %arg3[%c1, %c0_8, %c0_9] : memref<3x16x32xf32, #tpu.memory_space<vmem>>, vector<1x16x32xf32>
    %8 = vector.shape_cast %7 : vector<1x16x32xf32> to vector<16x32xf32>
    %cst_10 = arith.constant dense<0.000000e+00> : vector<16x16xf32>
    %9 = tpu.matmul %8, %0, %cst_10 {dimension_numbers = #tpu.dot_dimension_numbers<[1], [0], [0], [1], [0, 0, 1, 1], [], []>} : vector<16x32xf32>, vector<32x16xf32>, vector<16x16xf32> -> vector<16x16xf32>
    %c1_11 = arith.constant 1 : index
    %c0_12 = arith.constant 0 : index
    %c0_13 = arith.constant 0 : index
    %10 = vector.load %arg4[%c1_11, %c0_12, %c0_13] : memref<3x16x128xf32, #tpu.memory_space<vmem>>, vector<1x16x128xf32>
    %11 = vector.shape_cast %10 : vector<1x16x128xf32> to vector<16x128xf32>
    %cst_14 = arith.constant dense<0.000000e+00> : vector<16x128xf32>
    %12 = tpu.matmul %9, %11, %cst_14 {dimension_numbers = #tpu.dot_dimension_numbers<[1], [0], [0], [1], [0, 0, 1, 1], [], []>} : vector<16x16xf32>, vector<16x128xf32>, vector<16x128xf32> -> vector<16x128xf32>
    %13 = arith.addf %6, %12 : vector<16x128xf32>
    %c2 = arith.constant 2 : index
    %c0_15 = arith.constant 0 : index
    %c0_16 = arith.constant 0 : index
    %14 = vector.load %arg3[%c2, %c0_15, %c0_16] : memref<3x16x32xf32, #tpu.memory_space<vmem>>, vector<1x16x32xf32>
    %15 = vector.shape_cast %14 : vector<1x16x32xf32> to vector<16x32xf32>
    %cst_17 = arith.constant dense<0.000000e+00> : vector<16x16xf32>
    %16 = tpu.matmul %15, %0, %cst_17 {dimension_numbers = #tpu.dot_dimension_numbers<[1], [0], [0], [1], [0, 0, 1, 1], [], []>} : vector<16x32xf32>, vector<32x16xf32>, vector<16x16xf32> -> vector<16x16xf32>
    %c2_18 = arith.constant 2 : index
    %c0_19 = arith.constant 0 : index
    %c0_20 = arith.constant 0 : index
    %17 = vector.load %arg4[%c2_18, %c0_19, %c0_20] : memref<3x16x128xf32, #tpu.memory_space<vmem>>, vector<1x16x128xf32>
    %18 = vector.shape_cast %17 : vector<1x16x128xf32> to vector<16x128xf32>
    %cst_21 = arith.constant dense<0.000000e+00> : vector<16x128xf32>
    %19 = tpu.matmul %16, %18, %cst_21 {dimension_numbers = #tpu.dot_dimension_numbers<[1], [0], [0], [1], [0, 0, 1, 1], [], []>} : vector<16x16xf32>, vector<16x128xf32>, vector<16x128xf32> -> vector<16x128xf32>
    %20 = arith.addf %13, %19 : vector<16x128xf32>
    %c0_22 = arith.constant 0 : index
    %c0_23 = arith.constant 0 : index
    %21 = vector.load %arg5[%c0_22, %c0_23] : memref<1x128xf32, #tpu.memory_space<vmem>>, vector<1x128xf32>
    %22 = vector.broadcast %21 : vector<1x128xf32> to vector<16x128xf32>
    %23 = arith.addf %20, %22 : vector<16x128xf32>
    %cst_24 = arith.constant 0.000000e+00 : f32
    %24 = vector.broadcast %cst_24 : f32 to vector<16x128xf32>
    %25 = arith.maximumf %23, %24 : vector<16x128xf32>
    %c0_25 = arith.constant 0 : index
    %c0_26 = arith.constant 0 : index
    %c0_27 = arith.constant 0 : index
    %26 = vector.load %arg6[%c0_25, %c0_26, %c0_27] : memref<3x12x16xf32, #tpu.memory_space<vmem>>, vector<1x12x16xf32>
    %27 = vector.shape_cast %26 : vector<1x12x16xf32> to vector<12x16xf32>
    %cst_28 = arith.constant dense<0.000000e+00> : vector<12x128xf32>
    %28 = tpu.matmul %27, %25, %cst_28 {dimension_numbers = #tpu.dot_dimension_numbers<[1], [0], [0], [1], [0, 0, 1, 1], [], []>} : vector<12x16xf32>, vector<16x128xf32>, vector<12x128xf32> -> vector<12x128xf32>
    %c0_29 = arith.constant 0 : index
    %c0_30 = arith.constant 0 : index
    %c0_31 = arith.constant 0 : index
    %29 = vector.load %arg7[%c0_29, %c0_30, %c0_31] : memref<3x128x192xf32, #tpu.memory_space<vmem>>, vector<1x128x192xf32>
    %30 = vector.shape_cast %29 : vector<1x128x192xf32> to vector<128x192xf32>
    %cst_32 = arith.constant dense<0.000000e+00> : vector<12x192xf32>
    %31 = tpu.matmul %28, %30, %cst_32 {dimension_numbers = #tpu.dot_dimension_numbers<[1], [0], [0], [1], [0, 0, 1, 1], [], []>} : vector<12x128xf32>, vector<128x192xf32>, vector<12x192xf32> -> vector<12x192xf32>
    %c1_33 = arith.constant 1 : index
    %c0_34 = arith.constant 0 : index
    %c0_35 = arith.constant 0 : index
    %32 = vector.load %arg6[%c1_33, %c0_34, %c0_35] : memref<3x12x16xf32, #tpu.memory_space<vmem>>, vector<1x12x16xf32>
    %33 = vector.shape_cast %32 : vector<1x12x16xf32> to vector<12x16xf32>
    %cst_36 = arith.constant dense<0.000000e+00> : vector<12x128xf32>
    %34 = tpu.matmul %33, %25, %cst_36 {dimension_numbers = #tpu.dot_dimension_numbers<[1], [0], [0], [1], [0, 0, 1, 1], [], []>} : vector<12x16xf32>, vector<16x128xf32>, vector<12x128xf32> -> vector<12x128xf32>
    %c1_37 = arith.constant 1 : index
    %c0_38 = arith.constant 0 : index
    %c0_39 = arith.constant 0 : index
    %35 = vector.load %arg7[%c1_37, %c0_38, %c0_39] : memref<3x128x192xf32, #tpu.memory_space<vmem>>, vector<1x128x192xf32>
    %36 = vector.shape_cast %35 : vector<1x128x192xf32> to vector<128x192xf32>
    %cst_40 = arith.constant dense<0.000000e+00> : vector<12x192xf32>
    %37 = tpu.matmul %34, %36, %cst_40 {dimension_numbers = #tpu.dot_dimension_numbers<[1], [0], [0], [1], [0, 0, 1, 1], [], []>} : vector<12x128xf32>, vector<128x192xf32>, vector<12x192xf32> -> vector<12x192xf32>
    %38 = arith.addf %31, %37 : vector<12x192xf32>
    %c2_41 = arith.constant 2 : index
    %c0_42 = arith.constant 0 : index
    %c0_43 = arith.constant 0 : index
    %39 = vector.load %arg6[%c2_41, %c0_42, %c0_43] : memref<3x12x16xf32, #tpu.memory_space<vmem>>, vector<1x12x16xf32>
    %40 = vector.shape_cast %39 : vector<1x12x16xf32> to vector<12x16xf32>
    %cst_44 = arith.constant dense<0.000000e+00> : vector<12x128xf32>
    %41 = tpu.matmul %40, %25, %cst_44 {dimension_numbers = #tpu.dot_dimension_numbers<[1], [0], [0], [1], [0, 0, 1, 1], [], []>} : vector<12x16xf32>, vector<16x128xf32>, vector<12x128xf32> -> vector<12x128xf32>
    %c2_45 = arith.constant 2 : index
    %c0_46 = arith.constant 0 : index
    %c0_47 = arith.constant 0 : index
    %42 = vector.load %arg7[%c2_45, %c0_46, %c0_47] : memref<3x128x192xf32, #tpu.memory_space<vmem>>, vector<1x128x192xf32>
    %43 = vector.shape_cast %42 : vector<1x128x192xf32> to vector<128x192xf32>
    %cst_48 = arith.constant dense<0.000000e+00> : vector<12x192xf32>
    %44 = tpu.matmul %41, %43, %cst_48 {dimension_numbers = #tpu.dot_dimension_numbers<[1], [0], [0], [1], [0, 0, 1, 1], [], []>} : vector<12x128xf32>, vector<128x192xf32>, vector<12x192xf32> -> vector<12x192xf32>
    %45 = arith.addf %38, %44 : vector<12x192xf32>
    %c0_49 = arith.constant 0 : index
    %c0_50 = arith.constant 0 : index
    %46 = vector.load %arg8[%c0_49, %c0_50] : memref<1x192xf32, #tpu.memory_space<vmem>>, vector<1x192xf32>
    %47 = vector.broadcast %46 : vector<1x192xf32> to vector<12x192xf32>
    %48 = arith.addf %45, %47 : vector<12x192xf32>
    %cst_51 = arith.constant 0.000000e+00 : f32
    %49 = vector.broadcast %cst_51 : f32 to vector<12x192xf32>
    %50 = arith.maximumf %48, %49 : vector<12x192xf32>
    %c0_52 = arith.constant 0 : index
    %c0_53 = arith.constant 0 : index
    %c0_54 = arith.constant 0 : index
    %51 = vector.load %arg9[%c0_52, %c0_53, %c0_54] : memref<6x2x12xf32, #tpu.memory_space<vmem>>, vector<1x2x12xf32>
    %52 = vector.shape_cast %51 : vector<1x2x12xf32> to vector<2x12xf32>
    %cst_55 = arith.constant dense<0.000000e+00> : vector<2x192xf32>
    %53 = tpu.matmul %52, %50, %cst_55 {dimension_numbers = #tpu.dot_dimension_numbers<[1], [0], [0], [1], [0, 0, 1, 1], [], []>} : vector<2x12xf32>, vector<12x192xf32>, vector<2x192xf32> -> vector<2x192xf32>
    %c0_56 = arith.constant 0 : index
    %c0_57 = arith.constant 0 : index
    %c0_58 = arith.constant 0 : index
    %54 = vector.load %arg10[%c0_56, %c0_57, %c0_58] : memref<6x192x8xf32, #tpu.memory_space<vmem>>, vector<1x192x8xf32>
    %55 = vector.shape_cast %54 : vector<1x192x8xf32> to vector<192x8xf32>
    %cst_59 = arith.constant dense<0.000000e+00> : vector<2x8xf32>
    %56 = tpu.matmul %53, %55, %cst_59 {dimension_numbers = #tpu.dot_dimension_numbers<[1], [0], [0], [1], [0, 0, 1, 1], [], []>} : vector<2x192xf32>, vector<192x8xf32>, vector<2x8xf32> -> vector<2x8xf32>
    %c0_60 = arith.constant 0 : index
    %c0_61 = arith.constant 0 : index
    %c0_62 = arith.constant 0 : index
    %57 = vector.load %arg11[%c0_60, %c0_61, %c0_62] : memref<6x192x8xf32, #tpu.memory_space<vmem>>, vector<1x192x8xf32>
    %58 = vector.shape_cast %57 : vector<1x192x8xf32> to vector<192x8xf32>
    %cst_63 = arith.constant dense<0.000000e+00> : vector<2x8xf32>
    %59 = tpu.matmul %53, %58, %cst_63 {dimension_numbers = #tpu.dot_dimension_numbers<[1], [0], [0], [1], [0, 0, 1, 1], [], []>} : vector<2x192xf32>, vector<192x8xf32>, vector<2x8xf32> -> vector<2x8xf32>
    %c1_64 = arith.constant 1 : index
    %c0_65 = arith.constant 0 : index
    %c0_66 = arith.constant 0 : index
    %60 = vector.load %arg9[%c1_64, %c0_65, %c0_66] : memref<6x2x12xf32, #tpu.memory_space<vmem>>, vector<1x2x12xf32>
    %61 = vector.shape_cast %60 : vector<1x2x12xf32> to vector<2x12xf32>
    %cst_67 = arith.constant dense<0.000000e+00> : vector<2x192xf32>
    %62 = tpu.matmul %61, %50, %cst_67 {dimension_numbers = #tpu.dot_dimension_numbers<[1], [0], [0], [1], [0, 0, 1, 1], [], []>} : vector<2x12xf32>, vector<12x192xf32>, vector<2x192xf32> -> vector<2x192xf32>
    %c1_68 = arith.constant 1 : index
    %c0_69 = arith.constant 0 : index
    %c0_70 = arith.constant 0 : index
    %63 = vector.load %arg10[%c1_68, %c0_69, %c0_70] : memref<6x192x8xf32, #tpu.memory_space<vmem>>, vector<1x192x8xf32>
    %64 = vector.shape_cast %63 : vector<1x192x8xf32> to vector<192x8xf32>
    %cst_71 = arith.constant dense<0.000000e+00> : vector<2x8xf32>
    %65 = tpu.matmul %62, %64, %cst_71 {dimension_numbers = #tpu.dot_dimension_numbers<[1], [0], [0], [1], [0, 0, 1, 1], [], []>} : vector<2x192xf32>, vector<192x8xf32>, vector<2x8xf32> -> vector<2x8xf32>
    %c1_72 = arith.constant 1 : index
    %c0_73 = arith.constant 0 : index
    %c0_74 = arith.constant 0 : index
    %66 = vector.load %arg11[%c1_72, %c0_73, %c0_74] : memref<6x192x8xf32, #tpu.memory_space<vmem>>, vector<1x192x8xf32>
    %67 = vector.shape_cast %66 : vector<1x192x8xf32> to vector<192x8xf32>
    %cst_75 = arith.constant dense<0.000000e+00> : vector<2x8xf32>
    %68 = tpu.matmul %62, %67, %cst_75 {dimension_numbers = #tpu.dot_dimension_numbers<[1], [0], [0], [1], [0, 0, 1, 1], [], []>} : vector<2x192xf32>, vector<192x8xf32>, vector<2x8xf32> -> vector<2x8xf32>
    %69 = arith.addf %56, %65 : vector<2x8xf32>
    %70 = arith.addf %59, %68 : vector<2x8xf32>
    %c2_76 = arith.constant 2 : index
    %c0_77 = arith.constant 0 : index
    %c0_78 = arith.constant 0 : index
    %71 = vector.load %arg9[%c2_76, %c0_77, %c0_78] : memref<6x2x12xf32, #tpu.memory_space<vmem>>, vector<1x2x12xf32>
    %72 = vector.shape_cast %71 : vector<1x2x12xf32> to vector<2x12xf32>
    %cst_79 = arith.constant dense<0.000000e+00> : vector<2x192xf32>
    %73 = tpu.matmul %72, %50, %cst_79 {dimension_numbers = #tpu.dot_dimension_numbers<[1], [0], [0], [1], [0, 0, 1, 1], [], []>} : vector<2x12xf32>, vector<12x192xf32>, vector<2x192xf32> -> vector<2x192xf32>
    %c2_80 = arith.constant 2 : index
    %c0_81 = arith.constant 0 : index
    %c0_82 = arith.constant 0 : index
    %74 = vector.load %arg10[%c2_80, %c0_81, %c0_82] : memref<6x192x8xf32, #tpu.memory_space<vmem>>, vector<1x192x8xf32>
    %75 = vector.shape_cast %74 : vector<1x192x8xf32> to vector<192x8xf32>
    %cst_83 = arith.constant dense<0.000000e+00> : vector<2x8xf32>
    %76 = tpu.matmul %73, %75, %cst_83 {dimension_numbers = #tpu.dot_dimension_numbers<[1], [0], [0], [1], [0, 0, 1, 1], [], []>} : vector<2x192xf32>, vector<192x8xf32>, vector<2x8xf32> -> vector<2x8xf32>
    %c2_84 = arith.constant 2 : index
    %c0_85 = arith.constant 0 : index
    %c0_86 = arith.constant 0 : index
    %77 = vector.load %arg11[%c2_84, %c0_85, %c0_86] : memref<6x192x8xf32, #tpu.memory_space<vmem>>, vector<1x192x8xf32>
    %78 = vector.shape_cast %77 : vector<1x192x8xf32> to vector<192x8xf32>
    %cst_87 = arith.constant dense<0.000000e+00> : vector<2x8xf32>
    %79 = tpu.matmul %73, %78, %cst_87 {dimension_numbers = #tpu.dot_dimension_numbers<[1], [0], [0], [1], [0, 0, 1, 1], [], []>} : vector<2x192xf32>, vector<192x8xf32>, vector<2x8xf32> -> vector<2x8xf32>
    %80 = arith.addf %69, %76 : vector<2x8xf32>
    %81 = arith.addf %70, %79 : vector<2x8xf32>
    %c3 = arith.constant 3 : index
    %c0_88 = arith.constant 0 : index
    %c0_89 = arith.constant 0 : index
    %82 = vector.load %arg9[%c3, %c0_88, %c0_89] : memref<6x2x12xf32, #tpu.memory_space<vmem>>, vector<1x2x12xf32>
    %83 = vector.shape_cast %82 : vector<1x2x12xf32> to vector<2x12xf32>
    %cst_90 = arith.constant dense<0.000000e+00> : vector<2x192xf32>
    %84 = tpu.matmul %83, %50, %cst_90 {dimension_numbers = #tpu.dot_dimension_numbers<[1], [0], [0], [1], [0, 0, 1, 1], [], []>} : vector<2x12xf32>, vector<12x192xf32>, vector<2x192xf32> -> vector<2x192xf32>
    %c3_91 = arith.constant 3 : index
    %c0_92 = arith.constant 0 : index
    %c0_93 = arith.constant 0 : index
    %85 = vector.load %arg10[%c3_91, %c0_92, %c0_93] : memref<6x192x8xf32, #tpu.memory_space<vmem>>, vector<1x192x8xf32>
    %86 = vector.shape_cast %85 : vector<1x192x8xf32> to vector<192x8xf32>
    %cst_94 = arith.constant dense<0.000000e+00> : vector<2x8xf32>
    %87 = tpu.matmul %84, %86, %cst_94 {dimension_numbers = #tpu.dot_dimension_numbers<[1], [0], [0], [1], [0, 0, 1, 1], [], []>} : vector<2x192xf32>, vector<192x8xf32>, vector<2x8xf32> -> vector<2x8xf32>
    %c3_95 = arith.constant 3 : index
    %c0_96 = arith.constant 0 : index
    %c0_97 = arith.constant 0 : index
    %88 = vector.load %arg11[%c3_95, %c0_96, %c0_97] : memref<6x192x8xf32, #tpu.memory_space<vmem>>, vector<1x192x8xf32>
    %89 = vector.shape_cast %88 : vector<1x192x8xf32> to vector<192x8xf32>
    %cst_98 = arith.constant dense<0.000000e+00> : vector<2x8xf32>
    %90 = tpu.matmul %84, %89, %cst_98 {dimension_numbers = #tpu.dot_dimension_numbers<[1], [0], [0], [1], [0, 0, 1, 1], [], []>} : vector<2x192xf32>, vector<192x8xf32>, vector<2x8xf32> -> vector<2x8xf32>
    %91 = arith.addf %80, %87 : vector<2x8xf32>
    %92 = arith.addf %81, %90 : vector<2x8xf32>
    %c4 = arith.constant 4 : index
    %c0_99 = arith.constant 0 : index
    %c0_100 = arith.constant 0 : index
    %93 = vector.load %arg9[%c4, %c0_99, %c0_100] : memref<6x2x12xf32, #tpu.memory_space<vmem>>, vector<1x2x12xf32>
    %94 = vector.shape_cast %93 : vector<1x2x12xf32> to vector<2x12xf32>
    %cst_101 = arith.constant dense<0.000000e+00> : vector<2x192xf32>
    %95 = tpu.matmul %94, %50, %cst_101 {dimension_numbers = #tpu.dot_dimension_numbers<[1], [0], [0], [1], [0, 0, 1, 1], [], []>} : vector<2x12xf32>, vector<12x192xf32>, vector<2x192xf32> -> vector<2x192xf32>
    %c4_102 = arith.constant 4 : index
    %c0_103 = arith.constant 0 : index
    %c0_104 = arith.constant 0 : index
    %96 = vector.load %arg10[%c4_102, %c0_103, %c0_104] : memref<6x192x8xf32, #tpu.memory_space<vmem>>, vector<1x192x8xf32>
    %97 = vector.shape_cast %96 : vector<1x192x8xf32> to vector<192x8xf32>
    %cst_105 = arith.constant dense<0.000000e+00> : vector<2x8xf32>
    %98 = tpu.matmul %95, %97, %cst_105 {dimension_numbers = #tpu.dot_dimension_numbers<[1], [0], [0], [1], [0, 0, 1, 1], [], []>} : vector<2x192xf32>, vector<192x8xf32>, vector<2x8xf32> -> vector<2x8xf32>
    %c4_106 = arith.constant 4 : index
    %c0_107 = arith.constant 0 : index
    %c0_108 = arith.constant 0 : index
    %99 = vector.load %arg11[%c4_106, %c0_107, %c0_108] : memref<6x192x8xf32, #tpu.memory_space<vmem>>, vector<1x192x8xf32>
    %100 = vector.shape_cast %99 : vector<1x192x8xf32> to vector<192x8xf32>
    %cst_109 = arith.constant dense<0.000000e+00> : vector<2x8xf32>
    %101 = tpu.matmul %95, %100, %cst_109 {dimension_numbers = #tpu.dot_dimension_numbers<[1], [0], [0], [1], [0, 0, 1, 1], [], []>} : vector<2x192xf32>, vector<192x8xf32>, vector<2x8xf32> -> vector<2x8xf32>
    %102 = arith.addf %91, %98 : vector<2x8xf32>
    %103 = arith.addf %92, %101 : vector<2x8xf32>
    %c5 = arith.constant 5 : index
    %c0_110 = arith.constant 0 : index
    %c0_111 = arith.constant 0 : index
    %104 = vector.load %arg9[%c5, %c0_110, %c0_111] : memref<6x2x12xf32, #tpu.memory_space<vmem>>, vector<1x2x12xf32>
    %105 = vector.shape_cast %104 : vector<1x2x12xf32> to vector<2x12xf32>
    %cst_112 = arith.constant dense<0.000000e+00> : vector<2x192xf32>
    %106 = tpu.matmul %105, %50, %cst_112 {dimension_numbers = #tpu.dot_dimension_numbers<[1], [0], [0], [1], [0, 0, 1, 1], [], []>} : vector<2x12xf32>, vector<12x192xf32>, vector<2x192xf32> -> vector<2x192xf32>
    %c5_113 = arith.constant 5 : index
    %c0_114 = arith.constant 0 : index
    %c0_115 = arith.constant 0 : index
    %107 = vector.load %arg10[%c5_113, %c0_114, %c0_115] : memref<6x192x8xf32, #tpu.memory_space<vmem>>, vector<1x192x8xf32>
    %108 = vector.shape_cast %107 : vector<1x192x8xf32> to vector<192x8xf32>
    %cst_116 = arith.constant dense<0.000000e+00> : vector<2x8xf32>
    %109 = tpu.matmul %106, %108, %cst_116 {dimension_numbers = #tpu.dot_dimension_numbers<[1], [0], [0], [1], [0, 0, 1, 1], [], []>} : vector<2x192xf32>, vector<192x8xf32>, vector<2x8xf32> -> vector<2x8xf32>
    %c5_117 = arith.constant 5 : index
    %c0_118 = arith.constant 0 : index
    %c0_119 = arith.constant 0 : index
    %110 = vector.load %arg11[%c5_117, %c0_118, %c0_119] : memref<6x192x8xf32, #tpu.memory_space<vmem>>, vector<1x192x8xf32>
    %111 = vector.shape_cast %110 : vector<1x192x8xf32> to vector<192x8xf32>
    %cst_120 = arith.constant dense<0.000000e+00> : vector<2x8xf32>
    %112 = tpu.matmul %106, %111, %cst_120 {dimension_numbers = #tpu.dot_dimension_numbers<[1], [0], [0], [1], [0, 0, 1, 1], [], []>} : vector<2x192xf32>, vector<192x8xf32>, vector<2x8xf32> -> vector<2x8xf32>
    %113 = arith.addf %102, %109 : vector<2x8xf32>
    %114 = arith.addf %103, %112 : vector<2x8xf32>
    %c0_121 = arith.constant 0 : index
    %c0_122 = arith.constant 0 : index
    %115 = vector.load %arg12[%c0_121, %c0_122] : memref<1x8xf32, #tpu.memory_space<vmem>>, vector<1x8xf32>
    %116 = vector.broadcast %115 : vector<1x8xf32> to vector<2x8xf32>
    %117 = arith.addf %113, %116 : vector<2x8xf32>
    %c0_123 = arith.constant 0 : index
    %c0_124 = arith.constant 0 : index
    %118 = vector.load %arg13[%c0_123, %c0_124] : memref<1x8xf32, #tpu.memory_space<vmem>>, vector<1x8xf32>
    %119 = vector.broadcast %118 : vector<1x8xf32> to vector<2x8xf32>
    %120 = arith.addf %114, %119 : vector<2x8xf32>
    %c0_125 = arith.constant 0 : index
    %c0_126 = arith.constant 0 : index
    %121 = vector.load %arg24[%c0_125, %c0_126] : memref<2x8xf32, #tpu.memory_space<vmem>>, vector<2x8xf32>
    tpu.vector_store %arg24[%c0_125, %c0_126], %117 {strides = array<i32>} : memref<2x8xf32, #tpu.memory_space<vmem>>, vector<2x8xf32>,
    %c0_127 = arith.constant 0 : index
    %c0_128 = arith.constant 0 : index
    %122 = vector.load %arg25[%c0_127, %c0_128] : memref<2x8xf32, #tpu.memory_space<vmem>>, vector<2x8xf32>
    tpu.vector_store %arg25[%c0_127, %c0_128], %120 {strides = array<i32>} : memref<2x8xf32, #tpu.memory_space<vmem>>, vector<2x8xf32>,
    %c0_129 = arith.constant 0 : index
    %c0_130 = arith.constant 0 : index
    %123 = vector.load %arg2[%c0_129, %c0_130] : memref<2x8xf32, #tpu.memory_space<vmem>>, vector<2x8xf32>
    %cst_131 = arith.constant 5.000000e-01 : f32
    %124 = vector.broadcast %cst_131 : f32 to vector<2x8xf32>
    %125 = arith.mulf %124, %120 : vector<2x8xf32>
    %126 = math.exp %125 : vector<2x8xf32>
    %127 = arith.mulf %123, %126 : vector<2x8xf32>
    %128 = arith.addf %117, %127 : vector<2x8xf32>
    %c0_132 = arith.constant 0 : index
    %c0_133 = arith.constant 0 : index
    %c0_134 = arith.constant 0 : index
    %129 = vector.load %arg15[%c0_132, %c0_133, %c0_134] : memref<6x8x192xf32, #tpu.memory_space<vmem>>, vector<1x8x192xf32>
    %130 = vector.shape_cast %129 : vector<1x8x192xf32> to vector<8x192xf32>
    %cst_135 = arith.constant dense<0.000000e+00> : vector<2x192xf32>
    %131 = tpu.matmul %128, %130, %cst_135 {dimension_numbers = #tpu.dot_dimension_numbers<[1], [0], [0], [1], [0, 0, 1, 1], [], []>} : vector<2x8xf32>, vector<8x192xf32>, vector<2x192xf32> -> vector<2x192xf32>
    %c0_136 = arith.constant 0 : index
    %c0_137 = arith.constant 0 : index
    %c0_138 = arith.constant 0 : index
    %132 = vector.load %arg16[%c0_136, %c0_137, %c0_138] : memref<6x1x192xf32, #tpu.memory_space<vmem>>, vector<1x1x192xf32>
    %133 = vector.shape_cast %132 : vector<1x1x192xf32> to vector<1x192xf32>
    %134 = vector.broadcast %133 : vector<1x192xf32> to vector<2x192xf32>
    %135 = arith.addf %131, %134 : vector<2x192xf32>
    %c0_139 = arith.constant 0 : index
    %c0_140 = arith.constant 0 : index
    %c0_141 = arith.constant 0 : index
    %136 = vector.load %arg14[%c0_139, %c0_140, %c0_141] : memref<6x12x2xf32, #tpu.memory_space<vmem>>, vector<1x12x2xf32>
    %137 = vector.shape_cast %136 : vector<1x12x2xf32> to vector<12x2xf32>
    %cst_142 = arith.constant dense<0.000000e+00> : vector<12x192xf32>
    %138 = tpu.matmul %137, %135, %cst_142 {dimension_numbers = #tpu.dot_dimension_numbers<[1], [0], [0], [1], [0, 0, 1, 1], [], []>} : vector<12x2xf32>, vector<2x192xf32>, vector<12x192xf32> -> vector<12x192xf32>
    %c1_143 = arith.constant 1 : index
    %c0_144 = arith.constant 0 : index
    %c0_145 = arith.constant 0 : index
    %139 = vector.load %arg15[%c1_143, %c0_144, %c0_145] : memref<6x8x192xf32, #tpu.memory_space<vmem>>, vector<1x8x192xf32>
    %140 = vector.shape_cast %139 : vector<1x8x192xf32> to vector<8x192xf32>
    %cst_146 = arith.constant dense<0.000000e+00> : vector<2x192xf32>
    %141 = tpu.matmul %128, %140, %cst_146 {dimension_numbers = #tpu.dot_dimension_numbers<[1], [0], [0], [1], [0, 0, 1, 1], [], []>} : vector<2x8xf32>, vector<8x192xf32>, vector<2x192xf32> -> vector<2x192xf32>
    %c1_147 = arith.constant 1 : index
    %c0_148 = arith.constant 0 : index
    %c0_149 = arith.constant 0 : index
    %142 = vector.load %arg16[%c1_147, %c0_148, %c0_149] : memref<6x1x192xf32, #tpu.memory_space<vmem>>, vector<1x1x192xf32>
    %143 = vector.shape_cast %142 : vector<1x1x192xf32> to vector<1x192xf32>
    %144 = vector.broadcast %143 : vector<1x192xf32> to vector<2x192xf32>
    %145 = arith.addf %141, %144 : vector<2x192xf32>
    %c1_150 = arith.constant 1 : index
    %c0_151 = arith.constant 0 : index
    %c0_152 = arith.constant 0 : index
    %146 = vector.load %arg14[%c1_150, %c0_151, %c0_152] : memref<6x12x2xf32, #tpu.memory_space<vmem>>, vector<1x12x2xf32>
    %147 = vector.shape_cast %146 : vector<1x12x2xf32> to vector<12x2xf32>
    %cst_153 = arith.constant dense<0.000000e+00> : vector<12x192xf32>
    %148 = tpu.matmul %147, %145, %cst_153 {dimension_numbers = #tpu.dot_dimension_numbers<[1], [0], [0], [1], [0, 0, 1, 1], [], []>} : vector<12x2xf32>, vector<2x192xf32>, vector<12x192xf32> -> vector<12x192xf32>
    %149 = arith.addf %138, %148 : vector<12x192xf32>
    %c2_154 = arith.constant 2 : index
    %c0_155 = arith.constant 0 : index
    %c0_156 = arith.constant 0 : index
    %150 = vector.load %arg15[%c2_154, %c0_155, %c0_156] : memref<6x8x192xf32, #tpu.memory_space<vmem>>, vector<1x8x192xf32>
    %151 = vector.shape_cast %150 : vector<1x8x192xf32> to vector<8x192xf32>
    %cst_157 = arith.constant dense<0.000000e+00> : vector<2x192xf32>
    %152 = tpu.matmul %128, %151, %cst_157 {dimension_numbers = #tpu.dot_dimension_numbers<[1], [0], [0], [1], [0, 0, 1, 1], [], []>} : vector<2x8xf32>, vector<8x192xf32>, vector<2x192xf32> -> vector<2x192xf32>
    %c2_158 = arith.constant 2 : index
    %c0_159 = arith.constant 0 : index
    %c0_160 = arith.constant 0 : index
    %153 = vector.load %arg16[%c2_158, %c0_159, %c0_160] : memref<6x1x192xf32, #tpu.memory_space<vmem>>, vector<1x1x192xf32>
    %154 = vector.shape_cast %153 : vector<1x1x192xf32> to vector<1x192xf32>
    %155 = vector.broadcast %154 : vector<1x192xf32> to vector<2x192xf32>
    %156 = arith.addf %152, %155 : vector<2x192xf32>
    %c2_161 = arith.constant 2 : index
    %c0_162 = arith.constant 0 : index
    %c0_163 = arith.constant 0 : index
    %157 = vector.load %arg14[%c2_161, %c0_162, %c0_163] : memref<6x12x2xf32, #tpu.memory_space<vmem>>, vector<1x12x2xf32>
    %158 = vector.shape_cast %157 : vector<1x12x2xf32> to vector<12x2xf32>
    %cst_164 = arith.constant dense<0.000000e+00> : vector<12x192xf32>
    %159 = tpu.matmul %158, %156, %cst_164 {dimension_numbers = #tpu.dot_dimension_numbers<[1], [0], [0], [1], [0, 0, 1, 1], [], []>} : vector<12x2xf32>, vector<2x192xf32>, vector<12x192xf32> -> vector<12x192xf32>
    %160 = arith.addf %149, %159 : vector<12x192xf32>
    %c3_165 = arith.constant 3 : index
    %c0_166 = arith.constant 0 : index
    %c0_167 = arith.constant 0 : index
    %161 = vector.load %arg15[%c3_165, %c0_166, %c0_167] : memref<6x8x192xf32, #tpu.memory_space<vmem>>, vector<1x8x192xf32>
    %162 = vector.shape_cast %161 : vector<1x8x192xf32> to vector<8x192xf32>
    %cst_168 = arith.constant dense<0.000000e+00> : vector<2x192xf32>
    %163 = tpu.matmul %128, %162, %cst_168 {dimension_numbers = #tpu.dot_dimension_numbers<[1], [0], [0], [1], [0, 0, 1, 1], [], []>} : vector<2x8xf32>, vector<8x192xf32>, vector<2x192xf32> -> vector<2x192xf32>
    %c3_169 = arith.constant 3 : index
    %c0_170 = arith.constant 0 : index
    %c0_171 = arith.constant 0 : index
    %164 = vector.load %arg16[%c3_169, %c0_170, %c0_171] : memref<6x1x192xf32, #tpu.memory_space<vmem>>, vector<1x1x192xf32>
    %165 = vector.shape_cast %164 : vector<1x1x192xf32> to vector<1x192xf32>
    %166 = vector.broadcast %165 : vector<1x192xf32> to vector<2x192xf32>
    %167 = arith.addf %163, %166 : vector<2x192xf32>
    %c3_172 = arith.constant 3 : index
    %c0_173 = arith.constant 0 : index
    %c0_174 = arith.constant 0 : index
    %168 = vector.load %arg14[%c3_172, %c0_173, %c0_174] : memref<6x12x2xf32, #tpu.memory_space<vmem>>, vector<1x12x2xf32>
    %169 = vector.shape_cast %168 : vector<1x12x2xf32> to vector<12x2xf32>
    %cst_175 = arith.constant dense<0.000000e+00> : vector<12x192xf32>
    %170 = tpu.matmul %169, %167, %cst_175 {dimension_numbers = #tpu.dot_dimension_numbers<[1], [0], [0], [1], [0, 0, 1, 1], [], []>} : vector<12x2xf32>, vector<2x192xf32>, vector<12x192xf32> -> vector<12x192xf32>
    %171 = arith.addf %160, %170 : vector<12x192xf32>
    %c4_176 = arith.constant 4 : index
    %c0_177 = arith.constant 0 : index
    %c0_178 = arith.constant 0 : index
    %172 = vector.load %arg15[%c4_176, %c0_177, %c0_178] : memref<6x8x192xf32, #tpu.memory_space<vmem>>, vector<1x8x192xf32>
    %173 = vector.shape_cast %172 : vector<1x8x192xf32> to vector<8x192xf32>
    %cst_179 = arith.constant dense<0.000000e+00> : vector<2x192xf32>
    %174 = tpu.matmul %128, %173, %cst_179 {dimension_numbers = #tpu.dot_dimension_numbers<[1], [0], [0], [1], [0, 0, 1, 1], [], []>} : vector<2x8xf32>, vector<8x192xf32>, vector<2x192xf32> -> vector<2x192xf32>
    %c4_180 = arith.constant 4 : index
    %c0_181 = arith.constant 0 : index
    %c0_182 = arith.constant 0 : index
    %175 = vector.load %arg16[%c4_180, %c0_181, %c0_182] : memref<6x1x192xf32, #tpu.memory_space<vmem>>, vector<1x1x192xf32>
    %176 = vector.shape_cast %175 : vector<1x1x192xf32> to vector<1x192xf32>
    %177 = vector.broadcast %176 : vector<1x192xf32> to vector<2x192xf32>
    %178 = arith.addf %174, %177 : vector<2x192xf32>
    %c4_183 = arith.constant 4 : index
    %c0_184 = arith.constant 0 : index
    %c0_185 = arith.constant 0 : index
    %179 = vector.load %arg14[%c4_183, %c0_184, %c0_185] : memref<6x12x2xf32, #tpu.memory_space<vmem>>, vector<1x12x2xf32>
    %180 = vector.shape_cast %179 : vector<1x12x2xf32> to vector<12x2xf32>
    %cst_186 = arith.constant dense<0.000000e+00> : vector<12x192xf32>
    %181 = tpu.matmul %180, %178, %cst_186 {dimension_numbers = #tpu.dot_dimension_numbers<[1], [0], [0], [1], [0, 0, 1, 1], [], []>} : vector<12x2xf32>, vector<2x192xf32>, vector<12x192xf32> -> vector<12x192xf32>
    %182 = arith.addf %171, %181 : vector<12x192xf32>
    %c5_187 = arith.constant 5 : index
    %c0_188 = arith.constant 0 : index
    %c0_189 = arith.constant 0 : index
    %183 = vector.load %arg15[%c5_187, %c0_188, %c0_189] : memref<6x8x192xf32, #tpu.memory_space<vmem>>, vector<1x8x192xf32>
    %184 = vector.shape_cast %183 : vector<1x8x192xf32> to vector<8x192xf32>
    %cst_190 = arith.constant dense<0.000000e+00> : vector<2x192xf32>
    %185 = tpu.matmul %128, %184, %cst_190 {dimension_numbers = #tpu.dot_dimension_numbers<[1], [0], [0], [1], [0, 0, 1, 1], [], []>} : vector<2x8xf32>, vector<8x192xf32>, vector<2x192xf32> -> vector<2x192xf32>
    %c5_191 = arith.constant 5 : index
    %c0_192 = arith.constant 0 : index
    %c0_193 = arith.constant 0 : index
    %186 = vector.load %arg16[%c5_191, %c0_192, %c0_193] : memref<6x1x192xf32, #tpu.memory_space<vmem>>, vector<1x1x192xf32>
    %187 = vector.shape_cast %186 : vector<1x1x192xf32> to vector<1x192xf32>
    %188 = vector.broadcast %187 : vector<1x192xf32> to vector<2x192xf32>
    %189 = arith.addf %185, %188 : vector<2x192xf32>
    %c5_194 = arith.constant 5 : index
    %c0_195 = arith.constant 0 : index
    %c0_196 = arith.constant 0 : index
    %190 = vector.load %arg14[%c5_194, %c0_195, %c0_196] : memref<6x12x2xf32, #tpu.memory_space<vmem>>, vector<1x12x2xf32>
    %191 = vector.shape_cast %190 : vector<1x12x2xf32> to vector<12x2xf32>
    %cst_197 = arith.constant dense<0.000000e+00> : vector<12x192xf32>
    %192 = tpu.matmul %191, %189, %cst_197 {dimension_numbers = #tpu.dot_dimension_numbers<[1], [0], [0], [1], [0, 0, 1, 1], [], []>} : vector<12x2xf32>, vector<2x192xf32>, vector<12x192xf32> -> vector<12x192xf32>
    %193 = arith.addf %182, %192 : vector<12x192xf32>
    %cst_198 = arith.constant 0.000000e+00 : f32
    %194 = vector.broadcast %cst_198 : f32 to vector<12x192xf32>
    %195 = arith.maximumf %193, %194 : vector<12x192xf32>
    %c0_199 = arith.constant 0 : index
    %c0_200 = arith.constant 0 : index
    %c0_201 = arith.constant 0 : index
    %196 = vector.load %arg17[%c0_199, %c0_200, %c0_201] : memref<3x22x12xf32, #tpu.memory_space<vmem>>, vector<1x22x12xf32>
    %197 = vector.shape_cast %196 : vector<1x22x12xf32> to vector<22x12xf32>
    %cst_202 = arith.constant dense<0.000000e+00> : vector<22x192xf32>
    %198 = tpu.matmul %197, %195, %cst_202 {dimension_numbers = #tpu.dot_dimension_numbers<[1], [0], [0], [1], [0, 0, 1, 1], [], []>} : vector<22x12xf32>, vector<12x192xf32>, vector<22x192xf32> -> vector<22x192xf32>
    %c0_203 = arith.constant 0 : index
    %c0_204 = arith.constant 0 : index
    %c0_205 = arith.constant 0 : index
    %199 = vector.load %arg18[%c0_203, %c0_204, %c0_205] : memref<3x192x176xf32, #tpu.memory_space<vmem>>, vector<1x192x176xf32>
    %200 = vector.shape_cast %199 : vector<1x192x176xf32> to vector<192x176xf32>
    %cst_206 = arith.constant dense<0.000000e+00> : vector<22x176xf32>
    %201 = tpu.matmul %198, %200, %cst_206 {dimension_numbers = #tpu.dot_dimension_numbers<[1], [0], [0], [1], [0, 0, 1, 1], [], []>} : vector<22x192xf32>, vector<192x176xf32>, vector<22x176xf32> -> vector<22x176xf32>
    %c1_207 = arith.constant 1 : index
    %c0_208 = arith.constant 0 : index
    %c0_209 = arith.constant 0 : index
    %202 = vector.load %arg17[%c1_207, %c0_208, %c0_209] : memref<3x22x12xf32, #tpu.memory_space<vmem>>, vector<1x22x12xf32>
    %203 = vector.shape_cast %202 : vector<1x22x12xf32> to vector<22x12xf32>
    %cst_210 = arith.constant dense<0.000000e+00> : vector<22x192xf32>
    %204 = tpu.matmul %203, %195, %cst_210 {dimension_numbers = #tpu.dot_dimension_numbers<[1], [0], [0], [1], [0, 0, 1, 1], [], []>} : vector<22x12xf32>, vector<12x192xf32>, vector<22x192xf32> -> vector<22x192xf32>
    %c1_211 = arith.constant 1 : index
    %c0_212 = arith.constant 0 : index
    %c0_213 = arith.constant 0 : index
    %205 = vector.load %arg18[%c1_211, %c0_212, %c0_213] : memref<3x192x176xf32, #tpu.memory_space<vmem>>, vector<1x192x176xf32>
    %206 = vector.shape_cast %205 : vector<1x192x176xf32> to vector<192x176xf32>
    %cst_214 = arith.constant dense<0.000000e+00> : vector<22x176xf32>
    %207 = tpu.matmul %204, %206, %cst_214 {dimension_numbers = #tpu.dot_dimension_numbers<[1], [0], [0], [1], [0, 0, 1, 1], [], []>} : vector<22x192xf32>, vector<192x176xf32>, vector<22x176xf32> -> vector<22x176xf32>
    %208 = arith.addf %201, %207 : vector<22x176xf32>
    %c2_215 = arith.constant 2 : index
    %c0_216 = arith.constant 0 : index
    %c0_217 = arith.constant 0 : index
    %209 = vector.load %arg17[%c2_215, %c0_216, %c0_217] : memref<3x22x12xf32, #tpu.memory_space<vmem>>, vector<1x22x12xf32>
    %210 = vector.shape_cast %209 : vector<1x22x12xf32> to vector<22x12xf32>
    %cst_218 = arith.constant dense<0.000000e+00> : vector<22x192xf32>
    %211 = tpu.matmul %210, %195, %cst_218 {dimension_numbers = #tpu.dot_dimension_numbers<[1], [0], [0], [1], [0, 0, 1, 1], [], []>} : vector<22x12xf32>, vector<12x192xf32>, vector<22x192xf32> -> vector<22x192xf32>
    %c2_219 = arith.constant 2 : index
    %c0_220 = arith.constant 0 : index
    %c0_221 = arith.constant 0 : index
    %212 = vector.load %arg18[%c2_219, %c0_220, %c0_221] : memref<3x192x176xf32, #tpu.memory_space<vmem>>, vector<1x192x176xf32>
    %213 = vector.shape_cast %212 : vector<1x192x176xf32> to vector<192x176xf32>
    %cst_222 = arith.constant dense<0.000000e+00> : vector<22x176xf32>
    %214 = tpu.matmul %211, %213, %cst_222 {dimension_numbers = #tpu.dot_dimension_numbers<[1], [0], [0], [1], [0, 0, 1, 1], [], []>} : vector<22x192xf32>, vector<192x176xf32>, vector<22x176xf32> -> vector<22x176xf32>
    %215 = arith.addf %208, %214 : vector<22x176xf32>
    %c0_223 = arith.constant 0 : index
    %c0_224 = arith.constant 0 : index
    %216 = vector.load %arg19[%c0_223, %c0_224] : memref<1x176xf32, #tpu.memory_space<vmem>>, vector<1x176xf32>
    %217 = vector.broadcast %216 : vector<1x176xf32> to vector<22x176xf32>
    %218 = arith.addf %215, %217 : vector<22x176xf32>
    %cst_225 = arith.constant 0.000000e+00 : f32
    %219 = vector.broadcast %cst_225 : f32 to vector<22x176xf32>
    %220 = arith.maximumf %218, %219 : vector<22x176xf32>
    %c0_226 = arith.constant 0 : index
    %c0_227 = arith.constant 0 : index
    %c0_228 = arith.constant 0 : index
    %221 = vector.load %arg20[%c0_226, %c0_227, %c0_228] : memref<3x44x22xf32, #tpu.memory_space<vmem>>, vector<1x44x22xf32>
    %222 = vector.shape_cast %221 : vector<1x44x22xf32> to vector<44x22xf32>
    %cst_229 = arith.constant dense<0.000000e+00> : vector<44x176xf32>
    %223 = tpu.matmul %222, %220, %cst_229 {dimension_numbers = #tpu.dot_dimension_numbers<[1], [0], [0], [1], [0, 0, 1, 1], [], []>} : vector<44x22xf32>, vector<22x176xf32>, vector<44x176xf32> -> vector<44x176xf32>
    %c0_230 = arith.constant 0 : index
    %c0_231 = arith.constant 0 : index
    %c0_232 = arith.constant 0 : index
    %224 = vector.load %arg21[%c0_230, %c0_231, %c0_232] : memref<3x176x22xf32, #tpu.memory_space<vmem>>, vector<1x176x22xf32>
    %225 = vector.shape_cast %224 : vector<1x176x22xf32> to vector<176x22xf32>
    %cst_233 = arith.constant dense<0.000000e+00> : vector<44x22xf32>
    %226 = tpu.matmul %223, %225, %cst_233 {dimension_numbers = #tpu.dot_dimension_numbers<[1], [0], [0], [1], [0, 0, 1, 1], [], []>} : vector<44x176xf32>, vector<176x22xf32>, vector<44x22xf32> -> vector<44x22xf32>
    %c1_234 = arith.constant 1 : index
    %c0_235 = arith.constant 0 : index
    %c0_236 = arith.constant 0 : index
    %227 = vector.load %arg20[%c1_234, %c0_235, %c0_236] : memref<3x44x22xf32, #tpu.memory_space<vmem>>, vector<1x44x22xf32>
    %228 = vector.shape_cast %227 : vector<1x44x22xf32> to vector<44x22xf32>
    %cst_237 = arith.constant dense<0.000000e+00> : vector<44x176xf32>
    %229 = tpu.matmul %228, %220, %cst_237 {dimension_numbers = #tpu.dot_dimension_numbers<[1], [0], [0], [1], [0, 0, 1, 1], [], []>} : vector<44x22xf32>, vector<22x176xf32>, vector<44x176xf32> -> vector<44x176xf32>
    %c1_238 = arith.constant 1 : index
    %c0_239 = arith.constant 0 : index
    %c0_240 = arith.constant 0 : index
    %230 = vector.load %arg21[%c1_238, %c0_239, %c0_240] : memref<3x176x22xf32, #tpu.memory_space<vmem>>, vector<1x176x22xf32>
    %231 = vector.shape_cast %230 : vector<1x176x22xf32> to vector<176x22xf32>
    %cst_241 = arith.constant dense<0.000000e+00> : vector<44x22xf32>
    %232 = tpu.matmul %229, %231, %cst_241 {dimension_numbers = #tpu.dot_dimension_numbers<[1], [0], [0], [1], [0, 0, 1, 1], [], []>} : vector<44x176xf32>, vector<176x22xf32>, vector<44x22xf32> -> vector<44x22xf32>
    %233 = arith.addf %226, %232 : vector<44x22xf32>
    %c2_242 = arith.constant 2 : index
    %c0_243 = arith.constant 0 : index
    %c0_244 = arith.constant 0 : index
    %234 = vector.load %arg20[%c2_242, %c0_243, %c0_244] : memref<3x44x22xf32, #tpu.memory_space<vmem>>, vector<1x44x22xf32>
    %235 = vector.shape_cast %234 : vector<1x44x22xf32> to vector<44x22xf32>
    %cst_245 = arith.constant dense<0.000000e+00> : vector<44x176xf32>
    %236 = tpu.matmul %235, %220, %cst_245 {dimension_numbers = #tpu.dot_dimension_numbers<[1], [0], [0], [1], [0, 0, 1, 1], [], []>} : vector<44x22xf32>, vector<22x176xf32>, vector<44x176xf32> -> vector<44x176xf32>
    %c2_246 = arith.constant 2 : index
    %c0_247 = arith.constant 0 : index
    %c0_248 = arith.constant 0 : index
    %237 = vector.load %arg21[%c2_246, %c0_247, %c0_248] : memref<3x176x22xf32, #tpu.memory_space<vmem>>, vector<1x176x22xf32>
    %238 = vector.shape_cast %237 : vector<1x176x22xf32> to vector<176x22xf32>
    %cst_249 = arith.constant dense<0.000000e+00> : vector<44x22xf32>
    %239 = tpu.matmul %236, %238, %cst_249 {dimension_numbers = #tpu.dot_dimension_numbers<[1], [0], [0], [1], [0, 0, 1, 1], [], []>} : vector<44x176xf32>, vector<176x22xf32>, vector<44x22xf32> -> vector<44x22xf32>
    %240 = arith.addf %233, %239 : vector<44x22xf32>
    %c0_250 = arith.constant 0 : index
    %c0_251 = arith.constant 0 : index
    %241 = vector.load %arg22[%c0_250, %c0_251] : memref<1x22xf32, #tpu.memory_space<vmem>>, vector<1x22xf32>
    %242 = vector.broadcast %241 : vector<1x22xf32> to vector<44x22xf32>
    %243 = arith.addf %240, %242 : vector<44x22xf32>
    %cst_252 = arith.constant 0.000000e+00 : f32
    %244 = vector.broadcast %cst_252 : f32 to vector<44x22xf32>
    %245 = arith.subf %244, %243 : vector<44x22xf32>
    %246 = math.exp %245 : vector<44x22xf32>
    %cst_253 = arith.constant 1.000000e+00 : f32
    %247 = vector.broadcast %cst_253 : f32 to vector<44x22xf32>
    %248 = arith.addf %247, %246 : vector<44x22xf32>
    %cst_254 = arith.constant 1.000000e+00 : f32
    %249 = vector.broadcast %cst_254 : f32 to vector<44x22xf32>
    %250 = arith.divf %249, %248 : vector<44x22xf32>
    %c0_255 = arith.constant 0 : index
    %c0_256 = arith.constant 0 : index
    %251 = vector.load %arg23[%c0_255, %c0_256] : memref<44x22xf32, #tpu.memory_space<vmem>>, vector<44x22xf32>
    tpu.vector_store %arg23[%c0_255, %c0_256], %250 {strides = array<i32>} : memref<44x22xf32, #tpu.memory_space<vmem>>, vector<44x22xf32>,
    return
  }
  func.func @transform_0(%arg0: i32) -> (i32, i32) {
    %c0_i32 = arith.constant 0 : i32
    %c0_i32_0 = arith.constant 0 : i32
    %c0_i32_1 = arith.constant 0 : i32
    return %c0_i32, %c0_i32_0 : i32, i32
  }
  func.func @transform_1(%arg0: i32) -> (i32, i32) {
    %c0_i32 = arith.constant 0 : i32
    %c0_i32_0 = arith.constant 0 : i32
    %c0_i32_1 = arith.constant 0 : i32
    return %c0_i32, %c0_i32_0 : i32, i32
  }
  func.func @transform_2(%arg0: i32) -> (i32, i32, i32) {
    %c0_i32 = arith.constant 0 : i32
    %c0_i32_0 = arith.constant 0 : i32
    %c0_i32_1 = arith.constant 0 : i32
    %c0_i32_2 = arith.constant 0 : i32
    return %c0_i32, %c0_i32_0, %c0_i32_1 : i32, i32, i32
  }
  func.func @transform_3(%arg0: i32) -> (i32, i32, i32) {
    %c0_i32 = arith.constant 0 : i32
    %c0_i32_0 = arith.constant 0 : i32
    %c0_i32_1 = arith.constant 0 : i32
    %c0_i32_2 = arith.constant 0 : i32
    return %c0_i32, %c0_i32_0, %c0_i32_1 : i32, i32, i32
  }
  func.func @transform_4(%arg0: i32) -> (i32, i32) {
    %c0_i32 = arith.constant 0 : i32
    %c0_i32_0 = arith.constant 0 : i32
    %c0_i32_1 = arith.constant 0 : i32
    return %c0_i32, %c0_i32_0 : i32, i32
  }
  func.func @transform_5(%arg0: i32) -> (i32, i32, i32) {
    %c0_i32 = arith.constant 0 : i32
    %c0_i32_0 = arith.constant 0 : i32
    %c0_i32_1 = arith.constant 0 : i32
    %c0_i32_2 = arith.constant 0 : i32
    return %c0_i32, %c0_i32_0, %c0_i32_1 : i32, i32, i32
  }
  func.func @transform_6(%arg0: i32) -> (i32, i32, i32) {
    %c0_i32 = arith.constant 0 : i32
    %c0_i32_0 = arith.constant 0 : i32
    %c0_i32_1 = arith.constant 0 : i32
    %c0_i32_2 = arith.constant 0 : i32
    return %c0_i32, %c0_i32_0, %c0_i32_1 : i32, i32, i32
  }
  func.func @transform_7(%arg0: i32) -> (i32, i32) {
    %c0_i32 = arith.constant 0 : i32
    %c0_i32_0 = arith.constant 0 : i32
    %c0_i32_1 = arith.constant 0 : i32
    return %c0_i32, %c0_i32_0 : i32, i32
  }
  func.func @transform_8(%arg0: i32) -> (i32, i32, i32) {
    %c0_i32 = arith.constant 0 : i32
    %c0_i32_0 = arith.constant 0 : i32
    %c0_i32_1 = arith.constant 0 : i32
    %c0_i32_2 = arith.constant 0 : i32
    return %c0_i32, %c0_i32_0, %c0_i32_1 : i32, i32, i32
  }
  func.func @transform_9(%arg0: i32) -> (i32, i32, i32) {
    %c0_i32 = arith.constant 0 : i32
    %c0_i32_0 = arith.constant 0 : i32
    %c0_i32_1 = arith.constant 0 : i32
    %c0_i32_2 = arith.constant 0 : i32
    return %c0_i32, %c0_i32_0, %c0_i32_1 : i32, i32, i32
  }
  func.func @transform_10(%arg0: i32) -> (i32, i32, i32) {
    %c0_i32 = arith.constant 0 : i32
    %c0_i32_0 = arith.constant 0 : i32
    %c0_i32_1 = arith.constant 0 : i32
    %c0_i32_2 = arith.constant 0 : i32
    return %c0_i32, %c0_i32_0, %c0_i32_1 : i32, i32, i32
  }
  func.func @transform_11(%arg0: i32) -> (i32, i32) {
    %c0_i32 = arith.constant 0 : i32
    %c0_i32_0 = arith.constant 0 : i32
    %c0_i32_1 = arith.constant 0 : i32
    return %c0_i32, %c0_i32_0 : i32, i32
  }
  func.func @transform_12(%arg0: i32) -> (i32, i32) {
    %c0_i32 = arith.constant 0 : i32
    %c0_i32_0 = arith.constant 0 : i32
    %c0_i32_1 = arith.constant 0 : i32
    return %c0_i32, %c0_i32_0 : i32, i32
  }
  func.func @transform_13(%arg0: i32) -> (i32, i32, i32) {
    %c0_i32 = arith.constant 0 : i32
    %c0_i32_0 = arith.constant 0 : i32
    %c0_i32_1 = arith.constant 0 : i32
    %c0_i32_2 = arith.constant 0 : i32
    return %c0_i32, %c0_i32_0, %c0_i32_1 : i32, i32, i32
  }
  func.func @transform_14(%arg0: i32) -> (i32, i32, i32) {
    %c0_i32 = arith.constant 0 : i32
    %c0_i32_0 = arith.constant 0 : i32
    %c0_i32_1 = arith.constant 0 : i32
    %c0_i32_2 = arith.constant 0 : i32
    return %c0_i32, %c0_i32_0, %c0_i32_1 : i32, i32, i32
  }
  func.func @transform_15(%arg0: i32) -> (i32, i32, i32) {
    %c0_i32 = arith.constant 0 : i32
    %c0_i32_0 = arith.constant 0 : i32
    %c0_i32_1 = arith.constant 0 : i32
    %c0_i32_2 = arith.constant 0 : i32
    return %c0_i32, %c0_i32_0, %c0_i32_1 : i32, i32, i32
  }
  func.func @transform_16(%arg0: i32) -> (i32, i32, i32) {
    %c0_i32 = arith.constant 0 : i32
    %c0_i32_0 = arith.constant 0 : i32
    %c0_i32_1 = arith.constant 0 : i32
    %c0_i32_2 = arith.constant 0 : i32
    return %c0_i32, %c0_i32_0, %c0_i32_1 : i32, i32, i32
  }
  func.func @transform_17(%arg0: i32) -> (i32, i32, i32) {
    %c0_i32 = arith.constant 0 : i32
    %c0_i32_0 = arith.constant 0 : i32
    %c0_i32_1 = arith.constant 0 : i32
    %c0_i32_2 = arith.constant 0 : i32
    return %c0_i32, %c0_i32_0, %c0_i32_1 : i32, i32, i32
  }
  func.func @transform_18(%arg0: i32) -> (i32, i32) {
    %c0_i32 = arith.constant 0 : i32
    %c0_i32_0 = arith.constant 0 : i32
    %c0_i32_1 = arith.constant 0 : i32
    return %c0_i32, %c0_i32_0 : i32, i32
  }
  func.func @transform_19(%arg0: i32) -> (i32, i32, i32) {
    %c0_i32 = arith.constant 0 : i32
    %c0_i32_0 = arith.constant 0 : i32
    %c0_i32_1 = arith.constant 0 : i32
    %c0_i32_2 = arith.constant 0 : i32
    return %c0_i32, %c0_i32_0, %c0_i32_1 : i32, i32, i32
  }
  func.func @transform_20(%arg0: i32) -> (i32, i32, i32) {
    %c0_i32 = arith.constant 0 : i32
    %c0_i32_0 = arith.constant 0 : i32
    %c0_i32_1 = arith.constant 0 : i32
    %c0_i32_2 = arith.constant 0 : i32
    return %c0_i32, %c0_i32_0, %c0_i32_1 : i32, i32, i32
  }
  func.func @transform_21(%arg0: i32) -> (i32, i32) {
    %c0_i32 = arith.constant 0 : i32
    %c0_i32_0 = arith.constant 0 : i32
    %c0_i32_1 = arith.constant 0 : i32
    return %c0_i32, %c0_i32_0 : i32, i32
  }
  func.func @transform_22(%arg0: i32) -> (i32, i32) {
    %c0_i32 = arith.constant 0 : i32
    %c0_i32_0 = arith.constant 0 : i32
    %c0_i32_1 = arith.constant 0 : i32
    return %c0_i32, %c0_i32_0 : i32, i32
  }
  func.func @transform_23(%arg0: i32) -> (i32, i32) {
    %c0_i32 = arith.constant 0 : i32
    %c0_i32_0 = arith.constant 0 : i32
    %c0_i32_1 = arith.constant 0 : i32
    return %c0_i32, %c0_i32_0 : i32, i32
  }
  func.func @transform_24(%arg0: i32) -> (i32, i32) {
    %c0_i32 = arith.constant 0 : i32
    %c0_i32_0 = arith.constant 0 : i32
    %c0_i32_1 = arith.constant 0 : i32
    return %c0_i32, %c0_i32_0 : i32, i32
  }
}

</mosaic_0001>

<bundles_post_ra>
// kernel: fused_forward.1
= control target key start
LH: loop header
LB: loop body
LE: loop exit
PB: predicated region body
PF: predicated region fallthrough
CT: control target
= control target key end

     0   :  { %s10181_s0 = inlined_call_operand.vmem [shape: f32[32,16], index: 0, kind: input, shape index: {}]   ;;  %s10182_s1 = inlined_call_operand.vmem [shape: f32[2,8], index: 1, kind: input, shape index: {}]   ;;  %s10183_s2 = inlined_call_operand.vmem [shape: f32[3,16,32], index: 2, kind: input, shape index: {}]   ;;  %s10184_s3 = inlined_call_operand.vmem [shape: f32[3,16,128], index: 3, kind: input, shape index: {}]   ;;  %s10185_s4 = inlined_call_operand.vmem [shape: f32[1,128], index: 4, kind: input, shape index: {}]   ;;  %s10186_s5 = inlined_call_operand.vmem [shape: f32[3,12,16], index: 5, kind: input, shape index: {}]   ;;  %s10187_s6 = inlined_call_operand.vmem [shape: f32[3,128,192], index: 6, kind: input, shape index: {}]   ;;  %s10188_s7 = inlined_call_operand.vmem [shape: f32[1,192], index: 7, kind: input, shape index: {}]   ;;  %s10189_s8 = inlined_call_operand.vmem [shape: f32[6,2,12], index: 8, kind: input, shape index: {}]   ;;  %s10190_s9 = inlined_call_operand.vmem [shape: f32[6,192,8], index: 9, kind: input, shape index: {}]   ;;  %s10191_s10 = inlined_call_operand.vmem [shape: f32[6,192,8], index: 10, kind: input, shape index: {}]   ;;  %s10192_s11 = inlined_call_operand.vmem [shape: f32[1,8], index: 11, kind: input, shape index: {}]   ;;  %s10193_s12 = inlined_call_operand.vmem [shape: f32[1,8], index: 12, kind: input, shape index: {}]   ;;  %s10194_s13 = inlined_call_operand.vmem [shape: f32[6,12,2], index: 13, kind: input, shape index: {}]   ;;  %s10195_s14 = inlined_call_operand.vmem [shape: f32[6,8,192], index: 14, kind: input, shape index: {}]   ;;  %s10196_s15 = inlined_call_operand.vmem [shape: f32[6,1,192], index: 15, kind: input, shape index: {}]   ;;  %s10197_s16 = inlined_call_operand.vmem [shape: f32[3,22,12], index: 16, kind: input, shape index: {}]   ;;  %s10198_s17 = inlined_call_operand.vmem [shape: f32[3,192,176], index: 17, kind: input, shape index: {}]   ;;  %s10199_s18 = inlined_call_operand.vmem [shape: f32[1,176], index: 18, kind: input, shape index: {}]   ;;  %s10200_s19 = inlined_call_operand.vmem [shape: f32[3,44,22], index: 19, kind: input, shape index: {}]   ;;  %s10201_s20 = inlined_call_operand.vmem [shape: f32[3,176,22], index: 20, kind: input, shape index: {}]   ;;  %s10202_s21 = inlined_call_operand.vmem [shape: f32[1,22], index: 21, kind: input, shape index: {}]   ;;  %s10203_s22 = inlined_call_operand.vmem [shape: f32[44,22], index: 22, kind: output, shape index: {0}]   ;;  %s10204_s23 = inlined_call_operand.hbm [shape: f32[2,8], index: 23, kind: output, shape index: {1}]   ;;  %s10205_s24 = inlined_call_operand.hbm [shape: f32[2,8], index: 24, kind: output, shape index: {2}]  }
   0x1   :  { %10212 = sst [smem:[#allocation8_spill]] %s10181_s0 }
   0x2   :  { %10213 = sst [smem:[#allocation9_spill]] %s10182_s1 }
   0x3   :  { %10214 = sst [smem:[#allocation10_spill]] %s10183_s2 }
   0x4   :  { %10215 = sst [smem:[#allocation11_spill]] %s10184_s3 }
   0x5   :  { %10216 = sst [smem:[#allocation12_spill]] %s10185_s4 }
   0x6   :  { %10217 = sst [smem:[#allocation13_spill]] %s10186_s5 }
   0x7   :  { %10218 = sst [smem:[#allocation14_spill]] %s10187_s6 }
   0x8   :  { %10219 = sst [smem:[#allocation15_spill]] %s10188_s7 }
   0x9   :  { %10220 = sst [smem:[#allocation16_spill]] %s10189_s8 }
   0xa   :  { %30 = vsyncpa [#allocation3], 0  ;;  %s10221_s27 = sld [smem:[#allocation8_spill]]  ;;  %vm82_vm0 = vcmask 261120   ;;  %s10222_s25 = sld [smem:[#allocation10_spill]] }
   0xb   :  { %s10223_s26 = sld [smem:[#allocation11_spill]] }
  0x10   :  { %v76_v0 = vld [vmem:[%s10221_s27] sm:$0xff]  ;;  %v77_v1 = vld [vmem:[%s10221_s27 + $0x8] sm:$0xff]  ;;  %v78_v2 = vld [vmem:[%s10221_s27 + $0x10] sm:$0xff] }
  0x11   :  { %v6352_v3 = vpack.c.bf16 %v77_v1, %v76_v0  ;;  %v79_v4 = vld [vmem:[%s10221_s27 + $0x18] sm:$0xff]  ;;  %v5585_v5 = vld [vmem:[%s10222_s25 + $0x10] sm:$0xff]  ;;  %v80_v7 = vld [vmem:[%s10222_s25] sm:$0xff] }
  0x12   :  { %v6356_v6 = vpack.c.bf16 %v79_v4, %v78_v2  ;;  %6296 = vmatprep.mubr.msk.f32.mxu1 %vm82_vm0, %v5585_v5  ;;  %v5589_v8 = vld [vmem:[%s10223_s26 + $0x10] sm:$0xff]  ;;  %v5590_v9 = vld [vmem:[%s10223_s26 + $0x18] sm:$0xff] }
  0x13   :  { %6361 = vmatprep.subr.bf16.mxu1 %v6352_v3  ;;  %6353 = vmatprep.subr.bf16.mxu0 %v6352_v3 }
  0x14   :  { %6363 = vmatpush3.bf16.msra.mxu1 %v6352_v3  ;;  %6355 = vmatpush3.bf16.msra.mxu0 %v6352_v3 }
  0x15   :  { %31 = vsyncpa [#allocation5], 0  ;;  %6365 = vmatprep.subr.bf16.mxu1 %v6356_v6  ;;  %6357 = vmatprep.subr.bf16.mxu0 %v6356_v6  ;;  %v6368_v10 = vpack.c.bf16 %v5590_v9, %v5589_v8  ;;  %v5586_v11 = vld [vmem:[%s10222_s25 + $0x18] sm:$0xff]  ;;  %v81_v12 = vld [vmem:[%s10222_s25 + $0x8] sm:$0xff]  ;;  %vm253_vm1 = vcmask 130048   ;;  %s10224_s0 = sld [smem:[#allocation13_spill]] }
  0x16   :  { %6285 = vmatprep.mubr.msk.f32.mxu0 %vm82_vm0, %v80_v7  ;;  %v5595_v13 = vld [vmem:[%s10222_s25 + $0x20] sm:$0xff]  ;;  %v5596_v14 = vld [vmem:[%s10222_s25 + $0x28] sm:$0xff]  ;;  %s10225_s4 = sld [smem:[#allocation12_spill]]  ;;  %s10226_s28 = sld [smem:[#allocation14_spill]]  ;;  %vm1206_vm2 = vcmask 1043456   ;;  %vm7366_vm3 = vmmov 1  }
  0x17   :  { %v164_v15 = vld [vmem:[%s10223_s26] sm:$0xff]  ;;  %v165_v16 = vld [vmem:[%s10223_s26 + $0x8] sm:$0xff]  ;;  %s10227_s3 = sld [smem:[#allocation15_spill]]  ;;  %vm7983_vm4 = vmpackc.low %vm1206_vm2, %vm7366_vm3  ;;  %vm1202_vm5 = vcmask 97280   ;;  %vm1433_vm6 = vcmask 523264   ;;  %vm2845_vm7 = vcmask 58368  }
  0x18   :  { %6367 = vmatpush3.bf16.msra.mxu1 %v6356_v6  ;;  %6359 = vmatpush3.bf16.msra.mxu0 %v6356_v6  ;;  %v6372_v17 = vpack.c.bf16 %v165_v16, %v164_v15  ;;  %v5599_v18 = vld [vmem:[%s10223_s26 + $0x20] sm:$0xff]  ;;  %v5600_v19 = vld [vmem:[%s10223_s26 + $0x28] sm:$0xff]  ;;  %vm2868_vm8 = vcmask 64512   ;;  %vm3042_vm9 = vcmask 1041408   ;;  %vm3035_vm10 = vcmask 15360   ;;  %s7368_s25 = smov [#allocation4]  }
  0x19   :  { %6377 = vmatprep.subr.bf16.mxu1 %v6352_v3  ;;  %6369 = vmatprep.subr.bf16.mxu0 %v6368_v10  ;;  %v6384_v24 = vpack.c.bf16 %v5600_v19, %v5599_v18  ;;  %vm4721_vm11 = vcmask 1045504   ;;  %vm4702_vm12 = vcmask 179200   ;;  %vm5000_vm13 = vcmask 392192   ;;  %s5569_s26 = sshll.u32 %s7368_s25, 4  ;;  %s5570_s26 = int_to_ptr.vmem [resolvable:$true] %s5569_s26 }
  0x1b   :  { %6297 = vmatmul.mubr.msk.f32.vlgmr.msra.gmra.mrb[0].mxu1 %vm82_vm0, %v5586_v11  ;;  %6286 = vmatmul.mubr.msk.f32.vlgmr.msra.gmra.mrb[0].mxu0 %vm82_vm0, %v81_v12  ;;  %v5606_v27 = vld [vmem:[%s10224_s0 + $0x10] sm:$0xff]  ;;  %v597_v28 = vld [vmem:[%s10224_s0] sm:$0xff]  ;;  %v5607_v44 = vld [vmem:[%s10224_s0 + $0x18] sm:$0xf] }
  0x1c   :  { %6379 = vmatpush3.bf16.msra.mxu1 %v6352_v3  ;;  %6321 = vmatprep.mubr.msk.f32.mxu1 %vm82_vm0, %v5595_v13  ;;  %v5603_v29 = vld [vmem:[%s10225_s4] ss:$0 sm:$0xff]  ;;  %v5611_v35 = vld [vmem:[%s10226_s28 + $0x108] sm:$0xff]  ;;  %v5613_v36 = vld [vmem:[%s10226_s28 + $0x118] sm:$0xff]  ;;  %s10230_s4 = sld [smem:[#allocation16_spill]] }
  0x1d   :  { %6381 = vmatprep.subr.bf16.mxu1 %v6356_v6  ;;  %6371 = vmatpush3.bf16.msra.mxu0 %v6368_v10  ;;  %v6396_v39 = vpack.c.bf16 %v5613_v36, %v5611_v35  ;;  %v5610_v40 = vld [vmem:[%s10226_s28 + $0x100] sm:$0xff]  ;;  %v5612_v41 = vld [vmem:[%s10226_s28 + $0x110] sm:$0xff]  ;;  %v5615_v42 = vld [vmem:[%s10226_s28 + $0x128] sm:$0xff] }
  0x1e   :  { %6373 = vmatprep.subr.bf16.mxu0 %v6372_v17  ;;  %v5617_v43 = vld [vmem:[%s10226_s28 + $0x138] sm:$0xff]  ;;  %v598_v45 = vld [vmem:[%s10224_s0 + $0x8] sm:$0xf]  ;;  %v5642_v46 = vld [vmem:[%s10224_s0 + $0x20] sm:$0xff]  ;;  %v6398_v47 = vpack.c.bf16 %v5612_v41, %v5610_v40 }
  0x1f   :  { %v6400_v48 = vpack.c.bf16 %v5617_v43, %v5615_v42  ;;  %v5614_v49 = vld [vmem:[%s10226_s28 + $0x120] sm:$0xff]  ;;  %v5616_v50 = vld [vmem:[%s10226_s28 + $0x130] sm:$0xff]  ;;  %v5619_v51 = vld [vmem:[%s10226_s28 + $0x148] sm:$0xff] }
  0x20   :  { %6383 = vmatpush3.bf16.msra.mxu1 %v6356_v6  ;;  %v5621_v52 = vld [vmem:[%s10226_s28 + $0x158] sm:$0xff]  ;;  %v5643_v53 = vld [vmem:[%s10224_s0 + $0x28] sm:$0xf]  ;;  %v6402_v54 = vpack.c.bf16 %v5616_v50, %v5614_v49  ;;  %v5618_v56 = vld [vmem:[%s10226_s28 + $0x140] sm:$0xff] }
  0x21   :  { %v6404_v55 = vpack.c.bf16 %v5621_v52, %v5619_v51  ;;  %v5620_v57 = vld [vmem:[%s10226_s28 + $0x150] sm:$0xff]  ;;  %v5623_v58 = vld [vmem:[%s10226_s28 + $0x168] sm:$0xff]  ;;  %v5625_v59 = vld [vmem:[%s10226_s28 + $0x178] sm:$0xff] }
  0x22   :  { %v6406_v60 = vpack.c.bf16 %v5620_v57, %v5618_v56  ;;  %v6408_v61 = vpack.c.bf16 %v5625_v59, %v5623_v58  ;;  %v5622_v62 = vld [vmem:[%s10226_s28 + $0x160] sm:$0xff]  ;;  %v5624_v63 = vld [vmem:[%s10226_s28 + $0x170] sm:$0xff]  ;;  %v5627_v0 = vld [vmem:[%s10226_s28 + $0x188] sm:$0xff] }
  0x23   :  { %6322 = vmatmul.mubr.msk.f32.vlgmr.msra.gmra.mrb[2].mxu1 %vm82_vm0, %v5596_v14  ;;  %v5629_v1 = vld [vmem:[%s10226_s28 + $0x198] sm:$0xff]  ;;  %v6410_v2 = vpack.c.bf16 %v5624_v63, %v5622_v62  ;;  %v5626_v4 = vld [vmem:[%s10226_s28 + $0x180] sm:$0xff]  ;;  %v5628_v5 = vld [vmem:[%s10226_s28 + $0x190] sm:$0xff] }
  0x24   :  { %6335 = vmatprep.mubr.msk.f32.mxu1 %vm253_vm1, %v597_v28  ;;  %v6412_v3 = vpack.c.bf16 %v5629_v1, %v5627_v0  ;;  %v5631_v6 = vld [vmem:[%s10226_s28 + $0x1a8] sm:$0xff]  ;;  %v5633_v7 = vld [vmem:[%s10226_s28 + $0x1b8] sm:$0xff]  ;;  %v6414_v8 = vpack.c.bf16 %v5628_v5, %v5626_v4  ;;  %v5630_v10 = vld [vmem:[%s10226_s28 + $0x1a0] sm:$0xff]  ;;  %v7364_v28 = vmov 0.0  }
  0x25   :  { %v6416_v9 = vpack.c.bf16 %v5633_v7, %v5631_v6  ;;  %v5632_v11 = vld [vmem:[%s10226_s28 + $0x1b0] sm:$0xff]  ;;  %v5635_v12 = vld [vmem:[%s10226_s28 + $0x1c8] sm:$0xff]  ;;  %v5637_v13 = vld [vmem:[%s10226_s28 + $0x1d8] sm:$0xff] }
  0x26   :  { %v6418_v14 = vpack.c.bf16 %v5632_v11, %v5630_v10  ;;  %v6420_v15 = vpack.c.bf16 %v5637_v13, %v5635_v12  ;;  %v5634_v16 = vld [vmem:[%s10226_s28 + $0x1c0] sm:$0xff]  ;;  %v5639_v18 = vld [vmem:[%s10226_s28 + $0x1e8] sm:$0xff]  ;;  %v5641_v19 = vld [vmem:[%s10226_s28 + $0x1f8] sm:$0xff] }
  0x27   :  { %v684_v36 = vld [vmem:[%s10226_s28 + $0x20] sm:$0xff]  ;;  %v689_v40 = vld [vmem:[%s10226_s28 + $0x48] sm:$0xff]  ;;  %v691_v41 = vld [vmem:[%s10226_s28 + $0x58] sm:$0xff] }
  0x28   :  { %v695_v49 = vld [vmem:[%s10226_s28 + $0x78] sm:$0xff]  ;;  %v696_v59 = vld [vmem:[%s10226_s28 + $0x80] sm:$0xff] }
  0x29   :  { %v699_v56 = vld [vmem:[%s10226_s28 + $0x98] sm:$0xff]  ;;  %v700_v1 = vld [vmem:[%s10226_s28 + $0xa0] sm:$0xff] }
  0x2a   :  { %v703_v62 = vld [vmem:[%s10226_s28 + $0xb8] sm:$0xff]  ;;  %v704_v7 = vld [vmem:[%s10226_s28 + $0xc0] sm:$0xff] }
  0x2b   :  { %v707_v4 = vld [vmem:[%s10226_s28 + $0xd8] sm:$0xff]  ;;  %v708_v13 = vld [vmem:[%s10226_s28 + $0xe0] sm:$0xff] }
  0x2c   :  { %v711_v10 = vld [vmem:[%s10226_s28 + $0xf8] sm:$0xff] }
  0xee   :  { %v6298_v20 = vpop.f32.mrb[0].mxu1  ;;  %v6287_v21 = vpop.f32.mrb[0].mxu0 }
  0xef   :  { %v241_v22 = vpop.f32.mrb[1].mxu1  ;;  %v155_v23 = vpop.f32.mrb[1].mxu0 }
  0xf0   :  { %6303 = vmatprep.mubr.msk.f32.mxu0 %vm253_vm1, %v241_v22  ;;  %v5638_v22 = vld [vmem:[%s10226_s28 + $0x1e0] sm:$0xff] }
  0xf1   :  { %6304 = vmatmul.mubr.msk.f32.vlgmr.msra.gmra.mrb[2].mxu0 %vm253_vm1, %v6298_v20 }
  0xf2   :  { %6375 = vmatpush3.bf16.msra.mxu0 %v6372_v17  ;;  %6310 = vmatprep.mubr.msk.f32.mxu0 %vm253_vm1, %v155_v23  ;;  %v5636_v17 = vld [vmem:[%s10226_s28 + $0x1d0] sm:$0xff] }
  0xf3   :  { %6385 = vmatprep.subr.bf16.mxu0 %v6384_v24  ;;  %v6422_v20 = vpack.c.bf16 %v5636_v17, %v5634_v16  ;;  %v5640_v23 = vld [vmem:[%s10226_s28 + $0x1f0] sm:$0xff]  ;;  %v5649_v16 = vld [vmem:[%s10226_s28 + $0x218] sm:$0xff] }
  0xf6   :  { %v6323_v25 = vpop.f32.mrb[2].mxu1 }
  0xf7   :  { %v491_v26 = vpop.f32.mrb[3].mxu1 }
  0xf9   :  { %6311 = vmatmul.mubr.msk.f32.vlgmr.msra.gmra.mrb[2].mxu0 %vm253_vm1, %v6287_v21  ;;  %v6424_v21 = vpack.c.bf16 %v5641_v19, %v5639_v18  ;;  %v5646_v19 = vld [vmem:[%s10226_s28 + $0x200] sm:$0xff] }
  0xfa   :  { %6387 = vmatpush3.bf16.msra.mxu0 %v6384_v24  ;;  %6328 = vmatprep.mubr.msk.f32.mxu0 %vm253_vm1, %v491_v26  ;;  %v6426_v24 = vpack.c.bf16 %v5640_v23, %v5638_v22  ;;  %v683_v26 = vld [vmem:[%s10226_s28 + $0x18] sm:$0xff] }
  0xfb   :  { %v5653_v22 = vld [vmem:[%s10226_s28 + $0x238] sm:$0xff] }
 0x101   :  { %6329 = vmatmul.mubr.msk.f32.vlgmr.msra.gmra.mrb[2].mxu0 %vm253_vm1, %v6323_v25  ;;  %v681_v25 = vld [vmem:[%s10226_s28 + $0x8] sm:$0xff] }
 0x102   :  { %6342 = vmatprep.mubr.msk.f32.mxu0 %vm253_vm1, %v5606_v27  ;;  %v6428_v27 = vpack.c.bf16 %v683_v26, %v681_v25  ;;  %v5650_v25 = vld [vmem:[%s10226_s28 + $0x220] sm:$0xff]  ;;  %v5652_v26 = vld [vmem:[%s10226_s28 + $0x230] sm:$0xff] }
 0x1d4   :  { %v6330_v30 = vpop.f32.mrb[2].mxu0 }
 0x1d5   :  { %v594_v31 = vadd.f32 %v6330_v30, %v5603_v29  ;;  %v575_v32 = vpop.f32.mrb[3].mxu0  ;;  %v682_v30 = vld [vmem:[%s10226_s28 + $0x10] sm:$0xff] }
 0x1d6   :  { %v593_v33 = vadd.f32 %v5603_v29, %v575_v32  ;;  %v680_v29 = vld [vmem:[%s10226_s28] sm:$0xff]  ;;  %v687_v32 = vld [vmem:[%s10226_s28 + $0x38] sm:$0xff] }
 0x1d7   :  { %v596_v34 = vmax.f32 %v594_v31, 0.0  ;;  %v685_v31 = vld [vmem:[%s10226_s28 + $0x28] sm:$0xff] }
 0x1d8   :  { %v595_v37 = vmax.f32 %v593_v33, 0.0  ;;  %v6430_v33 = vpack.c.bf16 %v682_v30, %v680_v29  ;;  %v6432_v35 = vpack.c.bf16 %v687_v32, %v685_v31  ;;  %v5657_v29 = vld [vmem:[%s10226_s28 + $0x258] sm:$0xff]  ;;  %v6470_v30 = vpack.c.bf16 %v5652_v26, %v5650_v25  ;;  %v5654_v32 = vld [vmem:[%s10226_s28 + $0x240] sm:$0xff] }
 0x1d9   :  { %v1300_v26 = vld [vmem:[%s10190_s9 + $0x80] sm:$0xff] }
 0x1da   :  { %v6388_v38 = vpack.c.bf16 %v596_v34, %v595_v37  ;;  %v686_v37 = vld [vmem:[%s10226_s28 + $0x30] sm:$0xff] }
 0x1db   :  { %v6434_v43 = vpack.c.bf16 %v686_v37, %v684_v36 }
 0x1dc   :  { %6389 = vmatprep.subr.bf16.mxu1 %v6388_v38  ;;  %6393 = vmatprep.subr.bf16.mxu0 %v6388_v38 }
 0x1dd   :  { %6391 = vmatpush3.bf16.msra.mxu1 %v6388_v38  ;;  %6395 = vmatpush3.bf16.msra.mxu0 %v6388_v38 }
 0x1de   :  { %6461 = vmatprep.subr.bf16.mxu0 %v6388_v38  ;;  %6397 = vmatprep.subr.bf16.mxu1 %v6396_v39 }
 0x1e0   :  { %6343 = vmatmul.mubr.msk.f32.vlgmr.msra.gmra.mrb[4].mxu0 %vm253_vm1, %v5607_v44  ;;  %6336 = vmatmul.mubr.msk.f32.vlgmr.msra.gmra.mrb[4].mxu1 %vm253_vm1, %v598_v45  ;;  %v6436_v44 = vpack.c.bf16 %v691_v41, %v689_v40  ;;  %v688_v45 = vld [vmem:[%s10226_s28 + $0x40] sm:$0xff]  ;;  %v5660_v40 = vld [vmem:[%s10226_s28 + $0x270] sm:$0xff]  ;;  %v5663_v41 = vld [vmem:[%s10226_s28 + $0x288] sm:$0xff] }
 0x1e1   :  { %6463 = vmatpush3.bf16.msra.mxu0 %v6388_v38  ;;  %6349 = vmatprep.mubr.msk.f32.mxu0 %vm253_vm1, %v5642_v46  ;;  %v690_v46 = vld [vmem:[%s10226_s28 + $0x50] sm:$0xff] }
 0x1e2   :  { %6399 = vmatpush1.bf16.msra.mxu1 %v6398_v47  ;;  %893 = vmatprep.mubr.f32.mxu1 %v7364_v28  ;;  %v6438_v51 = vpack.c.bf16 %v690_v46, %v688_v45  ;;  %v5664_v45 = vld [vmem:[%s10226_s28 + $0x290] sm:$0xff]  ;;  %v5667_v46 = vld [vmem:[%s10226_s28 + $0x2a8] sm:$0xff] }
 0x1e3   :  { %6401 = vmatprep.subr.bf16.mxu1 %v6400_v48  ;;  %v693_v48 = vld [vmem:[%s10226_s28 + $0x68] sm:$0xff] }
 0x1e4   :  { %6350 = vmatmul.mubr.msk.f32.vlgmr.msra.gmra.mrb[6].mxu0 %vm253_vm1, %v5643_v53  ;;  %v6440_v52 = vpack.c.bf16 %v695_v49, %v693_v48  ;;  %v692_v53 = vld [vmem:[%s10226_s28 + $0x60] sm:$0xff]  ;;  %v5669_v48 = vld [vmem:[%s10226_s28 + $0x2b8] sm:$0xff] }
 0x1e5   :  { %1277 = vmatprep.mubr.f32.mxu0 %v7364_v28 }
 0x1e6   :  { %6403 = vmatpush1.bf16.msra.mxu1 %v6402_v54  ;;  %v694_v54 = vld [vmem:[%s10226_s28 + $0x70] sm:$0xff] }
 0x1e7   :  { %6405 = vmatprep.subr.bf16.mxu1 %v6404_v55  ;;  %v697_v55 = vld [vmem:[%s10226_s28 + $0x88] sm:$0xff]  ;;  %v6442_v57 = vpack.c.bf16 %v694_v54, %v692_v53  ;;  %v5668_v53 = vld [vmem:[%s10226_s28 + $0x2b0] sm:$0xff] }
 0x1e8   :  { %v6444_v58 = vpack.c.bf16 %v699_v56, %v697_v55  ;;  %v5671_v54 = vld [vmem:[%s10226_s28 + $0x2c8] sm:$0xff]  ;;  %v5673_v55 = vld [vmem:[%s10226_s28 + $0x2d8] sm:$0xff] }
 0x1ea   :  { %6407 = vmatpush1.bf16.msra.mxu1 %v6406_v60  ;;  %v698_v60 = vld [vmem:[%s10226_s28 + $0x90] sm:$0xff] }
 0x1eb   :  { %6409 = vmatprep.subr.bf16.mxu1 %v6408_v61  ;;  %v701_v61 = vld [vmem:[%s10226_s28 + $0xa8] sm:$0xff]  ;;  %v6446_v63 = vpack.c.bf16 %v698_v60, %v696_v59  ;;  %v5672_v59 = vld [vmem:[%s10226_s28 + $0x2d0] sm:$0xff] }
 0x1ec   :  { %v6448_v0 = vpack.c.bf16 %v703_v62, %v701_v61  ;;  %v5675_v60 = vld [vmem:[%s10226_s28 + $0x2e8] sm:$0xff]  ;;  %v5677_v61 = vld [vmem:[%s10226_s28 + $0x2f8] sm:$0xff] }
 0x1ee   :  { %6411 = vmatpush1.bf16.msra.mxu1 %v6410_v2  ;;  %v702_v2 = vld [vmem:[%s10226_s28 + $0xb0] sm:$0xff] }
 0x1ef   :  { %6413 = vmatprep.subr.bf16.mxu1 %v6412_v3  ;;  %v705_v3 = vld [vmem:[%s10226_s28 + $0xc8] sm:$0xff]  ;;  %v6450_v5 = vpack.c.bf16 %v702_v2, %v700_v1  ;;  %v5676_v1 = vld [vmem:[%s10226_s28 + $0x2f0] sm:$0xff] }
 0x1f0   :  { %v6452_v6 = vpack.c.bf16 %v707_v4, %v705_v3  ;;  %v1284_v3 = vld [vmem:[%s10190_s9] sm:$0xff]  ;;  %v1285_v4 = vld [vmem:[%s10190_s9 + $0x8] sm:$0xff] }
 0x1f2   :  { %6415 = vmatpush1.bf16.msra.mxu1 %v6414_v8  ;;  %v706_v8 = vld [vmem:[%s10226_s28 + $0xd0] sm:$0xff] }
 0x1f3   :  { %6417 = vmatprep.subr.bf16.mxu1 %v6416_v9  ;;  %v709_v9 = vld [vmem:[%s10226_s28 + $0xe8] sm:$0xff]  ;;  %v6454_v11 = vpack.c.bf16 %v706_v8, %v704_v7  ;;  %v1286_v7 = vld [vmem:[%s10190_s9 + $0x10] sm:$0xff]  ;;  %v1287_v8 = vld [vmem:[%s10190_s9 + $0x18] sm:$0xff] }
 0x1f4   :  { %v6456_v12 = vpack.c.bf16 %v711_v10, %v709_v9  ;;  %v6584_v9 = vpack.c.bf16 %v1287_v8, %v1286_v7  ;;  %v1288_v10 = vld [vmem:[%s10190_s9 + $0x20] sm:$0xff] }
 0x1f5   :  { %v5689_v8 = vld [vmem:[%s10190_s9 + $0xe0] sm:$0xff] }
 0x1f6   :  { %6419 = vmatpush1.bf16.msra.mxu1 %v6418_v14  ;;  %v710_v14 = vld [vmem:[%s10226_s28 + $0xf0] sm:$0xff] }
 0x1f7   :  { %6421 = vmatprep.subr.bf16.mxu1 %v6420_v15  ;;  %v5647_v15 = vld [vmem:[%s10226_s28 + $0x208] sm:$0xff]  ;;  %v6458_v17 = vpack.c.bf16 %v710_v14, %v708_v13  ;;  %v1291_v13 = vld [vmem:[%s10190_s9 + $0x38] sm:$0xff] }
 0x1f8   :  { %v6464_v18 = vpack.c.bf16 %v5649_v16, %v5647_v15  ;;  %v1293_v15 = vld [vmem:[%s10190_s9 + $0x48] sm:$0xff] }
 0x1fa   :  { %6423 = vmatpush1.bf16.msra.mxu1 %v6422_v20  ;;  %v5648_v20 = vld [vmem:[%s10226_s28 + $0x210] sm:$0xff] }
 0x1fb   :  { %6425 = vmatprep.subr.bf16.mxu1 %v6424_v21  ;;  %v5651_v21 = vld [vmem:[%s10226_s28 + $0x228] sm:$0xff]  ;;  %v6466_v23 = vpack.c.bf16 %v5648_v20, %v5646_v19  ;;  %v1296_v20 = vld [vmem:[%s10190_s9 + $0x60] sm:$0xff] }
 0x1fe   :  { %6427 = vmatpush1.bf16.msra.mxu1 %v6426_v24  ;;  %v6468_v24 = vpack.c.bf16 %v5653_v22, %v5651_v21  ;;  %v1297_v21 = vld [vmem:[%s10190_s9 + $0x68] sm:$0xff] }
 0x1ff   :  { %6429 = vmatprep.subr.bf16.mxu1 %v6428_v27  ;;  %v5655_v27 = vld [vmem:[%s10226_s28 + $0x248] sm:$0xff]  ;;  %v6599_v22 = vpack.c.bf16 %v1297_v21, %v1296_v20  ;;  %v5699_v21 = vld [vmem:[%s10190_s9 + $0x130] sm:$0xff] }
 0x200   :  { %v6472_v31 = vpack.c.bf16 %v5657_v29, %v5655_v27  ;;  %v1301_v27 = vld [vmem:[%s10190_s9 + $0x88] sm:$0xff] }
 0x201   :  { %v6605_v29 = vpack.c.bf16 %v1301_v27, %v1300_v26  ;;  %v5703_v27 = vld [vmem:[%s10190_s9 + $0x150] sm:$0xff] }
 0x2b3   :  { %v6344_v34 = vpop.f32.mrb[4].mxu0  ;;  %v7703_v38 = vpop.f32.mrb[4].mxu1 }
 0x2b4   :  { %v787_v39 = vpop.f32.mrb[5].mxu0  ;;  %v7711_v42 = vpop.f32.mrb[5].mxu1 }
 0x2b5   :  { %894 = vmatmul.mubr.f32.vlgmr.msra.gmra.mrb[6].mxu1 %v787_v39  ;;  %v5658_v39 = vld [vmem:[%s10226_s28 + $0x260] sm:$0xff] }
 0x2b6   :  { %6431 = vmatpush1.bf16.msra.mxu1 %v6430_v33  ;;  %899 = vmatprep.mubr.f32.mxu1 %v7364_v28  ;;  %v5656_v33 = vld [vmem:[%s10226_s28 + $0x250] sm:$0xff] }
 0x2b7   :  { %6433 = vmatprep.subr.bf16.mxu1 %v6432_v35  ;;  %v7720_v47 = vpop.f32.mrb[6].mxu0  ;;  %v5661_v35 = vld [vmem:[%s10226_s28 + $0x278] sm:$0xff]  ;;  %v6474_v36 = vpack.c.bf16 %v5656_v33, %v5654_v32  ;;  %v1304_v33 = vld [vmem:[%s10190_s9 + $0xa0] sm:$0xff] }
 0x2b8   :  { %v7728_v50 = vpop.f32.mrb[7].mxu0 }
 0x2b9   :  { %900 = vmatmul.mubr.f32.gmra.mrb[8].mxu1 %v6344_v34  ;;  %v5659_v34 = vld [vmem:[%s10226_s28 + $0x268] sm:$0xff] }
 0x2ba   :  { %6435 = vmatpush1.bf16.msra.mxu1 %v6434_v43  ;;  %970 = vmatprep.mubr.f32.mxu1 %v7364_v28  ;;  %v6476_v37 = vpack.c.bf16 %v5661_v35, %v5659_v34  ;;  %v1305_v34 = vld [vmem:[%s10190_s9 + $0xa8] sm:$0xff] }
 0x2bb   :  { %6437 = vmatprep.subr.bf16.mxu1 %v6436_v44  ;;  %v5662_v44 = vld [vmem:[%s10226_s28 + $0x280] sm:$0xff]  ;;  %v6611_v35 = vpack.c.bf16 %v1305_v34, %v1304_v33  ;;  %v5707_v34 = vld [vmem:[%s10190_s9 + $0x170] sm:$0xff] }
 0x2bc   :  { %v6482_v49 = vpack.c.bf16 %v5664_v45, %v5662_v44 }
 0x2be   :  { %6439 = vmatpush1.bf16.msra.mxu1 %v6438_v51  ;;  %v6484_v51 = vpack.c.bf16 %v5669_v48, %v5667_v46 }
 0x2bf   :  { %6441 = vmatprep.subr.bf16.mxu1 %v6440_v52  ;;  %v5666_v52 = vld [vmem:[%s10226_s28 + $0x2a0] sm:$0xff] }
 0x2c0   :  { %v6486_v56 = vpack.c.bf16 %v5668_v53, %v5666_v52 }
 0x2c2   :  { %6443 = vmatpush1.bf16.msra.mxu1 %v6442_v57  ;;  %v6488_v57 = vpack.c.bf16 %v5673_v55, %v5671_v54 }
 0x2c3   :  { %6445 = vmatprep.subr.bf16.mxu1 %v6444_v58  ;;  %v5670_v58 = vld [vmem:[%s10226_s28 + $0x2c0] sm:$0xff] }
 0x2c4   :  { %v6490_v62 = vpack.c.bf16 %v5672_v59, %v5670_v58 }
 0x2c6   :  { %6447 = vmatpush1.bf16.msra.mxu1 %v6446_v63  ;;  %v6492_v63 = vpack.c.bf16 %v5677_v61, %v5675_v60  ;;  %v3953_v61 = vld [vmem:[%s10197_s16 + $0x10] sm:$0x3f] }
 0x2c7   :  { %6449 = vmatprep.subr.bf16.mxu1 %v6448_v0  ;;  %v5674_v0 = vld [vmem:[%s10226_s28 + $0x2e0] sm:$0xff] }
 0x2c8   :  { %v6494_v2 = vpack.c.bf16 %v5676_v1, %v5674_v0  ;;  %v5685_v0 = vld [vmem:[%s10190_s9 + $0xc0] sm:$0xff]  ;;  %v5686_v1 = vld [vmem:[%s10190_s9 + $0xc8] sm:$0xff] }
 0x2ca   :  { %6451 = vmatpush1.bf16.msra.mxu1 %v6450_v5  ;;  %v6581_v5 = vpack.c.bf16 %v1285_v4, %v1284_v3  ;;  %v6509_v3 = vpack.c.bf16 %v5686_v1, %v5685_v0  ;;  %v5687_v4 = vld [vmem:[%s10190_s9 + $0xd0] sm:$0xff]  ;;  %v5746_v0 = vld [vmem:[%s10190_s9 + $0x1a8] sm:$0xff] }
 0x2cb   :  { %6453 = vmatprep.subr.bf16.mxu1 %v6452_v6  ;;  %v7365_v6 = vmov 0.0|0.0  }
 0x2ce   :  { %6455 = vmatpush1.bf16.msra.mxu1 %v6454_v11  ;;  %v1289_v11 = vld [vmem:[%s10190_s9 + $0x28] sm:$0xff] }
 0x2cf   :  { %6457 = vmatprep.subr.bf16.mxu1 %v6456_v12  ;;  %v6587_v12 = vpack.c.bf16 %v1289_v11, %v1288_v10  ;;  %v5691_v11 = vld [vmem:[%s10190_s9 + $0xf0] sm:$0xff] }
 0x2d2   :  { %6459 = vmatpush1.bf16.msra.mxu1 %v6458_v17  ;;  %v1294_v17 = vld [vmem:[%s10190_s9 + $0x50] sm:$0xff] }
 0x2d3   :  { %6465 = vmatprep.subr.bf16.mxu1 %v6464_v18  ;;  %v1295_v18 = vld [vmem:[%s10190_s9 + $0x58] sm:$0xff] }
 0x2d4   :  { %v6596_v19 = vpack.c.bf16 %v1295_v18, %v1294_v17  ;;  %v5697_v18 = vld [vmem:[%s10190_s9 + $0x120] sm:$0xff] }
 0x2d5   :  { %971 = vmatmul.mubr.f32.vlgmr.msra.gmra.mrb[6].mxu1 %v7711_v42  ;;  %v6478_v42 = vpack.c.bf16 %v5660_v40, %v5658_v39  ;;  %v1183_v40 = vlaneseq }
 0x2d6   :  { %6467 = vmatpush1.bf16.msra.mxu1 %v6466_v23  ;;  %976 = vmatprep.mubr.f32.mxu1 %v7364_v28  ;;  %v1298_v23 = vld [vmem:[%s10190_s9 + $0x70] sm:$0xff] }
 0x2d7   :  { %6469 = vmatprep.subr.bf16.mxu1 %v6468_v24  ;;  %v1299_v24 = vld [vmem:[%s10190_s9 + $0x78] sm:$0xff] }
 0x2d8   :  { %v6602_v25 = vpack.c.bf16 %v1299_v24, %v1298_v23  ;;  %v5701_v24 = vld [vmem:[%s10190_s9 + $0x140] sm:$0xff] }
 0x2d9   :  { %977 = vmatmul.mubr.f32.gmra.mrb[8].mxu1 %v7703_v38  ;;  %v5665_v38 = vld [vmem:[%s10226_s28 + $0x298] sm:$0xff] }
 0x2da   :  { %6471 = vmatpush1.bf16.msra.mxu1 %v6470_v30  ;;  %1164 = vmatprep.mubr.f32.mxu1 %v7364_v28  ;;  %v6480_v43 = vpack.c.bf16 %v5665_v38, %v5663_v41  ;;  %v1302_v30 = vld [vmem:[%s10190_s9 + $0x90] sm:$0xff]  ;;  %v1184_v41 = vshrl.u32 %v1183_v40, 7 }
 0x2db   :  { %6473 = vmatprep.subr.bf16.mxu1 %v6472_v31  ;;  %v1303_v31 = vld [vmem:[%s10190_s9 + $0x98] sm:$0xff] }
 0x2dc   :  { %v6608_v32 = vpack.c.bf16 %v1303_v31, %v1302_v30  ;;  %v7972_v38 = vsub.s32 0, %v1184_v41  ;;  %v5705_v31 = vld [vmem:[%s10190_s9 + $0x160] sm:$0xff] }
 0x2de   :  { %6475 = vmatpush1.bf16.msra.mxu1 %v6474_v36  ;;  %v1306_v36 = vld [vmem:[%s10190_s9 + $0xb0] sm:$0xff] }
 0x2df   :  { %6477 = vmatprep.subr.bf16.mxu1 %v6476_v37  ;;  %v1307_v37 = vld [vmem:[%s10190_s9 + $0xb8] sm:$0xff] }
 0x2e0   :  { %v6614_v39 = vpack.c.bf16 %v1307_v37, %v1306_v36 }
 0x2e2   :  { %6479 = vmatpush1.bf16.msra.mxu1 %v6478_v42  ;;  %v1181_v42 = vld [vmem:[%s10227_s3] sm:$0x3] }
 0x2e3   :  { %6481 = vmatprep.subr.bf16.mxu1 %v6480_v43  ;;  %v7977_v43 = vsub.s32 1, %v1184_v41  ;;  %v1186_v44 = vrot.slane %v1181_v42, %v7972_v38  ;;  %v5711_v41 = vld [vmem:[%s10191_s10 + $0xc8] sm:$0xff] }
 0x2e5   :  { %v1190_v46 = vrot.slane %v1181_v42, %v7977_v43  ;;  %v5741_v42 = vld [vmem:[%s10190_s9 + $0x180] sm:$0xff] }
 0x2e6   :  { %6483 = vmatpush1.bf16.msra.mxu1 %v6482_v49 }
 0x2e7   :  { %6485 = vmatprep.subr.bf16.mxu1 %v6484_v51 }
 0x2ea   :  { %6487 = vmatpush1.bf16.msra.mxu1 %v6486_v56 }
 0x2eb   :  { %6489 = vmatprep.subr.bf16.mxu1 %v6488_v57 }
 0x2ee   :  { %6491 = vmatpush1.bf16.msra.mxu1 %v6490_v62 }
 0x2ef   :  { %6493 = vmatprep.subr.bf16.mxu1 %v6492_v63  ;;  %v1201_v63 = vld [vmem:[%s10230_s4] sm:$0x3] }
 0x2f2   :  { %6495 = vmatpush1.bf16.msra.mxu1 %v6494_v2  ;;  %v5681_v2 = vld [vmem:[%s10230_s4 + $0x2] sm:$0x3] }
 0x2f3   :  { %6580 = vmatprep.subr.bf16.mxu1 %v7365_v6 }
 0x2f5   :  { %1165 = vmatmul.mubr.f32.vlgmr.msra.gmra.mrb[6].mxu1 %v7728_v50  ;;  %v1290_v50 = vld [vmem:[%s10190_s9 + $0x30] sm:$0xff] }
 0x2f6   :  { %1170 = vmatprep.mubr.f32.mxu1 %v7364_v28  ;;  %6582 = vmatpush1.bf16.msra.mxu1 %v6581_v5  ;;  %v6590_v14 = vpack.c.bf16 %v1291_v13, %v1290_v50  ;;  %v5688_v5 = vld [vmem:[%s10190_s9 + $0xd8] sm:$0xff]  ;;  %v5693_v13 = vld [vmem:[%s10190_s9 + $0x100] sm:$0xff] }
 0x2f7   :  { %6583 = vmatprep.subr.bf16.mxu1 %v7365_v6  ;;  %v6512_v7 = vpack.c.bf16 %v5688_v5, %v5687_v4  ;;  %v5717_v4 = vld [vmem:[%s10191_s10 + $0xf8] sm:$0xff]  ;;  %v5747_v5 = vld [vmem:[%s10190_s9 + $0x1b0] sm:$0xff] }
 0x2f9   :  { %1171 = vmatmul.mubr.f32.gmra.mrb[8].mxu1 %v7720_v47  ;;  %v1292_v47 = vld [vmem:[%s10190_s9 + $0x40] sm:$0xff] }
 0x2fa   :  { %6585 = vmatpush1.bf16.msra.mxu1 %v6584_v9  ;;  %v6593_v16 = vpack.c.bf16 %v1293_v15, %v1292_v47  ;;  %v5690_v9 = vld [vmem:[%s10190_s9 + $0xe8] sm:$0xff]  ;;  %v5695_v15 = vld [vmem:[%s10190_s9 + $0x110] sm:$0xff] }
 0x2fb   :  { %6586 = vmatprep.subr.bf16.mxu1 %v7365_v6  ;;  %v6515_v10 = vpack.c.bf16 %v5690_v9, %v5689_v8 }
 0x2fe   :  { %6588 = vmatpush1.bf16.msra.mxu1 %v6587_v12  ;;  %v5692_v12 = vld [vmem:[%s10190_s9 + $0xf8] sm:$0xff] }
 0x2ff   :  { %6589 = vmatprep.subr.bf16.mxu1 %v7365_v6  ;;  %v6518_v50 = vpack.c.bf16 %v5692_v12, %v5691_v11  ;;  %v5719_v11 = vld [vmem:[%s10191_s10 + $0x108] sm:$0xff]  ;;  %v5749_v12 = vld [vmem:[%s10190_s9 + $0x1c0] sm:$0xff] }
 0x302   :  { %6591 = vmatpush1.bf16.msra.mxu1 %v6590_v14  ;;  %v5694_v14 = vld [vmem:[%s10190_s9 + $0x108] sm:$0xff] }
 0x303   :  { %6592 = vmatprep.subr.bf16.mxu1 %v7365_v6  ;;  %v6521_v47 = vpack.c.bf16 %v5694_v14, %v5693_v13 }
 0x306   :  { %6594 = vmatpush1.bf16.msra.mxu1 %v6593_v16  ;;  %v5696_v16 = vld [vmem:[%s10190_s9 + $0x118] sm:$0xff] }
 0x307   :  { %6595 = vmatprep.subr.bf16.mxu1 %v7365_v6  ;;  %v6524_v17 = vpack.c.bf16 %v5696_v16, %v5695_v15  ;;  %v5721_v15 = vld [vmem:[%s10191_s10 + $0x118] sm:$0xff]  ;;  %v5751_v16 = vld [vmem:[%s10190_s9 + $0x1d0] sm:$0xff] }
 0x30a   :  { %6597 = vmatpush1.bf16.msra.mxu1 %v6596_v19  ;;  %v5698_v19 = vld [vmem:[%s10190_s9 + $0x128] sm:$0xff] }
 0x30b   :  { %6598 = vmatprep.subr.bf16.mxu1 %v7365_v6  ;;  %v6527_v20 = vpack.c.bf16 %v5698_v19, %v5697_v18 }
 0x30e   :  { %6600 = vmatpush1.bf16.msra.mxu1 %v6599_v22  ;;  %v5700_v22 = vld [vmem:[%s10190_s9 + $0x138] sm:$0xff] }
 0x30f   :  { %6601 = vmatprep.subr.bf16.mxu1 %v7365_v6  ;;  %v6530_v23 = vpack.c.bf16 %v5700_v22, %v5699_v21  ;;  %v5723_v21 = vld [vmem:[%s10191_s10 + $0x128] sm:$0xff]  ;;  %v5753_v22 = vld [vmem:[%s10190_s9 + $0x1e0] sm:$0xff] }
 0x312   :  { %6603 = vmatpush1.bf16.msra.mxu1 %v6602_v25  ;;  %v5702_v25 = vld [vmem:[%s10190_s9 + $0x148] sm:$0xff] }
 0x313   :  { %6604 = vmatprep.subr.bf16.mxu1 %v7365_v6  ;;  %v6533_v26 = vpack.c.bf16 %v5702_v25, %v5701_v24 }
 0x316   :  { %6606 = vmatpush1.bf16.msra.mxu1 %v6605_v29  ;;  %v5704_v29 = vld [vmem:[%s10190_s9 + $0x158] sm:$0xff] }
 0x317   :  { %6607 = vmatprep.subr.bf16.mxu1 %v7365_v6  ;;  %v6536_v30 = vpack.c.bf16 %v5704_v29, %v5703_v27  ;;  %v5725_v27 = vld [vmem:[%s10191_s10 + $0x138] sm:$0xff]  ;;  %v5755_v29 = vld [vmem:[%s10190_s9 + $0x1f0] sm:$0xff] }
 0x31a   :  { %6609 = vmatpush1.bf16.msra.mxu1 %v6608_v32  ;;  %v5706_v32 = vld [vmem:[%s10190_s9 + $0x168] sm:$0xff] }
 0x31b   :  { %6610 = vmatprep.subr.bf16.mxu1 %v7365_v6  ;;  %v6539_v33 = vpack.c.bf16 %v5706_v32, %v5705_v31 }
 0x31e   :  { %6612 = vmatpush1.bf16.msra.mxu1 %v6611_v35  ;;  %v5708_v35 = vld [vmem:[%s10190_s9 + $0x178] sm:$0xff] }
 0x31f   :  { %6613 = vmatprep.subr.bf16.mxu1 %v7365_v6  ;;  %v6542_v36 = vpack.c.bf16 %v5708_v35, %v5707_v34  ;;  %v5727_v34 = vld [vmem:[%s10191_s10 + $0x148] sm:$0xff]  ;;  %v5757_v35 = vld [vmem:[%s10190_s9 + $0x200] sm:$0xff] }
 0x322   :  { %6615 = vmatpush1.bf16.msra.mxu1 %v6614_v39  ;;  %v5710_v39 = vld [vmem:[%s10191_s10 + $0xc0] sm:$0xff] }
 0x3c8   :  { %v1166_v45 = vpop.f32.mrb[6].mxu1 }
 0x3c9   :  { %v1168_v48 = vpop.f32.mrb[7].mxu1  ;;  %v1193_v49 = vadd.f32 %v1186_v44, %v1166_v45 }
 0x3ca   :  { %v1194_v51 = vadd.f32 %v1190_v46, %v1168_v48  ;;  %v5737_v48 = vld [vmem:[%s10230_s4 + $0x4] sm:$0x3] }
 0x3cb   :  { %v1197_v56 = vmax.f32 %v1193_v49, 0.0 }
 0x3cc   :  { %v1172_v52 = vpop.f32.mrb[8].mxu1  ;;  %v1198_v58 = vmax.f32 %v1194_v51, 0.0  ;;  %v5712_v51 = vld [vmem:[%s10191_s10 + $0xd0] sm:$0xff] }
 0x3cd   :  { %v1195_v53 = vadd.f32 %v1186_v44, %v1172_v52  ;;  %v1174_v54 = vpop.f32.mrb[9].mxu1  ;;  %v5742_v44 = vld [vmem:[%s10190_s9 + $0x188] sm:$0xff] }
 0x3ce   :  { %v1196_v55 = vadd.f32 %v1190_v46, %v1174_v54  ;;  %v6545_v46 = vpack.c.bf16 %v5711_v41, %v5710_v39  ;;  %v6659_v49 = vpack.c.bf16 %v5742_v44, %v5741_v42  ;;  %v5743_v54 = vld [vmem:[%s10190_s9 + $0x190] sm:$0xff]  ;;  %v5729_v44 = vld [vmem:[%s10191_s10 + $0x158] sm:$0xff] }
 0x3cf   :  { %v1199_v57 = vmax.f32 %v1195_v53, 0.0  ;;  %v5713_v53 = vld [vmem:[%s10191_s10 + $0xd8] sm:$0xff]  ;;  %v5728_v42 = vld [vmem:[%s10191_s10 + $0x150] sm:$0xff] }
 0x3d0   :  { %v1200_v59 = vmax.f32 %v1196_v55, 0.0  ;;  %v5744_v55 = vld [vmem:[%s10190_s9 + $0x198] sm:$0xff] }
 0x3d1   :  { %v7981_v60 = vpack.c.bf16 %v1199_v57, %v1197_v56  ;;  %v6548_v56 = vpack.c.bf16 %v5713_v53, %v5712_v51  ;;  %v6662_v57 = vpack.c.bf16 %v5744_v55, %v5743_v54  ;;  %v5731_v53 = vld [vmem:[%s10191_s10 + $0x168] sm:$0xff]  ;;  %v5761_v54 = vld [vmem:[%s10190_s9 + $0x220] sm:$0xff] }
 0x3d2   :  { %v7987_v62 = vpack.c.bf16 %v1200_v59, %v1198_v58  ;;  %v5714_v58 = vld [vmem:[%s10191_s10 + $0xe0] sm:$0xff]  ;;  %v5715_v59 = vld [vmem:[%s10191_s10 + $0xe8] sm:$0xff] }
 0x3d3   :  { %v6551_v1 = vpack.c.bf16 %v5715_v59, %v5714_v58  ;;  %v5762_v55 = vld [vmem:[%s10190_s9 + $0x228] sm:$0xff]  ;;  %v5732_v58 = vld [vmem:[%s10191_s10 + $0x170] sm:$0xff]  ;;  %v5733_v59 = vld [vmem:[%s10191_s10 + $0x178] sm:$0xff] }
 0x3d4   :  { %6498 = vmatprep.subr.msk.bf16.mxu0 %vm7983_vm4, %v7987_v62  ;;  %6654 = vmatprep.subr.msk.bf16.mxu1 %vm7983_vm4, %v7987_v62 }
 0x3d5   :  { %6501 = vmatpush1.bf16.msk.msra.mxu0 %vm7983_vm4, %v7981_v60 }
 0x3d6   :  { %6504 = vmatprep.subr.msk.bf16.mxu0 %vm7983_vm4, %v7987_v62 }
 0x3d8   :  { %5680 = vmatmul.mubr.msk.f32.vlgmr.msra.gmra.mrb[8].mxu0 %vm1202_vm5, %v1201_v63  ;;  %v5745_v63 = vld [vmem:[%s10190_s9 + $0x1a0] sm:$0xff] }
 0x3d9   :  { %6507 = vmatpush1.bf16.msk.msra.mxu0 %vm7983_vm4, %v7981_v60  ;;  %1401 = vmatprep.mubr.f32.mxu0 %v7364_v28 }
 0x3da   :  { %6508 = vmatprep.subr.bf16.mxu0 %v7365_v6 }
 0x3dc   :  { %5684 = vmatmul.mubr.msk.f32.vlgmr.msra.gmra.mrb[10].mxu0 %vm1202_vm5, %v5681_v2  ;;  %v6665_v2 = vpack.c.bf16 %v5746_v0, %v5745_v63  ;;  %v5763_v63 = vld [vmem:[%s10190_s9 + $0x230] sm:$0xff]  ;;  %v5764_v0 = vld [vmem:[%s10190_s9 + $0x238] sm:$0xff] }
 0x3dd   :  { %6510 = vmatpush1.bf16.msra.mxu0 %v6509_v3  ;;  %v5716_v3 = vld [vmem:[%s10191_s10 + $0xf0] sm:$0xff] }
 0x3de   :  { %6511 = vmatprep.subr.bf16.mxu0 %v7365_v6  ;;  %v6554_v8 = vpack.c.bf16 %v5717_v4, %v5716_v3  ;;  %v1308_v3 = vld [vmem:[%s10191_s10] sm:$0xff]  ;;  %v1309_v4 = vld [vmem:[%s10191_s10 + $0x8] sm:$0xff] }
 0x3e1   :  { %6513 = vmatpush1.bf16.msra.mxu0 %v6512_v7  ;;  %v5748_v7 = vld [vmem:[%s10190_s9 + $0x1b8] sm:$0xff] }
 0x3e2   :  { %6514 = vmatprep.subr.bf16.mxu0 %v7365_v6  ;;  %v6668_v9 = vpack.c.bf16 %v5748_v7, %v5747_v5  ;;  %v6617_v5 = vpack.c.bf16 %v1309_v4, %v1308_v3  ;;  %v1310_v7 = vld [vmem:[%s10191_s10 + $0x10] sm:$0xff]  ;;  %v5781_v4 = vld [vmem:[%s10191_s10 + $0x1f8] sm:$0xff] }
 0x3e3   :  { %v5780_v3 = vld [vmem:[%s10191_s10 + $0x1f0] sm:$0xff] }
 0x3e5   :  { %6516 = vmatpush1.bf16.msra.mxu0 %v6515_v10  ;;  %v5718_v10 = vld [vmem:[%s10191_s10 + $0x100] sm:$0xff] }
 0x3e6   :  { %6517 = vmatprep.subr.bf16.mxu0 %v7365_v6  ;;  %v6557_v13 = vpack.c.bf16 %v5719_v11, %v5718_v10  ;;  %v1312_v10 = vld [vmem:[%s10191_s10 + $0x20] sm:$0xff]  ;;  %v1313_v11 = vld [vmem:[%s10191_s10 + $0x28] sm:$0xff] }
 0x3e9   :  { %6519 = vmatpush1.bf16.msra.mxu0 %v6518_v50  ;;  %v5750_v50 = vld [vmem:[%s10190_s9 + $0x1c8] sm:$0xff] }
 0x3ea   :  { %6520 = vmatprep.subr.bf16.mxu0 %v7365_v6  ;;  %v6671_v14 = vpack.c.bf16 %v5750_v50, %v5749_v12  ;;  %v6623_v12 = vpack.c.bf16 %v1313_v11, %v1312_v10  ;;  %v5784_v10 = vld [vmem:[%s10191_s10 + $0x210] sm:$0xff]  ;;  %v5785_v11 = vld [vmem:[%s10191_s10 + $0x218] sm:$0xff] }
 0x3ed   :  { %6522 = vmatpush1.bf16.msra.mxu0 %v6521_v47  ;;  %v5720_v47 = vld [vmem:[%s10191_s10 + $0x110] sm:$0xff] }
 0x3ee   :  { %6523 = vmatprep.subr.bf16.mxu0 %v7365_v6  ;;  %v6560_v18 = vpack.c.bf16 %v5721_v15, %v5720_v47  ;;  %v1318_v15 = vld [vmem:[%s10191_s10 + $0x50] sm:$0xff] }
 0x3f1   :  { %6525 = vmatpush1.bf16.msra.mxu0 %v6524_v17  ;;  %v5752_v17 = vld [vmem:[%s10190_s9 + $0x1d8] sm:$0xff] }
 0x3f2   :  { %6526 = vmatprep.subr.bf16.mxu0 %v7365_v6  ;;  %v6674_v19 = vpack.c.bf16 %v5752_v17, %v5751_v16  ;;  %v1319_v16 = vld [vmem:[%s10191_s10 + $0x58] sm:$0xff] }
 0x3f3   :  { %v6632_v17 = vpack.c.bf16 %v1319_v16, %v1318_v15 }
 0x3f5   :  { %6528 = vmatpush1.bf16.msra.mxu0 %v6527_v20  ;;  %v5722_v20 = vld [vmem:[%s10191_s10 + $0x120] sm:$0xff] }
 0x3f6   :  { %6529 = vmatprep.subr.bf16.mxu0 %v7365_v6  ;;  %v6563_v24 = vpack.c.bf16 %v5723_v21, %v5722_v20  ;;  %v1322_v21 = vld [vmem:[%s10191_s10 + $0x70] sm:$0xff] }
 0x3f9   :  { %6531 = vmatpush1.bf16.msra.mxu0 %v6530_v23  ;;  %v5754_v23 = vld [vmem:[%s10190_s9 + $0x1e8] sm:$0xff] }
 0x3fa   :  { %6532 = vmatprep.subr.bf16.mxu0 %v7365_v6  ;;  %v6677_v25 = vpack.c.bf16 %v5754_v23, %v5753_v22  ;;  %v1323_v22 = vld [vmem:[%s10191_s10 + $0x78] sm:$0xff] }
 0x3fb   :  { %v6638_v23 = vpack.c.bf16 %v1323_v22, %v1322_v21 }
 0x3fd   :  { %6534 = vmatpush1.bf16.msra.mxu0 %v6533_v26  ;;  %v5724_v26 = vld [vmem:[%s10191_s10 + $0x130] sm:$0xff] }
 0x3fe   :  { %6535 = vmatprep.subr.bf16.mxu0 %v7365_v6  ;;  %v6566_v31 = vpack.c.bf16 %v5725_v27, %v5724_v26  ;;  %v1326_v27 = vld [vmem:[%s10191_s10 + $0x90] sm:$0xff] }
 0x401   :  { %6537 = vmatpush1.bf16.msra.mxu0 %v6536_v30  ;;  %v5756_v30 = vld [vmem:[%s10190_s9 + $0x1f8] sm:$0xff] }
 0x402   :  { %6538 = vmatprep.subr.bf16.mxu0 %v7365_v6  ;;  %v6680_v32 = vpack.c.bf16 %v5756_v30, %v5755_v29  ;;  %v1327_v29 = vld [vmem:[%s10191_s10 + $0x98] sm:$0xff] }
 0x403   :  { %v6644_v30 = vpack.c.bf16 %v1327_v29, %v1326_v27  ;;  %v5822_v27 = vld [vmem:[%s10191_s10 + $0x250] sm:$0xff]  ;;  %v5823_v29 = vld [vmem:[%s10191_s10 + $0x258] sm:$0xff] }
 0x405   :  { %6540 = vmatpush1.bf16.msra.mxu0 %v6539_v33  ;;  %v5726_v33 = vld [vmem:[%s10191_s10 + $0x140] sm:$0xff] }
 0x406   :  { %6541 = vmatprep.subr.bf16.mxu0 %v7365_v6  ;;  %v6569_v39 = vpack.c.bf16 %v5727_v34, %v5726_v33  ;;  %v1330_v34 = vld [vmem:[%s10191_s10 + $0xb0] sm:$0xff] }
 0x409   :  { %6543 = vmatpush1.bf16.msra.mxu0 %v6542_v36  ;;  %v5758_v36 = vld [vmem:[%s10190_s9 + $0x208] sm:$0xff] }
 0x40a   :  { %6544 = vmatprep.subr.bf16.mxu0 %v7365_v6  ;;  %v6683_v41 = vpack.c.bf16 %v5758_v36, %v5757_v35  ;;  %v1331_v35 = vld [vmem:[%s10191_s10 + $0xb8] sm:$0xff] }
 0x40b   :  { %v6650_v36 = vpack.c.bf16 %v1331_v35, %v1330_v34  ;;  %v6776_v34 = vpack.c.bf16 %v5823_v29, %v5822_v27  ;;  %v5824_v35 = vld [vmem:[%s10191_s10 + $0x260] sm:$0xff]  ;;  %v5816_v29 = vld [vmem:[%s10190_s9 + $0x2e8] sm:$0xff] }
 0x40c   :  { %v5815_v27 = vld [vmem:[%s10190_s9 + $0x2e0] sm:$0xff] }
 0x4ab   :  { %v8098_v37 = vpop.f32.mrb[8].mxu0 }
 0x4ac   :  { %v8103_v40 = vpop.f32.mrb[9].mxu0 }
 0x4ad   :  { %5735 = vmatprep.mubr.msk.f32.mxu1 %vm1433_vm6, %v8103_v40 }
 0x4ae   :  { %1670 = vmatmul.mubr.f32.vlgmr.msra.gmra.mrb[10].mxu1 %v8098_v37 }
 0x4af   :  { %6657 = vmatpush1.bf16.msk.msra.mxu1 %vm7983_vm4, %v7981_v60  ;;  %v8120_v45 = vpop.f32.mrb[10].mxu0  ;;  %1814 = vmatprep.mubr.f32.mxu1 %v7364_v28 }
 0x4b0   :  { %v1405_v52 = vpop.f32.mrb[11].mxu0  ;;  %6658 = vmatprep.subr.bf16.mxu1 %v7365_v6 }
 0x4b1   :  { %5709 = vmatprep.mubr.msk.f32.mxu0 %vm1433_vm6, %v1405_v52 }
 0x4b2   :  { %1502 = vmatmul.mubr.f32.vlgmr.msra.gmra.mrb[12].mxu0 %v8120_v45  ;;  %5740 = vmatmul.mubr.msk.f32.vlgmr.msra.gmra.mrb[12].mxu1 %vm1202_vm5, %v5737_v48  ;;  %v5760_v48 = vld [vmem:[%s10190_s9 + $0x218] sm:$0xff] }
 0x4b3   :  { %6546 = vmatpush1.bf16.msra.mxu0 %v6545_v46  ;;  %6660 = vmatpush1.bf16.msra.mxu1 %v6659_v49  ;;  %v5759_v46 = vld [vmem:[%s10190_s9 + $0x210] sm:$0xff]  ;;  %v6572_v49 = vpack.c.bf16 %v5729_v44, %v5728_v42 }
 0x4b4   :  { %6547 = vmatprep.subr.bf16.mxu0 %v7365_v6  ;;  %6661 = vmatprep.subr.bf16.mxu1 %v7365_v6  ;;  %v6686_v51 = vpack.c.bf16 %v5760_v48, %v5759_v46  ;;  %v5768_v44 = vld [vmem:[%s10191_s10 + $0x190] sm:$0xff]  ;;  %v5769_v46 = vld [vmem:[%s10191_s10 + $0x198] sm:$0xff] }
 0x4b5   :  { %5734 = vmatprep.mubr.msk.f32.mxu0 %vm1433_vm6, %v1405_v52  ;;  %v5730_v52 = vld [vmem:[%s10191_s10 + $0x160] sm:$0xff]  ;;  %v6698_v48 = vpack.c.bf16 %v5769_v46, %v5768_v44  ;;  %v5826_v46 = vld [vmem:[%s10191_s10 + $0x270] sm:$0xff] }
 0x4b7   :  { %6549 = vmatpush1.bf16.msra.mxu0 %v6548_v56  ;;  %6663 = vmatpush1.bf16.msra.mxu1 %v6662_v57  ;;  %v6575_v56 = vpack.c.bf16 %v5731_v53, %v5730_v52  ;;  %v6689_v57 = vpack.c.bf16 %v5762_v55, %v5761_v54  ;;  %v5773_v53 = vld [vmem:[%s10191_s10 + $0x1b8] sm:$0xff]  ;;  %v5774_v55 = vld [vmem:[%s10191_s10 + $0x1c0] sm:$0xff] }
 0x4b8   :  { %6550 = vmatprep.subr.bf16.mxu0 %v7365_v6  ;;  %6664 = vmatprep.subr.bf16.mxu1 %v7365_v6 }
 0x4bb   :  { %6552 = vmatpush1.bf16.msra.mxu0 %v6551_v1  ;;  %6666 = vmatpush1.bf16.msra.mxu1 %v6665_v2  ;;  %v6578_v1 = vpack.c.bf16 %v5733_v59, %v5732_v58  ;;  %v6692_v2 = vpack.c.bf16 %v5764_v0, %v5763_v63  ;;  %v5776_v58 = vld [vmem:[%s10191_s10 + $0x1d0] sm:$0xff]  ;;  %v5777_v59 = vld [vmem:[%s10191_s10 + $0x1d8] sm:$0xff]  ;;  %v5778_v0 = vld [vmem:[%s10191_s10 + $0x1e0] sm:$0xff] }
 0x4bc   :  { %6553 = vmatprep.subr.bf16.mxu0 %v7365_v6  ;;  %6667 = vmatprep.subr.bf16.mxu1 %v7365_v6  ;;  %v6710_v63 = vpack.c.bf16 %v5777_v59, %v5776_v58  ;;  %v5830_v59 = vld [vmem:[%s10191_s10 + $0x290] sm:$0xff] }
 0x4bf   :  { %6555 = vmatpush1.bf16.msra.mxu0 %v6554_v8  ;;  %6669 = vmatpush1.bf16.msra.mxu1 %v6668_v9  ;;  %v1311_v8 = vld [vmem:[%s10191_s10 + $0x18] sm:$0xff] }
 0x4c0   :  { %6556 = vmatprep.subr.bf16.mxu0 %v7365_v6  ;;  %6670 = vmatprep.subr.bf16.mxu1 %v7365_v6  ;;  %v6620_v9 = vpack.c.bf16 %v1311_v8, %v1310_v7  ;;  %v5782_v7 = vld [vmem:[%s10191_s10 + $0x200] sm:$0xff]  ;;  %v5783_v8 = vld [vmem:[%s10191_s10 + $0x208] sm:$0xff] }
 0x4c3   :  { %6558 = vmatpush1.bf16.msra.mxu0 %v6557_v13  ;;  %6672 = vmatpush1.bf16.msra.mxu1 %v6671_v14  ;;  %v1316_v13 = vld [vmem:[%s10191_s10 + $0x40] sm:$0xff]  ;;  %v1317_v14 = vld [vmem:[%s10191_s10 + $0x48] sm:$0xff] }
 0x4c4   :  { %6559 = vmatprep.subr.bf16.mxu0 %v7365_v6  ;;  %6673 = vmatprep.subr.bf16.mxu1 %v7365_v6  ;;  %v6629_v47 = vpack.c.bf16 %v1317_v14, %v1316_v13  ;;  %v5788_v13 = vld [vmem:[%s10191_s10 + $0x230] sm:$0xff]  ;;  %v5789_v14 = vld [vmem:[%s10191_s10 + $0x238] sm:$0xff] }
 0x4c7   :  { %6561 = vmatpush1.bf16.msra.mxu0 %v6560_v18  ;;  %6675 = vmatpush1.bf16.msra.mxu1 %v6674_v19  ;;  %v1320_v18 = vld [vmem:[%s10191_s10 + $0x60] sm:$0xff]  ;;  %v1321_v19 = vld [vmem:[%s10191_s10 + $0x68] sm:$0xff] }
 0x4c8   :  { %6562 = vmatprep.subr.bf16.mxu0 %v7365_v6  ;;  %6676 = vmatprep.subr.bf16.mxu1 %v7365_v6  ;;  %v6635_v20 = vpack.c.bf16 %v1321_v19, %v1320_v18  ;;  %v5821_v18 = vld [vmem:[%s10191_s10 + $0x248] sm:$0xff] }
 0x4cb   :  { %6564 = vmatpush1.bf16.msra.mxu0 %v6563_v24  ;;  %6678 = vmatpush1.bf16.msra.mxu1 %v6677_v25  ;;  %v1324_v24 = vld [vmem:[%s10191_s10 + $0x80] sm:$0xff]  ;;  %v1325_v25 = vld [vmem:[%s10191_s10 + $0x88] sm:$0xff] }
 0x4cc   :  { %6565 = vmatprep.subr.bf16.mxu0 %v7365_v6  ;;  %6679 = vmatprep.subr.bf16.mxu1 %v7365_v6  ;;  %v6641_v26 = vpack.c.bf16 %v1325_v25, %v1324_v24  ;;  %v5796_v24 = vld [vmem:[%s10190_s9 + $0x248] sm:$0xff] }
 0x4cf   :  { %6567 = vmatpush1.bf16.msra.mxu0 %v6566_v31  ;;  %6681 = vmatpush1.bf16.msra.mxu1 %v6680_v32  ;;  %v1328_v31 = vld [vmem:[%s10191_s10 + $0xa0] sm:$0xff]  ;;  %v1329_v32 = vld [vmem:[%s10191_s10 + $0xa8] sm:$0xff] }
 0x4d0   :  { %6568 = vmatprep.subr.bf16.mxu0 %v7365_v6  ;;  %6682 = vmatprep.subr.bf16.mxu1 %v7365_v6  ;;  %v6647_v33 = vpack.c.bf16 %v1329_v32, %v1328_v31  ;;  %v5797_v32 = vld [vmem:[%s10190_s9 + $0x250] sm:$0xff] }
 0x4d3   :  { %6570 = vmatpush1.bf16.msra.mxu0 %v6569_v39  ;;  %6684 = vmatpush1.bf16.msra.mxu1 %v6683_v41  ;;  %v5766_v39 = vld [vmem:[%s10191_s10 + $0x180] sm:$0xff]  ;;  %v5767_v41 = vld [vmem:[%s10191_s10 + $0x188] sm:$0xff] }
 0x4d4   :  { %6571 = vmatprep.subr.bf16.mxu0 %v7365_v6  ;;  %6685 = vmatprep.subr.bf16.mxu1 %v7365_v6  ;;  %v6695_v42 = vpack.c.bf16 %v5767_v41, %v5766_v39  ;;  %v5799_v41 = vld [vmem:[%s10190_s9 + $0x260] sm:$0xff] }
 0x4d7   :  { %6573 = vmatpush1.bf16.msra.mxu0 %v6572_v49  ;;  %6687 = vmatpush1.bf16.msra.mxu1 %v6686_v51  ;;  %v5770_v49 = vld [vmem:[%s10191_s10 + $0x1a0] sm:$0xff]  ;;  %v5771_v51 = vld [vmem:[%s10191_s10 + $0x1a8] sm:$0xff] }
 0x4d8   :  { %6574 = vmatprep.subr.bf16.mxu0 %v7365_v6  ;;  %6688 = vmatprep.subr.bf16.mxu1 %v7365_v6  ;;  %v6701_v52 = vpack.c.bf16 %v5771_v51, %v5770_v49  ;;  %v5801_v51 = vld [vmem:[%s10190_s9 + $0x270] sm:$0xff] }
 0x4db   :  { %6576 = vmatpush1.bf16.msra.mxu0 %v6575_v56  ;;  %6690 = vmatpush1.bf16.msra.mxu1 %v6689_v57  ;;  %v5775_v56 = vld [vmem:[%s10191_s10 + $0x1c8] sm:$0xff] }
 0x4dc   :  { %6577 = vmatprep.subr.bf16.mxu0 %v7365_v6  ;;  %6691 = vmatprep.subr.bf16.mxu1 %v7365_v6  ;;  %v6707_v57 = vpack.c.bf16 %v5775_v56, %v5774_v55  ;;  %v5803_v56 = vld [vmem:[%s10190_s9 + $0x280] sm:$0xff] }
 0x4df   :  { %6579 = vmatpush1.bf16.msra.mxu0 %v6578_v1  ;;  %6693 = vmatpush1.bf16.msra.mxu1 %v6692_v2  ;;  %v5779_v1 = vld [vmem:[%s10191_s10 + $0x1e8] sm:$0xff] }
 0x4e0   :  { %6732 = vmatprep.subr.msk.bf16.mxu1 %vm7983_vm4, %v7987_v62  ;;  %6616 = vmatprep.subr.bf16.mxu0 %v7365_v6  ;;  %v6713_v2 = vpack.c.bf16 %v5779_v1, %v5778_v0  ;;  %v5805_v1 = vld [vmem:[%s10190_s9 + $0x290] sm:$0xff] }
 0x4e2   :  { %1597 = vmatmul.mubr.f32.vlgmr.msra.gmra.mrb[14].mxu0 %v8120_v45  ;;  %v1314_v45 = vld [vmem:[%s10191_s10 + $0x30] sm:$0xff] }
 0x4e3   :  { %6618 = vmatpush1.bf16.msra.mxu0 %v6617_v5  ;;  %5736 = vmatprep.mubr.msk.f32.mxu0 %vm1433_vm6, %v8103_v40  ;;  %v1315_v40 = vld [vmem:[%s10191_s10 + $0x38] sm:$0xff]  ;;  %v6716_v5 = vpack.c.bf16 %v5781_v4, %v5780_v3  ;;  %v5832_v4 = vld [vmem:[%s10191_s10 + $0x2a0] sm:$0xff] }
 0x4e4   :  { %6619 = vmatprep.subr.bf16.mxu0 %v7365_v6  ;;  %v6626_v50 = vpack.c.bf16 %v1315_v40, %v1314_v45  ;;  %v5786_v45 = vld [vmem:[%s10191_s10 + $0x220] sm:$0xff]  ;;  %v5787_v40 = vld [vmem:[%s10191_s10 + $0x228] sm:$0xff] }
 0x4e7   :  { %6621 = vmatpush1.bf16.msra.mxu0 %v6620_v9  ;;  %v6719_v9 = vpack.c.bf16 %v5783_v8, %v5782_v7  ;;  %v5807_v8 = vld [vmem:[%s10190_s9 + $0x2a0] sm:$0xff] }
 0x4e8   :  { %6622 = vmatprep.subr.bf16.mxu0 %v7365_v6 }
 0x4eb   :  { %6624 = vmatpush1.bf16.msra.mxu0 %v6623_v12  ;;  %v6722_v12 = vpack.c.bf16 %v5785_v11, %v5784_v10  ;;  %v5834_v11 = vld [vmem:[%s10191_s10 + $0x2b0] sm:$0xff] }
 0x4ec   :  { %6625 = vmatprep.subr.bf16.mxu0 %v7365_v6 }
 0x4ef   :  { %6627 = vmatpush1.bf16.msra.mxu0 %v6626_v50  ;;  %v6725_v50 = vpack.c.bf16 %v5787_v40, %v5786_v45  ;;  %v5809_v40 = vld [vmem:[%s10190_s9 + $0x2b0] sm:$0xff] }
 0x4f0   :  { %6628 = vmatprep.subr.bf16.mxu0 %v7365_v6 }
 0x4f3   :  { %6630 = vmatpush1.bf16.msra.mxu0 %v6629_v47  ;;  %v6728_v47 = vpack.c.bf16 %v5789_v14, %v5788_v13  ;;  %v5836_v14 = vld [vmem:[%s10191_s10 + $0x2c0] sm:$0xff] }
 0x4f4   :  { %6631 = vmatprep.subr.bf16.mxu0 %v7365_v6 }
 0x4f7   :  { %6633 = vmatpush1.bf16.msra.mxu0 %v6632_v17  ;;  %v5820_v17 = vld [vmem:[%s10191_s10 + $0x240] sm:$0xff] }
 0x4f8   :  { %6634 = vmatprep.subr.bf16.mxu0 %v7365_v6 }
 0x4fb   :  { %6636 = vmatpush1.bf16.msra.mxu0 %v6635_v20 }
 0x4fc   :  { %6637 = vmatprep.subr.bf16.mxu0 %v7365_v6 }
 0x4ff   :  { %6639 = vmatpush1.bf16.msra.mxu0 %v6638_v23  ;;  %v5795_v23 = vld [vmem:[%s10190_s9 + $0x240] sm:$0xff] }
 0x500   :  { %6640 = vmatprep.subr.bf16.mxu0 %v7365_v6  ;;  %v6737_v31 = vpack.c.bf16 %v5796_v24, %v5795_v23  ;;  %v5813_v23 = vld [vmem:[%s10190_s9 + $0x2d0] sm:$0xff]  ;;  %v5814_v24 = vld [vmem:[%s10190_s9 + $0x2d8] sm:$0xff] }
 0x503   :  { %6642 = vmatpush1.bf16.msra.mxu0 %v6641_v26  ;;  %v6773_v26 = vpack.c.bf16 %v5821_v18, %v5820_v17  ;;  %v5812_v17 = vld [vmem:[%s10190_s9 + $0x2c8] sm:$0xff] }
 0x504   :  { %6643 = vmatprep.subr.bf16.mxu0 %v7365_v6 }
 0x507   :  { %6645 = vmatpush1.bf16.msra.mxu0 %v6644_v30  ;;  %v5791_v30 = vld [vmem:[%s10230_s4 + $0x6] sm:$0x3] }
 0x508   :  { %6646 = vmatprep.subr.bf16.mxu0 %v7365_v6 }
 0x50b   :  { %6648 = vmatpush1.bf16.msra.mxu0 %v6647_v33  ;;  %v5798_v33 = vld [vmem:[%s10190_s9 + $0x258] sm:$0xff] }
 0x50c   :  { %6649 = vmatprep.subr.bf16.mxu0 %v7365_v6  ;;  %v6740_v39 = vpack.c.bf16 %v5798_v33, %v5797_v32  ;;  %v5818_v32 = vld [vmem:[%s10190_s9 + $0x2f8] sm:$0xff] }
 0x50f   :  { %6651 = vmatpush1.bf16.msra.mxu0 %v6650_v36  ;;  %v5825_v36 = vld [vmem:[%s10191_s10 + $0x268] sm:$0xff] }
 0x510   :  { %6694 = vmatprep.subr.bf16.mxu0 %v7365_v6  ;;  %v6779_v44 = vpack.c.bf16 %v5825_v36, %v5824_v35  ;;  %v5840_v36 = vld [vmem:[%s10191_s10 + $0x2e0] sm:$0xff] }
 0x512   :  { %1740 = vmatmul.mubr.f32.vlgmr.msra.gmra.mrb[16].mxu0 %v8098_v37  ;;  %v5772_v37 = vld [vmem:[%s10191_s10 + $0x1b0] sm:$0xff] }
 0x513   :  { %6696 = vmatpush1.bf16.msra.mxu0 %v6695_v42  ;;  %v6704_v54 = vpack.c.bf16 %v5773_v53, %v5772_v37  ;;  %v5800_v42 = vld [vmem:[%s10190_s9 + $0x268] sm:$0xff]  ;;  %v5828_v53 = vld [vmem:[%s10191_s10 + $0x280] sm:$0xff] }
 0x514   :  { %6697 = vmatprep.subr.bf16.mxu0 %v7365_v6  ;;  %v6743_v49 = vpack.c.bf16 %v5800_v42, %v5799_v41  ;;  %v5842_v42 = vld [vmem:[%s10191_s10 + $0x2f0] sm:$0xff] }
 0x517   :  { %6699 = vmatpush1.bf16.msra.mxu0 %v6698_v48  ;;  %v5827_v48 = vld [vmem:[%s10191_s10 + $0x278] sm:$0xff] }
 0x518   :  { %6700 = vmatprep.subr.bf16.mxu0 %v7365_v6  ;;  %v6782_v37 = vpack.c.bf16 %v5827_v48, %v5826_v46 }
 0x51b   :  { %6702 = vmatpush1.bf16.msra.mxu0 %v6701_v52  ;;  %v5802_v52 = vld [vmem:[%s10190_s9 + $0x278] sm:$0xff] }
 0x51c   :  { %6703 = vmatprep.subr.bf16.mxu0 %v7365_v6  ;;  %v6746_v55 = vpack.c.bf16 %v5802_v52, %v5801_v51 }
 0x51f   :  { %6705 = vmatpush1.bf16.msra.mxu0 %v6704_v54  ;;  %v5829_v54 = vld [vmem:[%s10191_s10 + $0x288] sm:$0xff] }
 0x520   :  { %6706 = vmatprep.subr.bf16.mxu0 %v7365_v6  ;;  %v6785_v58 = vpack.c.bf16 %v5829_v54, %v5828_v53 }
 0x523   :  { %6708 = vmatpush1.bf16.msra.mxu0 %v6707_v57  ;;  %v5804_v57 = vld [vmem:[%s10190_s9 + $0x288] sm:$0xff] }
 0x524   :  { %6709 = vmatprep.subr.bf16.mxu0 %v7365_v6  ;;  %v6749_v0 = vpack.c.bf16 %v5804_v57, %v5803_v56  ;;  %v5874_v57 = vld [vmem:[%s10191_s10 + $0x300] sm:$0xff] }
 0x527   :  { %6711 = vmatpush1.bf16.msra.mxu0 %v6710_v63  ;;  %v5831_v63 = vld [vmem:[%s10191_s10 + $0x298] sm:$0xff] }
 0x528   :  { %6712 = vmatprep.subr.bf16.mxu0 %v7365_v6  ;;  %v6788_v3 = vpack.c.bf16 %v5831_v63, %v5830_v59 }
 0x52b   :  { %6714 = vmatpush1.bf16.msra.mxu0 %v6713_v2  ;;  %v5806_v2 = vld [vmem:[%s10190_s9 + $0x298] sm:$0xff] }
 0x52c   :  { %6715 = vmatprep.subr.bf16.mxu0 %v7365_v6  ;;  %v6752_v7 = vpack.c.bf16 %v5806_v2, %v5805_v1  ;;  %v5876_v2 = vld [vmem:[%s10191_s10 + $0x310] sm:$0xff] }
 0x52f   :  { %6717 = vmatpush1.bf16.msra.mxu0 %v6716_v5  ;;  %v5833_v5 = vld [vmem:[%s10191_s10 + $0x2a8] sm:$0xff] }
 0x530   :  { %6718 = vmatprep.subr.bf16.mxu0 %v7365_v6  ;;  %v6791_v10 = vpack.c.bf16 %v5833_v5, %v5832_v4  ;;  %v5845_v4 = vld [vmem:[%s10230_s4 + $0x8] sm:$0x3] }
 0x533   :  { %6720 = vmatpush1.bf16.msra.mxu0 %v6719_v9  ;;  %v5808_v9 = vld [vmem:[%s10190_s9 + $0x2a8] sm:$0xff] }
 0x534   :  { %6721 = vmatprep.subr.bf16.mxu0 %v7365_v6  ;;  %v6755_v45 = vpack.c.bf16 %v5808_v9, %v5807_v8  ;;  %v5852_v8 = vld [vmem:[%s10190_s9 + $0x318] sm:$0xff] }
 0x537   :  { %6723 = vmatpush1.bf16.msra.mxu0 %v6722_v12  ;;  %v5835_v12 = vld [vmem:[%s10191_s10 + $0x2b8] sm:$0xff] }
 0x538   :  { %6724 = vmatprep.subr.bf16.mxu0 %v7365_v6  ;;  %v6794_v13 = vpack.c.bf16 %v5835_v12, %v5834_v11  ;;  %v5879_v11 = vld [vmem:[%s10191_s10 + $0x328] sm:$0xff] }
 0x53b   :  { %6726 = vmatpush1.bf16.msra.mxu0 %v6725_v50  ;;  %v5810_v50 = vld [vmem:[%s10190_s9 + $0x2b8] sm:$0xff] }
 0x53c   :  { %6727 = vmatprep.subr.bf16.mxu0 %v7365_v6 }
 0x53f   :  { %6729 = vmatpush1.bf16.msra.mxu0 %v6728_v47  ;;  %v5837_v47 = vld [vmem:[%s10191_s10 + $0x2c8] sm:$0xff] }
 0x540   :  { %6772 = vmatprep.subr.bf16.mxu0 %v7365_v6  ;;  %v6797_v18 = vpack.c.bf16 %v5837_v47, %v5836_v14  ;;  %v5881_v14 = vld [vmem:[%s10191_s10 + $0x338] sm:$0xff] }
 0x581   :  { %v1671_v15 = vpop.f32.mrb[10].mxu1 }
 0x582   :  { %v1673_v16 = vpop.f32.mrb[11].mxu1 }
 0x583   :  { %v5811_v16 = vld [vmem:[%s10190_s9 + $0x2c0] sm:$0xff] }
 0x585   :  { %v1503_v19 = vpop.f32.mrb[12].mxu0  ;;  %v1816_v20 = vpop.f32.mrb[12].mxu1 }
 0x586   :  { %v8467_v21 = vadd.f32 %v1671_v15, %v1503_v19  ;;  %v1818_v22 = vpop.f32.mrb[13].mxu1  ;;  %v1505_v25 = vpop.f32.mrb[13].mxu0  ;;  %v6758_v15 = vpack.c.bf16 %v5810_v50, %v5809_v40  ;;  %v5838_v19 = vld [vmem:[%s10191_s10 + $0x2d0] sm:$0xff]  ;;  %v5854_v40 = vld [vmem:[%s10190_s9 + $0x328] sm:$0xff] }
 0x587   :  { %5765 = vmatprep.mubr.msk.f32.mxu1 %vm1433_vm6, %v1818_v22  ;;  %5790 = vmatprep.mubr.msk.f32.mxu0 %vm1433_vm6, %v1818_v22  ;;  %v6761_v22 = vpack.c.bf16 %v5812_v17, %v5811_v16  ;;  %v5856_v16 = vld [vmem:[%s10190_s9 + $0x338] sm:$0xff] }
 0x588   :  { %1914 = vmatmul.mubr.f32.vlgmr.msra.gmra.mrb[14].mxu1 %v1816_v20  ;;  %2009 = vmatmul.mubr.f32.vlgmr.msra.gmra.mrb[18].mxu0 %v1816_v20  ;;  %v5839_v20 = vld [vmem:[%s10191_s10 + $0x2d8] sm:$0xff] }
 0x589   :  { %6735 = vmatpush1.bf16.msk.msra.mxu1 %vm7983_vm4, %v7981_v60  ;;  %2085 = vmatprep.mubr.f32.mxu1 %v7364_v28  ;;  %v6800_v25 = vpack.c.bf16 %v5839_v20, %v5838_v19  ;;  %v5883_v19 = vld [vmem:[%s10191_s10 + $0x348] sm:$0xff] }
 0x58a   :  { %6736 = vmatprep.subr.bf16.mxu1 %v7365_v6  ;;  %6774 = vmatpush1.bf16.msra.mxu0 %v6773_v26  ;;  %v6764_v26 = vpack.c.bf16 %v5814_v24, %v5813_v23  ;;  %v5858_v23 = vld [vmem:[%s10190_s9 + $0x348] sm:$0xff] }
 0x58b   :  { %6775 = vmatprep.subr.bf16.mxu0 %v7365_v6 }
 0x58c   :  { %5794 = vmatmul.mubr.msk.f32.vlgmr.msra.gmra.mrb[16].mxu1 %vm1202_vm5, %v5791_v30  ;;  %v6767_v30 = vpack.c.bf16 %v5816_v29, %v5815_v27  ;;  %v5859_v29 = vld [vmem:[%s10190_s9 + $0x350] sm:$0xff] }
 0x58d   :  { %6738 = vmatpush1.bf16.msra.mxu1 %v6737_v31  ;;  %v5817_v31 = vld [vmem:[%s10190_s9 + $0x2f0] sm:$0xff] }
 0x58e   :  { %6739 = vmatprep.subr.bf16.mxu1 %v7365_v6  ;;  %6777 = vmatpush1.bf16.msra.mxu0 %v6776_v34  ;;  %v6770_v33 = vpack.c.bf16 %v5818_v32, %v5817_v31  ;;  %v5886_v32 = vld [vmem:[%s10191_s10 + $0x360] sm:$0xff] }
 0x58f   :  { %6778 = vmatprep.subr.bf16.mxu0 %v7365_v6 }
 0x591   :  { %6741 = vmatpush1.bf16.msra.mxu1 %v6740_v39  ;;  %v5841_v39 = vld [vmem:[%s10191_s10 + $0x2e8] sm:$0xff] }
 0x592   :  { %6742 = vmatprep.subr.bf16.mxu1 %v7365_v6  ;;  %6780 = vmatpush1.bf16.msra.mxu0 %v6779_v44  ;;  %v6803_v41 = vpack.c.bf16 %v5841_v39, %v5840_v36  ;;  %v5843_v44 = vld [vmem:[%s10191_s10 + $0x2f8] sm:$0xff]  ;;  %v5862_v36 = vld [vmem:[%s10190_s9 + $0x368] sm:$0xff] }
 0x593   :  { %6781 = vmatprep.subr.bf16.mxu0 %v7365_v6  ;;  %v6806_v46 = vpack.c.bf16 %v5843_v44, %v5842_v42  ;;  %v5889_v42 = vld [vmem:[%s10191_s10 + $0x378] sm:$0xff] }
 0x595   :  { %6744 = vmatpush1.bf16.msra.mxu1 %v6743_v49 }
 0x596   :  { %6745 = vmatprep.subr.bf16.mxu1 %v7365_v6  ;;  %6783 = vmatpush1.bf16.msra.mxu0 %v6782_v37 }
 0x597   :  { %6784 = vmatprep.subr.bf16.mxu0 %v7365_v6 }
 0x599   :  { %6747 = vmatpush1.bf16.msra.mxu1 %v6746_v55 }
 0x59a   :  { %6748 = vmatprep.subr.bf16.mxu1 %v7365_v6  ;;  %6786 = vmatpush1.bf16.msra.mxu0 %v6785_v58  ;;  %v5875_v58 = vld [vmem:[%s10191_s10 + $0x308] sm:$0xff] }
 0x59b   :  { %6787 = vmatprep.subr.bf16.mxu0 %v7365_v6  ;;  %v6851_v1 = vpack.c.bf16 %v5875_v58, %v5874_v57  ;;  %v5892_v58 = vld [vmem:[%s10191_s10 + $0x390] sm:$0xff] }
 0x59d   :  { %6750 = vmatpush1.bf16.msra.mxu1 %v6749_v0  ;;  %v5849_v0 = vld [vmem:[%s10190_s9 + $0x300] sm:$0xff] }
 0x59e   :  { %6751 = vmatprep.subr.bf16.mxu1 %v7365_v6  ;;  %6789 = vmatpush1.bf16.msra.mxu0 %v6788_v3  ;;  %v5877_v3 = vld [vmem:[%s10191_s10 + $0x318] sm:$0xff] }
 0x59f   :  { %6790 = vmatprep.subr.bf16.mxu0 %v7365_v6  ;;  %v6854_v9 = vpack.c.bf16 %v5877_v3, %v5876_v2  ;;  %v5869_v3 = vld [vmem:[%s10190_s9 + $0x3a0] sm:$0xff] }
 0x5a1   :  { %6753 = vmatpush1.bf16.msra.mxu1 %v6752_v7  ;;  %v5851_v7 = vld [vmem:[%s10190_s9 + $0x310] sm:$0xff] }
 0x5a2   :  { %6754 = vmatprep.subr.bf16.mxu1 %v7365_v6  ;;  %6792 = vmatpush1.bf16.msra.mxu0 %v6791_v10  ;;  %v5878_v10 = vld [vmem:[%s10191_s10 + $0x320] sm:$0xff]  ;;  %v6818_v12 = vpack.c.bf16 %v5852_v8, %v5851_v7  ;;  %v5871_v7 = vld [vmem:[%s10190_s9 + $0x3b0] sm:$0xff]  ;;  %v5872_v8 = vld [vmem:[%s10190_s9 + $0x3b8] sm:$0xff] }
 0x5a3   :  { %6793 = vmatprep.subr.bf16.mxu0 %v7365_v6  ;;  %v6857_v50 = vpack.c.bf16 %v5879_v11, %v5878_v10  ;;  %v5894_v10 = vld [vmem:[%s10191_s10 + $0x3a0] sm:$0xff]  ;;  %v5895_v11 = vld [vmem:[%s10191_s10 + $0x3a8] sm:$0xff] }
 0x5a5   :  { %6756 = vmatpush1.bf16.msra.mxu1 %v6755_v45  ;;  %v5853_v45 = vld [vmem:[%s10190_s9 + $0x320] sm:$0xff] }
 0x5a6   :  { %6757 = vmatprep.subr.bf16.mxu1 %v7365_v6  ;;  %6795 = vmatpush1.bf16.msra.mxu0 %v6794_v13  ;;  %v5880_v13 = vld [vmem:[%s10191_s10 + $0x330] sm:$0xff]  ;;  %v6821_v47 = vpack.c.bf16 %v5854_v40, %v5853_v45 }
 0x5a7   :  { %6796 = vmatprep.subr.bf16.mxu0 %v7365_v6  ;;  %v6860_v17 = vpack.c.bf16 %v5881_v14, %v5880_v13  ;;  %v5896_v45 = vld [vmem:[%s10191_s10 + $0x3b0] sm:$0xff] }
 0x5a9   :  { %6759 = vmatpush1.bf16.msra.mxu1 %v6758_v15  ;;  %v5855_v15 = vld [vmem:[%s10190_s9 + $0x330] sm:$0xff] }
 0x5aa   :  { %6760 = vmatprep.subr.bf16.mxu1 %v7365_v6  ;;  %6798 = vmatpush1.bf16.msra.mxu0 %v6797_v18  ;;  %v5882_v18 = vld [vmem:[%s10191_s10 + $0x340] sm:$0xff]  ;;  %v6824_v20 = vpack.c.bf16 %v5856_v16, %v5855_v15 }
 0x5ab   :  { %6799 = vmatprep.subr.bf16.mxu0 %v7365_v6  ;;  %v6863_v24 = vpack.c.bf16 %v5883_v19, %v5882_v18  ;;  %v5904_v18 = vld [vmem:[%s10190_s9 + $0x3c8] sm:$0xff] }
 0x5ad   :  { %6762 = vmatpush1.bf16.msra.mxu1 %v6761_v22  ;;  %v5857_v22 = vld [vmem:[%s10190_s9 + $0x340] sm:$0xff] }
 0x5ae   :  { %6763 = vmatprep.subr.bf16.mxu1 %v7365_v6  ;;  %6801 = vmatpush1.bf16.msra.mxu0 %v6800_v25  ;;  %v5884_v25 = vld [vmem:[%s10191_s10 + $0x350] sm:$0xff]  ;;  %v6827_v27 = vpack.c.bf16 %v5858_v23, %v5857_v22 }
 0x5af   :  { %6802 = vmatprep.subr.bf16.mxu0 %v7365_v6  ;;  %v5905_v23 = vld [vmem:[%s10190_s9 + $0x3d0] sm:$0xff] }
 0x5b1   :  { %6765 = vmatpush1.bf16.msra.mxu1 %v6764_v26  ;;  %v5885_v26 = vld [vmem:[%s10191_s10 + $0x358] sm:$0xff] }
 0x5b2   :  { %6766 = vmatprep.subr.bf16.mxu1 %v7365_v6  ;;  %6804 = vmatpush1.bf16.msra.mxu0 %v6803_v41  ;;  %v6866_v31 = vpack.c.bf16 %v5885_v26, %v5884_v25  ;;  %v5888_v41 = vld [vmem:[%s10191_s10 + $0x370] sm:$0xff]  ;;  %v5899_v25 = vld [vmem:[%s10230_s4 + $0xa] sm:$0x3] }
 0x5b3   :  { %6805 = vmatprep.subr.bf16.mxu0 %v7365_v6 }
 0x5b5   :  { %6768 = vmatpush1.bf16.msra.mxu1 %v6767_v30  ;;  %v1598_v34 = vpop.f32.mrb[14].mxu0  ;;  %v5860_v30 = vld [vmem:[%s10190_s9 + $0x358] sm:$0xff] }
 0x5b6   :  { %6769 = vmatprep.subr.bf16.mxu1 %v7365_v6  ;;  %v1600_v35 = vpop.f32.mrb[15].mxu0  ;;  %6807 = vmatpush1.bf16.msra.mxu0 %v6806_v46  ;;  %v5863_v46 = vld [vmem:[%s10190_s9 + $0x370] sm:$0xff] }
 0x5b7   :  { %6850 = vmatprep.subr.bf16.mxu0 %v7365_v6  ;;  %v5861_v35 = vld [vmem:[%s10190_s9 + $0x360] sm:$0xff] }
 0x5b8   :  { %v6833_v44 = vpack.c.bf16 %v5862_v36, %v5861_v35  ;;  %v5933_v35 = vld [vmem:[%s10191_s10 + $0x3e8] sm:$0xff]  ;;  %v5909_v36 = vld [vmem:[%s10190_s9 + $0x3f0] sm:$0xff] }
 0x5b9   :  { %6771 = vmatpush1.bf16.msra.mxu1 %v6770_v33  ;;  %v5887_v33 = vld [vmem:[%s10191_s10 + $0x368] sm:$0xff] }
 0x5ba   :  { %6810 = vmatprep.subr.msk.bf16.mxu1 %vm7983_vm4, %v7987_v62  ;;  %v6869_v39 = vpack.c.bf16 %v5887_v33, %v5886_v32 }
 0x5e5   :  { %v1741_v48 = vpop.f32.mrb[16].mxu0 }
 0x5e6   :  { %v1742_v49 = vadd.f32 %v1741_v48, %v1598_v34  ;;  %v1743_v51 = vpop.f32.mrb[17].mxu0  ;;  %v6830_v34 = vpack.c.bf16 %v5860_v30, %v5859_v29  ;;  %v5864_v48 = vld [vmem:[%s10190_s9 + $0x378] sm:$0xff]  ;;  %v5930_v29 = vld [vmem:[%s10191_s10 + $0x3d0] sm:$0xff] }
 0x5e7   :  { %v5890_v51 = vld [vmem:[%s10191_s10 + $0x380] sm:$0xff]  ;;  %v5931_v30 = vld [vmem:[%s10191_s10 + $0x3d8] sm:$0xff] }
 0x5e8   :  { %v6932_v32 = vpack.c.bf16 %v5931_v30, %v5930_v29  ;;  %v5925_v29 = vld [vmem:[%s10190_s9 + $0x470] sm:$0xff]  ;;  %v5926_v30 = vld [vmem:[%s10190_s9 + $0x478] sm:$0xff] }
 0x65b   :  { %v1915_v52 = vpop.f32.mrb[14].mxu1  ;;  %v2010_v37 = vpop.f32.mrb[18].mxu0 }
 0x65c   :  { %v8645_v53 = vadd.f32 %v1915_v52, %v8467_v21  ;;  %v8647_v54 = vadd.f32 %v2010_v37, %v1742_v49  ;;  %v1917_v55 = vpop.f32.mrb[15].mxu1  ;;  %v2012_v56 = vpop.f32.mrb[19].mxu0  ;;  %v5850_v21 = vld [vmem:[%s10190_s9 + $0x308] sm:$0xff]  ;;  %v6872_v49 = vpack.c.bf16 %v5889_v42, %v5888_v41  ;;  %v6836_v37 = vpack.c.bf16 %v5864_v48, %v5863_v46  ;;  %v5935_v46 = vld [vmem:[%s10191_s10 + $0x3f8] sm:$0xff]  ;;  %v5911_v48 = vld [vmem:[%s10190_s9 + $0x400] sm:$0xff] }
 0x65d   :  { %v6815_v5 = vpack.c.bf16 %v5850_v21, %v5849_v0  ;;  %v5891_v52 = vld [vmem:[%s10191_s10 + $0x388] sm:$0xff]  ;;  %v5865_v55 = vld [vmem:[%s10190_s9 + $0x380] sm:$0xff]  ;;  %v5867_v0 = vld [vmem:[%s10190_s9 + $0x390] sm:$0xff] }
 0x65e   :  { %v5866_v56 = vld [vmem:[%s10190_s9 + $0x388] sm:$0xff]  ;;  %v6875_v57 = vpack.c.bf16 %v5891_v52, %v5890_v51  ;;  %v5868_v21 = vld [vmem:[%s10190_s9 + $0x398] sm:$0xff] }
 0x65f   :  { %v2087_v59 = vpop.f32.mrb[16].mxu1  ;;  %v6842_v2 = vpack.c.bf16 %v5868_v21, %v5867_v0  ;;  %v5939_v0 = vld [vmem:[%s10191_s10 + $0x418] sm:$0xff]  ;;  %v5915_v21 = vld [vmem:[%s10190_s9 + $0x420] sm:$0xff] }
 0x660   :  { %v2089_v63 = vpop.f32.mrb[17].mxu1 }
 0x661   :  { %5819 = vmatprep.mubr.msk.f32.mxu1 %vm1433_vm6, %v2089_v63  ;;  %5844 = vmatprep.mubr.msk.f32.mxu0 %vm1433_vm6, %v2089_v63  ;;  %v6839_v63 = vpack.c.bf16 %v5866_v56, %v5865_v55  ;;  %v5937_v55 = vld [vmem:[%s10191_s10 + $0x408] sm:$0xff]  ;;  %v5913_v56 = vld [vmem:[%s10190_s9 + $0x410] sm:$0xff] }
 0x662   :  { %2185 = vmatmul.mubr.f32.vlgmr.msra.gmra.mrb[18].mxu1 %v2087_v59  ;;  %2280 = vmatmul.mubr.f32.vlgmr.msra.gmra.mrb[20].mxu0 %v2087_v59  ;;  %v5893_v59 = vld [vmem:[%s10191_s10 + $0x398] sm:$0xff] }
 0x663   :  { %6813 = vmatpush1.bf16.msk.msra.mxu1 %vm7983_vm4, %v7981_v60  ;;  %2356 = vmatprep.mubr.f32.mxu1 %v7364_v28 }
 0x664   :  { %6814 = vmatprep.subr.bf16.mxu1 %v7365_v6  ;;  %6852 = vmatpush1.bf16.msra.mxu0 %v6851_v1  ;;  %v6878_v1 = vpack.c.bf16 %v5893_v59, %v5892_v58 }
 0x665   :  { %6853 = vmatprep.subr.bf16.mxu0 %v7365_v6 }
 0x666   :  { %5848 = vmatmul.mubr.msk.f32.vlgmr.msra.gmra.mrb[20].mxu1 %vm1202_vm5, %v5845_v4  ;;  %v5870_v4 = vld [vmem:[%s10190_s9 + $0x3a8] sm:$0xff] }
 0x667   :  { %6816 = vmatpush1.bf16.msra.mxu1 %v6815_v5  ;;  %v6845_v5 = vpack.c.bf16 %v5870_v4, %v5869_v3  ;;  %v5940_v4 = vld [vmem:[%s10191_s10 + $0x420] sm:$0xff] }
 0x668   :  { %6817 = vmatprep.subr.bf16.mxu1 %v7365_v6  ;;  %6855 = vmatpush1.bf16.msra.mxu0 %v6854_v9  ;;  %v6848_v9 = vpack.c.bf16 %v5872_v8, %v5871_v7  ;;  %v5917_v7 = vld [vmem:[%s10190_s9 + $0x430] sm:$0xff]  ;;  %v5918_v8 = vld [vmem:[%s10190_s9 + $0x438] sm:$0xff] }
 0x669   :  { %6856 = vmatprep.subr.bf16.mxu0 %v7365_v6 }
 0x66b   :  { %6819 = vmatpush1.bf16.msra.mxu1 %v6818_v12  ;;  %v6881_v12 = vpack.c.bf16 %v5895_v11, %v5894_v10  ;;  %v6914_v10 = vpack.c.bf16 %v5918_v8, %v5917_v7  ;;  %v5942_v11 = vld [vmem:[%s10191_s10 + $0x430] sm:$0xff]  ;;  %v5970_v8 = vld [vmem:[%s10195_s14 + $0x20] sm:$0xff] }
 0x66c   :  { %6820 = vmatprep.subr.bf16.mxu1 %v7365_v6  ;;  %6858 = vmatpush1.bf16.msra.mxu0 %v6857_v50 }
 0x66d   :  { %6859 = vmatprep.subr.bf16.mxu0 %v7365_v6 }
 0x66f   :  { %6822 = vmatpush1.bf16.msra.mxu1 %v6821_v47 }
 0x670   :  { %6823 = vmatprep.subr.bf16.mxu1 %v7365_v6  ;;  %6861 = vmatpush1.bf16.msra.mxu0 %v6860_v17  ;;  %v5903_v17 = vld [vmem:[%s10190_s9 + $0x3c0] sm:$0xff] }
 0x671   :  { %6862 = vmatprep.subr.bf16.mxu0 %v7365_v6  ;;  %v6893_v22 = vpack.c.bf16 %v5904_v18, %v5903_v17  ;;  %v5922_v17 = vld [vmem:[%s10190_s9 + $0x458] sm:$0xff] }
 0x673   :  { %6825 = vmatpush1.bf16.msra.mxu1 %v6824_v20 }
 0x674   :  { %6826 = vmatprep.subr.bf16.mxu1 %v7365_v6  ;;  %6864 = vmatpush1.bf16.msra.mxu0 %v6863_v24  ;;  %v5906_v24 = vld [vmem:[%s10190_s9 + $0x3d8] sm:$0xff] }
 0x675   :  { %6865 = vmatprep.subr.bf16.mxu0 %v7365_v6 }
 0x677   :  { %6828 = vmatpush1.bf16.msra.mxu1 %v6827_v27  ;;  %v6896_v27 = vpack.c.bf16 %v5906_v24, %v5905_v23  ;;  %v5924_v23 = vld [vmem:[%s10190_s9 + $0x468] sm:$0xff]  ;;  %v5948_v24 = vld [vmem:[%s10191_s10 + $0x460] sm:$0xff] }
 0x678   :  { %6829 = vmatprep.subr.bf16.mxu1 %v7365_v6  ;;  %6867 = vmatpush1.bf16.msra.mxu0 %v6866_v31  ;;  %v5908_v31 = vld [vmem:[%s10190_s9 + $0x3e8] sm:$0xff] }
 0x679   :  { %6868 = vmatprep.subr.bf16.mxu0 %v7365_v6 }
 0x67b   :  { %6831 = vmatpush1.bf16.msra.mxu1 %v6830_v34  ;;  %v5932_v34 = vld [vmem:[%s10191_s10 + $0x3e0] sm:$0xff] }
 0x67c   :  { %6832 = vmatprep.subr.bf16.mxu1 %v7365_v6  ;;  %6870 = vmatpush1.bf16.msra.mxu0 %v6869_v39  ;;  %v5910_v39 = vld [vmem:[%s10190_s9 + $0x3f8] sm:$0xff]  ;;  %v6935_v41 = vpack.c.bf16 %v5933_v35, %v5932_v34 }
 0x67d   :  { %6871 = vmatprep.subr.bf16.mxu0 %v7365_v6  ;;  %v6902_v42 = vpack.c.bf16 %v5910_v39, %v5909_v36 }
 0x67f   :  { %6834 = vmatpush1.bf16.msra.mxu1 %v6833_v44  ;;  %v5934_v44 = vld [vmem:[%s10191_s10 + $0x3f0] sm:$0xff] }
 0x680   :  { %6835 = vmatprep.subr.bf16.mxu1 %v7365_v6  ;;  %6873 = vmatpush1.bf16.msra.mxu0 %v6872_v49  ;;  %v5912_v49 = vld [vmem:[%s10190_s9 + $0x408] sm:$0xff]  ;;  %v6938_v51 = vpack.c.bf16 %v5935_v46, %v5934_v44 }
 0x681   :  { %6874 = vmatprep.subr.bf16.mxu0 %v7365_v6  ;;  %v6905_v52 = vpack.c.bf16 %v5912_v49, %v5911_v48  ;;  %v2854_v48 = vld [vmem:[%s10195_s14] sm:$0xff]  ;;  %v5956_v49 = vld [vmem:[%s10195_s14 + $0x10] sm:$0xff] }
 0x683   :  { %6837 = vmatpush1.bf16.msra.mxu1 %v6836_v37  ;;  %v5936_v37 = vld [vmem:[%s10191_s10 + $0x400] sm:$0xff] }
 0x684   :  { %6838 = vmatprep.subr.bf16.mxu1 %v7365_v6  ;;  %6876 = vmatpush1.bf16.msra.mxu0 %v6875_v57  ;;  %v5914_v57 = vld [vmem:[%s10190_s9 + $0x418] sm:$0xff]  ;;  %v6941_v58 = vpack.c.bf16 %v5937_v55, %v5936_v37  ;;  %v5953_v37 = vld [vmem:[%s10192_s11] ss:$0 sm:$0xff]  ;;  %s10231_s11 = sld [smem:[#allocation9_spill]] }
 0x685   :  { %6877 = vmatprep.subr.bf16.mxu0 %v7365_v6  ;;  %v6908_v59 = vpack.c.bf16 %v5914_v57, %v5913_v56  ;;  %v5954_v56 = vld [vmem:[%s10193_s12] ss:$0 sm:$0xff] }
 0x687   :  { %6840 = vmatpush1.bf16.msra.mxu1 %v6839_v63  ;;  %v5938_v63 = vld [vmem:[%s10191_s10 + $0x410] sm:$0xff] }
 0x688   :  { %6841 = vmatprep.subr.bf16.mxu1 %v7365_v6  ;;  %6879 = vmatpush1.bf16.msra.mxu0 %v6878_v1  ;;  %v5916_v1 = vld [vmem:[%s10190_s9 + $0x428] sm:$0xff] }
 0x689   :  { %6880 = vmatprep.subr.bf16.mxu0 %v7365_v6  ;;  %v6911_v3 = vpack.c.bf16 %v5916_v1, %v5915_v21 }
 0x68b   :  { %6843 = vmatpush1.bf16.msra.mxu1 %v6842_v2  ;;  %v6944_v2 = vpack.c.bf16 %v5939_v0, %v5938_v63 }
 0x68c   :  { %6844 = vmatprep.subr.bf16.mxu1 %v7365_v6  ;;  %6882 = vmatpush1.bf16.msra.mxu0 %v6881_v12  ;;  %v5943_v12 = vld [vmem:[%s10191_s10 + $0x438] sm:$0xff] }
 0x68d   :  { %6883 = vmatprep.subr.bf16.mxu0 %v7365_v6 }
 0x68f   :  { %6846 = vmatpush1.bf16.msra.mxu1 %v6845_v5  ;;  %v5941_v5 = vld [vmem:[%s10191_s10 + $0x428] sm:$0xff] }
 0x690   :  { %6847 = vmatprep.subr.bf16.mxu1 %v7365_v6 }
 0x693   :  { %6849 = vmatpush1.bf16.msra.mxu1 %v6848_v9  ;;  %v6947_v9 = vpack.c.bf16 %v5941_v5, %v5940_v4 }
 0x694   :  { %6888 = vmatprep.subr.msk.bf16.mxu1 %vm7983_vm4, %v7987_v62  ;;  %v5897_v62 = vld [vmem:[%s10191_s10 + $0x3b8] sm:$0xff] }
 0x695   :  { %v6884_v40 = vpack.c.bf16 %v5897_v62, %v5896_v45  ;;  %v5919_v45 = vld [vmem:[%s10190_s9 + $0x440] sm:$0xff]  ;;  %v5920_v62 = vld [vmem:[%s10190_s9 + $0x448] sm:$0xff] }
 0x697   :  { %6885 = vmatpush1.bf16.msra.mxu0 %v6884_v40  ;;  %v6950_v40 = vpack.c.bf16 %v5943_v12, %v5942_v11  ;;  %v5991_v11 = vld [vmem:[%s10195_s14 + $0x48] sm:$0xff]  ;;  %v5990_v12 = vld [vmem:[%s10195_s14 + $0x40] sm:$0xff] }
 0x698   :  { %6892 = vmatprep.subr.bf16.mxu0 %v7365_v6 }
 0x735   :  { %v2186_v50 = vpop.f32.mrb[18].mxu1  ;;  %v2281_v13 = vpop.f32.mrb[20].mxu0 }
 0x736   :  { %v8831_v14 = vadd.f32 %v2186_v50, %v8645_v53  ;;  %v8834_v47 = vadd.f32 %v2281_v13, %v8647_v54  ;;  %v2188_v15 = vpop.f32.mrb[19].mxu1  ;;  %v2283_v16 = vpop.f32.mrb[21].mxu0  ;;  %v5928_v53 = vld [vmem:[%s10191_s10 + $0x3c0] sm:$0xff]  ;;  %v5929_v54 = vld [vmem:[%s10191_s10 + $0x3c8] sm:$0xff]  ;;  %v6917_v50 = vpack.c.bf16 %v5920_v62, %v5919_v45  ;;  %v6001_v45 = vld [vmem:[%s10195_s14 + $0x58] sm:$0xff] }
 0x737   :  { %v6929_v26 = vpack.c.bf16 %v5929_v54, %v5928_v53  ;;  %v5944_v13 = vld [vmem:[%s10191_s10 + $0x440] sm:$0xff]  ;;  %v5945_v15 = vld [vmem:[%s10191_s10 + $0x448] sm:$0xff]  ;;  %v5921_v16 = vld [vmem:[%s10190_s9 + $0x450] sm:$0xff] }
 0x738   :  { %v6953_v18 = vpack.c.bf16 %v5945_v15, %v5944_v13  ;;  %v5923_v54 = vld [vmem:[%s10190_s9 + $0x460] sm:$0xff]  ;;  %v6000_v62 = vld [vmem:[%s10195_s14 + $0x50] sm:$0xff] }
 0x739   :  { %v2358_v19 = vpop.f32.mrb[20].mxu1 }
 0x73a   :  { %v2360_v20 = vpop.f32.mrb[21].mxu1 }
 0x73b   :  { %5873 = vmatprep.mubr.msk.f32.mxu1 %vm1433_vm6, %v2360_v20  ;;  %5898 = vmatprep.mubr.msk.f32.mxu0 %vm1433_vm6, %v2360_v20  ;;  %v5946_v20 = vld [vmem:[%s10191_s10 + $0x450] sm:$0xff] }
 0x73c   :  { %2456 = vmatmul.mubr.f32.vlgmr.msra.gmra.mrb[22].mxu1 %v2358_v19  ;;  %2551 = vmatmul.mubr.f32.vlgmr.msra.gmra.mrb[22].mxu0 %v2358_v19  ;;  %v6920_v19 = vpack.c.bf16 %v5922_v17, %v5921_v16  ;;  %v5972_v16 = vld [vmem:[%s10196_s15 + $0x4] sm:$0x3] }
 0x73d   :  { %6891 = vmatpush1.bf16.msk.msra.mxu1 %vm7983_vm4, %v7981_v60  ;;  %2627 = vmatprep.mubr.f32.mxu1 %v7364_v28  ;;  %v5907_v60 = vld [vmem:[%s10190_s9 + $0x3e0] sm:$0xff] }
 0x73e   :  { %6928 = vmatprep.subr.bf16.mxu1 %v7365_v6  ;;  %6894 = vmatpush1.bf16.msra.mxu0 %v6893_v22  ;;  %v6899_v33 = vpack.c.bf16 %v5908_v31, %v5907_v60  ;;  %v5947_v22 = vld [vmem:[%s10191_s10 + $0x458] sm:$0xff]  ;;  %v5950_v60 = vld [vmem:[%s10191_s10 + $0x470] sm:$0xff]  ;;  %v6926_v31 = vpack.c.bf16 %v5926_v30, %v5925_v29 }
 0x73f   :  { %6895 = vmatprep.subr.bf16.mxu0 %v7365_v6  ;;  %v6956_v53 = vpack.c.bf16 %v5947_v22, %v5946_v20 }
 0x740   :  { %5902 = vmatmul.mubr.msk.f32.vlgmr.msra.gmra.mrb[24].mxu1 %vm1202_vm5, %v5899_v25  ;;  %v6923_v25 = vpack.c.bf16 %v5924_v23, %v5923_v54  ;;  %v3228_v23 = vrot.slane %v5972_v16, %v7977_v43 }
 0x741   :  { %6930 = vmatpush1.bf16.msra.mxu1 %v6929_v26  ;;  %v5949_v26 = vld [vmem:[%s10191_s10 + $0x468] sm:$0xff] }
 0x742   :  { %6931 = vmatprep.subr.bf16.mxu1 %v7365_v6  ;;  %6897 = vmatpush1.bf16.msra.mxu0 %v6896_v27  ;;  %v6959_v27 = vpack.c.bf16 %v5949_v26, %v5948_v24 }
 0x743   :  { %6898 = vmatprep.subr.bf16.mxu0 %v7365_v6 }
 0x745   :  { %6933 = vmatpush1.bf16.msra.mxu1 %v6932_v32  ;;  %v5951_v32 = vld [vmem:[%s10191_s10 + $0x478] sm:$0xff] }
 0x746   :  { %6934 = vmatprep.subr.bf16.mxu1 %v7365_v6  ;;  %6900 = vmatpush1.bf16.msra.mxu0 %v6899_v33  ;;  %v6962_v33 = vpack.c.bf16 %v5951_v32, %v5950_v60  ;;  %v5961_v32 = vld [vmem:[%s10194_s13 + $0x18] sm:$0xf] }
 0x747   :  { %6901 = vmatprep.subr.bf16.mxu0 %v7365_v6 }
 0x749   :  { %6936 = vmatpush1.bf16.msra.mxu1 %v6935_v41 }
 0x74a   :  { %6937 = vmatprep.subr.bf16.mxu1 %v7365_v6  ;;  %6903 = vmatpush1.bf16.msra.mxu0 %v6902_v42 }
 0x74b   :  { %6904 = vmatprep.subr.bf16.mxu0 %v7365_v6 }
 0x74d   :  { %6939 = vmatpush1.bf16.msra.mxu1 %v6938_v51  ;;  %v5971_v51 = vld [vmem:[%s10195_s14 + $0x28] sm:$0xff] }
 0x74e   :  { %6940 = vmatprep.subr.bf16.mxu1 %v7365_v6  ;;  %6906 = vmatpush1.bf16.msra.mxu0 %v6905_v52 }
 0x74f   :  { %6907 = vmatprep.subr.bf16.mxu0 %v7365_v6 }
 0x751   :  { %6942 = vmatpush1.bf16.msra.mxu1 %v6941_v58 }
 0x752   :  { %6943 = vmatprep.subr.bf16.mxu1 %v7365_v6  ;;  %6909 = vmatpush1.bf16.msra.mxu0 %v6908_v59 }
 0x753   :  { %6910 = vmatprep.subr.bf16.mxu0 %v7365_v6 }
 0x755   :  { %6945 = vmatpush1.bf16.msra.mxu1 %v6944_v2 }
 0x756   :  { %6946 = vmatprep.subr.bf16.mxu1 %v7365_v6  ;;  %6912 = vmatpush1.bf16.msra.mxu0 %v6911_v3  ;;  %v2848_v3 = vld [vmem:[%s10231_s11] sm:$0x3] }
 0x757   :  { %6913 = vmatprep.subr.bf16.mxu0 %v7365_v6 }
 0x759   :  { %6948 = vmatpush1.bf16.msra.mxu1 %v6947_v9  ;;  %v5981_v9 = vld [vmem:[%s10195_s14 + $0x38] sm:$0xff] }
 0x75a   :  { %6949 = vmatprep.subr.bf16.mxu1 %v7365_v6  ;;  %6915 = vmatpush1.bf16.msra.mxu0 %v6914_v10  ;;  %v5980_v10 = vld [vmem:[%s10195_s14 + $0x30] sm:$0xff] }
 0x75b   :  { %6916 = vmatprep.subr.bf16.mxu0 %v7365_v6 }
 0x75d   :  { %6951 = vmatpush1.bf16.msra.mxu1 %v6950_v40  ;;  %v5958_v40 = vld [vmem:[%s10196_s15 + $0x2] sm:$0x3] }
 0x75e   :  { %6952 = vmatprep.subr.bf16.mxu1 %v7365_v6  ;;  %6918 = vmatpush1.bf16.msra.mxu0 %v6917_v50  ;;  %v2856_v50 = vld [vmem:[%s10196_s15] sm:$0x3]  ;;  %v2958_v13 = vrot.slane %v5958_v40, %v7977_v43  ;;  %v2954_v15 = vrot.slane %v5958_v40, %v7972_v38 }
 0x75f   :  { %6919 = vmatprep.subr.bf16.mxu0 %v7365_v6  ;;  %v2861_v20 = vrot.slane %v2856_v50, %v7972_v38 }
 0x761   :  { %6954 = vmatpush1.bf16.msra.mxu1 %v6953_v18 }
 0x762   :  { %6955 = vmatprep.subr.bf16.mxu1 %v7365_v6  ;;  %6921 = vmatpush1.bf16.msra.mxu0 %v6920_v19  ;;  %v2865_v19 = vrot.slane %v2856_v50, %v7977_v43 }
 0x763   :  { %6922 = vmatprep.subr.bf16.mxu0 %v7365_v6 }
 0x765   :  { %6957 = vmatpush1.bf16.msra.mxu1 %v6956_v53 }
 0x766   :  { %6958 = vmatprep.subr.bf16.mxu1 %v7365_v6  ;;  %6924 = vmatpush1.bf16.msra.mxu0 %v6923_v25  ;;  %v5960_v25 = vld [vmem:[%s10194_s13 + $0x10] sm:$0xff] }
 0x767   :  { %6925 = vmatprep.subr.bf16.mxu0 %v7365_v6 }
 0x769   :  { %6960 = vmatpush1.bf16.msra.mxu1 %v6959_v27 }
 0x76a   :  { %6961 = vmatprep.subr.bf16.mxu1 %v7365_v6  ;;  %6927 = vmatpush1.bf16.msra.mxu0 %v6926_v31  ;;  %v5982_v31 = vld [vmem:[%s10196_s15 + $0x6] sm:$0x3] }
 0x76d   :  { %6963 = vmatpush1.bf16.msra.mxu1 %v6962_v33 }
 0x80f   :  { %v2457_v34 = vpop.f32.mrb[22].mxu1  ;;  %v2552_v35 = vpop.f32.mrb[22].mxu0 }
 0x810   :  { %v2556_v36 = vadd.f32 %v2457_v34, %v8831_v14  ;;  %v2557_v39 = vadd.f32 %v2552_v35, %v8834_v47  ;;  %v2459_v41 = vpop.f32.mrb[23].mxu1  ;;  %v2554_v42 = vpop.f32.mrb[23].mxu0  ;;  %v2855_v14 = vld [vmem:[%s10195_s14 + $0x8] sm:$0xff]  ;;  %v5957_v47 = vld [vmem:[%s10195_s14 + $0x18] sm:$0xff]  ;;  %v3224_v34 = vrot.slane %v5972_v16, %v7972_v38 }
 0x811   :  { %2872 = vmatprep.subr.mxu0 %v2855_v14  ;;  %2961 = vmatprep.subr.mxu1 %v5957_v47  ;;  %v5992_v14 = vld [vmem:[%s10196_s15 + $0x8] sm:$0x3] }
 0x812   :  { %v2944_v47 = vld [vmem:[%s10194_s13 + $0x8] sm:$0xf] }
 0x813   :  { %v2629_v44 = vpop.f32.mrb[24].mxu1 }
 0x814   :  { %v2631_v46 = vpop.f32.mrb[25].mxu1 }
 0x815   :  { %5927 = vmatprep.mubr.msk.f32.mxu0 %vm1433_vm6, %v2631_v46  ;;  %5952 = vmatprep.mubr.msk.f32.mxu1 %vm1433_vm6, %v2631_v46 }
 0x816   :  { %2727 = vmatmul.mubr.f32.vlgmr.msra.gmra.mrb[24].mxu0 %v2629_v44  ;;  %2822 = vmatmul.mubr.f32.vlgmr.msra.gmra.mrb[26].mxu1 %v2629_v44 }
 0x817   :  { %2936 = vmatprep.mubr.f32.mxu0 %v7364_v28  ;;  %3025 = vmatprep.mubr.f32.mxu1 %v7364_v28 }
 0x818   :  { %2873 = vmatpush1.msra.mxu0 %v2854_v48  ;;  %2962 = vmatpush1.msra.mxu1 %v5956_v49  ;;  %v3407_v49 = vrot.slane %v5982_v31, %v7972_v38 }
 0x819   :  { %3231 = vmatprep.subr.mxu1 %v5971_v51 }
 0x8e9   :  { %v2728_v52 = vpop.f32.mrb[24].mxu0  ;;  %v2823_v55 = vpop.f32.mrb[26].mxu1 }
 0x8ea   :  { %v2827_v57 = vadd.f32 %v2728_v52, %v2556_v36  ;;  %v2828_v58 = vadd.f32 %v2823_v55, %v2557_v39  ;;  %v2730_v59 = vpop.f32.mrb[25].mxu0  ;;  %v2825_v63 = vpop.f32.mrb[27].mxu1  ;;  %v3411_v36 = vrot.slane %v5982_v31, %v7977_v43  ;;  %v2943_v39 = vld [vmem:[%s10194_s13] sm:$0xff]  ;;  %v3594_v52 = vrot.slane %v5992_v14, %v7977_v43 }
 0x8eb   :  { %v3590_v59 = vrot.slane %v5992_v14, %v7972_v38  ;;  %v6027_v31 = vld [vmem:[%s10198_s17 + $0x1a0] sm:$0xff]  ;;  %v6017_v14 = vld [vmem:[%s10197_s16 + $0x28] sm:$0x3f] }
 0x8ec   :  { %v2836_v0 = vadd.f32 %v5953_v37, %v2827_v57  ;;  %v2844_v21 = vadd.f32 %v5954_v56, %v2828_v58  ;;  %v5974_v37 = vld [vmem:[%s10194_s13 + $0x20] sm:$0xff]  ;;  %v6002_v57 = vld [vmem:[%s10196_s15 + $0xa] sm:$0x3] }
 0x8ed   :  { %v5975_v58 = vld [vmem:[%s10194_s13 + $0x28] sm:$0xf]  ;;  %v3777_v63 = vrot.slane %v6002_v57, %v7977_v43 }
 0x8ee   :  { %v2849_v1 = vmul.f32 0.5, %v2844_v21  ;;  %2846 = vst.msk [vmem:[#allocation2] sm:$0x3] %vm2845_vm7, %v2836_v0  ;;  %2847 = vst.msk [vmem:[#allocation4] sm:$0x3] %vm2845_vm7, %v2844_v21 }
 0x8f0   :  { %v2850_v2 = vmul.f32 1.442695, %v2849_v1 }
 0x8f2   :  { %7290 = vpow2.f32 %v2850_v2  ;;  %v5985_v2 = vld [vmem:[%s10194_s13 + $0x38] sm:$0xf] }
 0x8fc   :  { %v7291_v4 = vpop.eup %7290 }
 0x8fd   :  { %v2852_v5 = vmul.f32 %v7291_v4, %v2848_v3  ;;  %v3773_v3 = vrot.slane %v6002_v57, %v7972_v38  ;;  %v5994_v4 = vld [vmem:[%s10194_s13 + $0x40] sm:$0xff] }
 0x8fe   :  { %v6039_v57 = vld [vmem:[%s10198_s17 + $0x200] sm:$0xff] }
 0x8ff   :  { %v2853_v7 = vadd.f32 %v2852_v5, %v2836_v0  ;;  %v5984_v0 = vld [vmem:[%s10194_s13 + $0x30] sm:$0xff] }
 0x901   :  { %5955 = vmatmul.mubr.msk.f32.vlgmr.msra.gmra.mrb[26].mxu0 %vm2868_vm8, %v2853_v7  ;;  %5959 = vmatmul.mubr.msk.f32.vlgmr.msra.gmra.mrb[28].mxu1 %vm2868_vm8, %v2853_v7 }
 0x902   :  { %3232 = vmatpush1.msra.mxu1 %v5970_v8  ;;  %3295 = vmatprep.mubr.f32.mxu1 %v7364_v28  ;;  %v6004_v8 = vld [vmem:[%s10194_s13 + $0x50] sm:$0xff] }
 0x903   :  { %3414 = vmatprep.subr.mxu1 %v5981_v9  ;;  %3113 = vmatprep.mubr.f32.mxu0 %v7364_v28  ;;  %v6005_v9 = vld [vmem:[%s10194_s13 + $0x58] sm:$0xf] }
 0x905   :  { %5973 = vmatmul.mubr.msk.f32.vlgmr.msra.gmra.mrb[30].mxu1 %vm2868_vm8, %v2853_v7 }
 0x906   :  { %3415 = vmatpush1.msra.mxu1 %v5980_v10  ;;  %3478 = vmatprep.mubr.f32.mxu1 %v7364_v28 }
 0x907   :  { %3597 = vmatprep.subr.mxu1 %v5991_v11 }
 0x909   :  { %5983 = vmatmul.mubr.msk.f32.vlgmr.msra.gmra.mrb[32].mxu1 %vm2868_vm8, %v2853_v7 }
 0x90a   :  { %3598 = vmatpush1.msra.mxu1 %v5990_v12  ;;  %3661 = vmatprep.mubr.f32.mxu1 %v7364_v28 }
 0x90b   :  { %3780 = vmatprep.subr.mxu1 %v6001_v45 }
 0x90d   :  { %5993 = vmatmul.mubr.msk.f32.vlgmr.msra.gmra.mrb[34].mxu1 %vm2868_vm8, %v2853_v7 }
 0x90e   :  { %3781 = vmatpush1.msra.mxu1 %v6000_v62  ;;  %3844 = vmatprep.mubr.f32.mxu1 %v7364_v28 }
 0x911   :  { %6003 = vmatmul.mubr.msk.f32.vlgmr.msra.gmra.mrb[36].mxu1 %vm2868_vm8, %v2853_v7  ;;  %v5995_v7 = vld [vmem:[%s10194_s13 + $0x48] sm:$0xf] }
 0x912   :  { %4033 = vmatprep.mubr.f32.mxu1 %v7364_v28 }
 0x9d4   :  { %v2938_v17 = vpop.f32.mrb[26].mxu0  ;;  %v3027_v18 = vpop.f32.mrb[28].mxu1 }
 0x9d5   :  { %v2940_v22 = vpop.f32.mrb[27].mxu0  ;;  %v3029_v53 = vpop.f32.mrb[29].mxu1  ;;  %v3028_v24 = vadd.f32 %v3027_v18, %v2954_v15  ;;  %v2939_v29 = vadd.f32 %v2938_v17, %v2861_v20  ;;  %v6024_v17 = vld [vmem:[%s10198_s17 + $0x188] sm:$0xff]  ;;  %v6026_v18 = vld [vmem:[%s10198_s17 + $0x198] sm:$0xff]  ;;  %v6077_v20 = vld [vmem:[%s10197_s16 + $0x30] sm:$0xff] }
 0x9d6   :  { %v3030_v54 = vadd.f32 %v3029_v53, %v2958_v13  ;;  %v2941_v26 = vadd.f32 %v2940_v22, %v2865_v19  ;;  %v3951_v19 = vld [vmem:[%s10197_s16] sm:$0xff]  ;;  %v6976_v22 = vpack.c.bf16 %v6026_v18, %v6024_v17  ;;  %v3952_v53 = vld [vmem:[%s10197_s16 + $0x8] sm:$0xff]  ;;  %v6057_v18 = vld [vmem:[%s10198_s17 + $0x290] sm:$0xff] }
 0x9d7   :  { %v6055_v17 = vld [vmem:[%s10198_s17 + $0x280] sm:$0xff] }
 0x9d8   :  { %5962 = vmatprep.subr.msk.mxu0 %vm3042_vm9, %v3030_v54  ;;  %v3297_v27 = vpop.f32.mrb[30].mxu1  ;;  %v6078_v54 = vld [vmem:[%s10197_s16 + $0x38] sm:$0xff] }
 0x9d9   :  { %5963 = vmatpush1.msk.msra.mxu0 %vm3042_vm9, %v3028_v24  ;;  %v3299_v30 = vpop.f32.mrb[31].mxu1  ;;  %v3298_v42 = vadd.f32 %v3297_v27, %v3224_v34  ;;  %v6023_v24 = vld [vmem:[%s10198_s17 + $0x180] sm:$0xff]  ;;  %v6030_v27 = vld [vmem:[%s10198_s17 + $0x1b8] sm:$0xff] }
 0x9da   :  { %v3300_v60 = vadd.f32 %v3299_v30, %v3228_v23  ;;  %5964 = vmatmul.mubr.msk.f32.vlgmr.msra.gmra.mrb[28].mxu0 %vm3035_vm10, %v5960_v25  ;;  %5966 = vmatprep.subr.msk.mxu0 %vm3042_vm9, %v2941_v26  ;;  %v6079_v23 = vld [vmem:[%s10197_s16 + $0x40] sm:$0x3f]  ;;  %v6025_v25 = vld [vmem:[%s10198_s17 + $0x190] sm:$0xff]  ;;  %v6028_v26 = vld [vmem:[%s10198_s17 + $0x1a8] sm:$0xff] }
 0x9db   :  { %5967 = vmatpush1.msk.msra.mxu0 %vm3042_vm9, %v2939_v29  ;;  %3119 = vmatprep.mubr.f32.mxu0 %v7364_v28  ;;  %v6015_v29 = vld [vmem:[%s10197_s16 + $0x18] sm:$0xff]  ;;  %v6978_v30 = vpack.c.bf16 %v6025_v25, %v6023_v24  ;;  %v6064_v24 = vld [vmem:[%s10198_s17 + $0x2c8] sm:$0xff] }
 0x9dc   :  { %5976 = vmatprep.subr.msk.mxu0 %vm3042_vm9, %v3300_v60  ;;  %v3480_v33 = vpop.f32.mrb[32].mxu1  ;;  %v6980_v60 = vpack.c.bf16 %v6030_v27, %v6028_v26  ;;  %v6034_v34 = vld [vmem:[%s10198_s17 + $0x1d8] sm:$0xff]  ;;  %v6063_v27 = vld [vmem:[%s10198_s17 + $0x2c0] sm:$0xff] }
 0x9dd   :  { %v3482_v35 = vpop.f32.mrb[33].mxu1  ;;  %v3481_v55 = vadd.f32 %v3480_v33, %v3407_v49  ;;  %v6032_v33 = vld [vmem:[%s10198_s17 + $0x1c8] sm:$0xff]  ;;  %v6035_v49 = vld [vmem:[%s10198_s17 + $0x1e0] sm:$0xff]  ;;  %v6066_v25 = vld [vmem:[%s10198_s17 + $0x2d8] sm:$0xff] }
 0x9de   :  { %5965 = vmatmul.mubr.msk.f32.gmra.mrb[30].mxu0 %vm3035_vm10, %v5961_v32  ;;  %v3483_v46 = vadd.f32 %v3482_v35, %v3411_v36  ;;  %v6029_v32 = vld [vmem:[%s10198_s17 + $0x1b0] sm:$0xff]  ;;  %v6016_v35 = vld [vmem:[%s10197_s16 + $0x20] sm:$0xff]  ;;  %v7016_v26 = vpack.c.bf16 %v6066_v25, %v6064_v24  ;;  %v4075_v24 = vld [vmem:[%s10198_s17 + $0xb8] sm:$0xff] }
 0x9df   :  { %3202 = vmatprep.mubr.f32.mxu0 %v7364_v28  ;;  %v6982_v36 = vpack.c.bf16 %v6029_v32, %v6027_v31  ;;  %v6070_v31 = vld [vmem:[%s10198_s17 + $0x2f8] sm:$0xff] }
 0x9e0   :  { %v3663_v41 = vpop.f32.mrb[34].mxu1 }
 0x9e1   :  { %v3665_v44 = vpop.f32.mrb[35].mxu1  ;;  %v3664_v21 = vadd.f32 %v3663_v41, %v3590_v59  ;;  %v6031_v41 = vld [vmem:[%s10198_s17 + $0x1c0] sm:$0xff]  ;;  %v6044_v59 = vld [vmem:[%s10198_s17 + $0x228] sm:$0xff] }
 0x9e2   :  { %5968 = vmatmul.mubr.msk.f32.vlgmr.msra.gmra.mrb[28].mxu0 %vm3035_vm10, %v2943_v39  ;;  %v3666_v56 = vadd.f32 %v3665_v44, %v3594_v52  ;;  %v6984_v39 = vpack.c.bf16 %v6034_v34, %v6032_v33  ;;  %v6036_v44 = vld [vmem:[%s10198_s17 + $0x1e8] sm:$0xff]  ;;  %v6067_v33 = vld [vmem:[%s10198_s17 + $0x2e0] sm:$0xff]  ;;  %v6069_v34 = vld [vmem:[%s10198_s17 + $0x2f0] sm:$0xff] }
 0x9e3   :  { %5977 = vmatpush1.msk.msra.mxu0 %vm3042_vm9, %v3298_v42  ;;  %3208 = vmatprep.mubr.f32.mxu0 %v7364_v28  ;;  %v6033_v42 = vld [vmem:[%s10198_s17 + $0x1d0] sm:$0xff]  ;;  %v6040_v52 = vld [vmem:[%s10198_s17 + $0x208] sm:$0xff] }
 0x9e4   :  { %5986 = vmatprep.subr.msk.mxu0 %vm3042_vm9, %v3483_v46  ;;  %v3846_v48 = vpop.f32.mrb[36].mxu1  ;;  %v6038_v46 = vld [vmem:[%s10198_s17 + $0x1f8] sm:$0xff] }
 0x9e5   :  { %v3848_v51 = vpop.f32.mrb[37].mxu1  ;;  %v3847_v5 = vadd.f32 %v3846_v48, %v3773_v3  ;;  %v6988_v48 = vpack.c.bf16 %v6038_v46, %v6036_v44  ;;  %v6048_v3 = vld [vmem:[%s10198_s17 + $0x248] sm:$0xff] }
 0x9e6   :  { %5969 = vmatmul.mubr.msk.f32.gmra.mrb[30].mxu0 %vm3035_vm10, %v2944_v47  ;;  %v3849_v1 = vadd.f32 %v3848_v51, %v3777_v63  ;;  %v6986_v47 = vpack.c.bf16 %v6033_v42, %v6031_v41  ;;  %v6037_v51 = vld [vmem:[%s10198_s17 + $0x1f0] sm:$0xff]  ;;  %v6046_v63 = vld [vmem:[%s10198_s17 + $0x238] sm:$0xff] }
 0x9e7   :  { %3381 = vmatprep.mubr.f32.mxu0 %v7364_v28 }
 0x9ea   :  { %5978 = vmatmul.mubr.msk.f32.vlgmr.msra.gmra.mrb[28].mxu0 %vm3035_vm10, %v5974_v37  ;;  %v6042_v37 = vld [vmem:[%s10198_s17 + $0x218] sm:$0xff] }
 0x9eb   :  { %5987 = vmatpush1.msk.msra.mxu0 %vm3042_vm9, %v3481_v55  ;;  %3387 = vmatprep.mubr.f32.mxu0 %v7364_v28  ;;  %v6990_v55 = vpack.c.bf16 %v6037_v51, %v6035_v49 }
 0x9ec   :  { %5996 = vmatprep.subr.msk.mxu0 %vm3042_vm9, %v3666_v56  ;;  %v6992_v56 = vpack.c.bf16 %v6042_v37, %v6040_v52 }
 0x9ee   :  { %5979 = vmatmul.mubr.msk.f32.gmra.mrb[30].mxu0 %vm3035_vm10, %v5975_v58  ;;  %v6041_v58 = vld [vmem:[%s10198_s17 + $0x210] sm:$0xff] }
 0x9ef   :  { %3564 = vmatprep.mubr.f32.mxu0 %v7364_v28 }
 0x9f2   :  { %5988 = vmatmul.mubr.msk.f32.vlgmr.msra.gmra.mrb[28].mxu0 %vm3035_vm10, %v5984_v0  ;;  %v6994_v0 = vpack.c.bf16 %v6041_v58, %v6039_v57  ;;  %v4054_v57 = vld [vmem:[%s10198_s17 + $0x10] sm:$0xff] }
 0x9f3   :  { %5997 = vmatpush1.msk.msra.mxu0 %vm3042_vm9, %v3664_v21  ;;  %3570 = vmatprep.mubr.f32.mxu0 %v7364_v28  ;;  %v6996_v21 = vpack.c.bf16 %v6046_v63, %v6044_v59  ;;  %v4057_v59 = vld [vmem:[%s10198_s17 + $0x28] sm:$0xff]  ;;  %v4059_v63 = vld [vmem:[%s10198_s17 + $0x38] sm:$0xff] }
 0x9f4   :  { %6006 = vmatprep.subr.msk.mxu0 %vm3042_vm9, %v3849_v1  ;;  %v6043_v1 = vld [vmem:[%s10198_s17 + $0x220] sm:$0xff] }
 0x9f6   :  { %5989 = vmatmul.mubr.msk.f32.gmra.mrb[30].mxu0 %vm3035_vm10, %v5985_v2  ;;  %v6045_v2 = vld [vmem:[%s10198_s17 + $0x230] sm:$0xff] }
 0x9f7   :  { %3747 = vmatprep.mubr.f32.mxu0 %v7364_v28 }
 0x9fa   :  { %5998 = vmatmul.mubr.msk.f32.vlgmr.msra.gmra.mrb[28].mxu0 %vm3035_vm10, %v5994_v4  ;;  %v6050_v4 = vld [vmem:[%s10198_s17 + $0x258] sm:$0xff] }
 0x9fb   :  { %6007 = vmatpush1.msk.msra.mxu0 %vm3042_vm9, %v3847_v5  ;;  %3753 = vmatprep.mubr.f32.mxu0 %v7364_v28  ;;  %v6998_v5 = vpack.c.bf16 %v6045_v2, %v6043_v1  ;;  %v7028_v2 = vpack.c.bf16 %v4059_v63, %v4057_v59  ;;  %v4087_v59 = vld [vmem:[%s10198_s17 + $0x118] sm:$0xff] }
 0x9fe   :  { %5999 = vmatmul.mubr.msk.f32.gmra.mrb[30].mxu0 %vm3035_vm10, %v5995_v7  ;;  %v7000_v7 = vpack.c.bf16 %v6050_v4, %v6048_v3  ;;  %v4056_v3 = vld [vmem:[%s10198_s17 + $0x20] sm:$0xff]  ;;  %v4058_v4 = vld [vmem:[%s10198_s17 + $0x30] sm:$0xff] }
 0x9ff   :  { %3930 = vmatprep.mubr.f32.mxu0 %v7364_v28 }
 0xa02   :  { %6008 = vmatmul.mubr.msk.f32.vlgmr.msra.gmra.mrb[28].mxu0 %vm3035_vm10, %v6004_v8  ;;  %v6047_v8 = vld [vmem:[%s10198_s17 + $0x240] sm:$0xff] }
 0xa03   :  { %3936 = vmatprep.mubr.f32.mxu0 %v7364_v28 }
 0xa06   :  { %6009 = vmatmul.mubr.msk.f32.gmra.mrb[30].mxu0 %vm3035_vm10, %v6005_v9  ;;  %v6049_v9 = vld [vmem:[%s10198_s17 + $0x250] sm:$0xff] }
 0xa07   :  { %4506 = vmatprep.mubr.f32.mxu0 %v7364_v28 }
 0xad5   :  { %v3932_v10 = vpop.f32.mrb[28].mxu0 }
 0xad6   :  { %v3934_v11 = vpop.f32.mrb[29].mxu0  ;;  %v3947_v45 = vmax.f32 %v3932_v10, 0.0  ;;  %v6052_v10 = vld [vmem:[%s10198_s17 + $0x268] sm:$0xff] }
 0xad7   :  { %v3948_v50 = vmax.f32 %v3934_v11, 0.0  ;;  %v6054_v11 = vld [vmem:[%s10198_s17 + $0x278] sm:$0xff] }
 0xad9   :  { %v3938_v12 = vpop.f32.mrb[30].mxu0 }
 0xada   :  { %v3949_v62 = vmax.f32 %v3938_v12, 0.0  ;;  %v3940_v40 = vpop.f32.mrb[31].mxu0  ;;  %v7002_v12 = vpack.c.bf16 %v6049_v9, %v6047_v8  ;;  %v7030_v9 = vpack.c.bf16 %v4058_v4, %v4056_v3  ;;  %v4091_v3 = vld [vmem:[%s10198_s17 + $0x138] sm:$0xff] }
 0xadb   :  { %v3950_v13 = vmax.f32 %v3940_v40, 0.0  ;;  %v6053_v40 = vld [vmem:[%s10198_s17 + $0x270] sm:$0xff] }
 0xadc   :  { %v6967_v15 = vpack.c.bf16 %v3949_v62, %v3947_v45  ;;  %v7004_v45 = vpack.c.bf16 %v6054_v11, %v6052_v10  ;;  %v6051_v62 = vld [vmem:[%s10198_s17 + $0x260] sm:$0xff] }
 0xadd   :  { %v6964_v16 = vpack.c.bf16 %v3950_v13, %v3948_v50  ;;  %v6056_v50 = vld [vmem:[%s10198_s17 + $0x288] sm:$0xff]  ;;  %v6058_v13 = vld [vmem:[%s10198_s17 + $0x298] sm:$0xff] }
 0xadf   :  { %6966 = vmatprep.subr.msk.bf16.mxu1 %vm7983_vm4, %v6964_v16  ;;  %7074 = vmatprep.subr.msk.bf16.mxu0 %vm7983_vm4, %v6964_v16 }
 0xae0   :  { %6969 = vmatpush1.bf16.msk.msra.mxu1 %vm7983_vm4, %v6967_v15  ;;  %7077 = vmatpush1.bf16.msk.msra.mxu0 %vm7983_vm4, %v6967_v15 }
 0xae1   :  { %6972 = vmatprep.subr.msk.bf16.mxu1 %vm7983_vm4, %v6964_v16  ;;  %v7008_v16 = vpack.c.bf16 %v6058_v13, %v6056_v50 }
 0xae3   :  { %6012 = vmatmul.mubr.msk.f32.vlgmr.msra.gmra.mrb[38].mxu1 %vm1202_vm5, %v3951_v19  ;;  %6082 = vmatmul.mubr.msk.f32.vlgmr.msra.gmra.mrb[32].mxu0 %vm1202_vm5, %v6077_v20  ;;  %v7010_v19 = vpack.c.bf16 %v6057_v18, %v6055_v17  ;;  %v6060_v20 = vld [vmem:[%s10198_s17 + $0x2a8] sm:$0xff]  ;;  %v4064_v17 = vld [vmem:[%s10198_s17 + $0x60] sm:$0xff]  ;;  %v4066_v18 = vld [vmem:[%s10198_s17 + $0x70] sm:$0xff] }
 0xae4   :  { %6975 = vmatpush1.bf16.msk.msra.mxu1 %vm7983_vm4, %v6967_v15  ;;  %4039 = vmatprep.mubr.f32.mxu1 %v7364_v28  ;;  %v7006_v15 = vpack.c.bf16 %v6053_v40, %v6051_v62  ;;  %v4065_v62 = vld [vmem:[%s10198_s17 + $0x68] sm:$0xff]  ;;  %v4067_v40 = vld [vmem:[%s10198_s17 + $0x78] sm:$0xff] }
 0xae5   :  { %4512 = vmatprep.mubr.f32.mxu0 %v7364_v28  ;;  %6977 = vmatprep.subr.bf16.mxu1 %v6976_v22  ;;  %v6062_v22 = vld [vmem:[%s10198_s17 + $0x2b8] sm:$0xff] }
 0xae7   :  { %6013 = vmatmul.mubr.msk.f32.gmra.mrb[40].mxu1 %vm1202_vm5, %v3952_v53  ;;  %6083 = vmatmul.mubr.msk.f32.gmra.mrb[34].mxu0 %vm1202_vm5, %v6078_v54  ;;  %v7012_v53 = vpack.c.bf16 %v6062_v22, %v6060_v20  ;;  %v6059_v54 = vld [vmem:[%s10198_s17 + $0x2a0] sm:$0xff]  ;;  %v4071_v20 = vld [vmem:[%s10198_s17 + $0x98] sm:$0xff]  ;;  %v7038_v22 = vpack.c.bf16 %v4066_v18, %v4064_v17  ;;  %v4098_v17 = vld [vmem:[%s10198_s17 + $0x170] sm:$0xff] }
 0xae8   :  { %4045 = vmatprep.mubr.f32.mxu1 %v7364_v28  ;;  %4518 = vmatprep.mubr.f32.mxu0 %v7364_v28  ;;  %v6086_v18 = vld [vmem:[%s10198_s17 + $0x308] sm:$0xff] }
 0xaeb   :  { %6014 = vmatmul.mubr.msk.f32.gmra.mrb[42].mxu1 %vm1202_vm5, %v3953_v61  ;;  %6084 = vmatmul.mubr.msk.f32.gmra.mrb[36].mxu0 %vm1202_vm5, %v6079_v23  ;;  %v6061_v61 = vld [vmem:[%s10198_s17 + $0x2b0] sm:$0xff] }
 0xaec   :  { %4177 = vmatprep.mubr.f32.mxu1 %v7364_v28  ;;  %4792 = vmatprep.mubr.f32.mxu0 %v7364_v28  ;;  %v7014_v23 = vpack.c.bf16 %v6061_v61, %v6059_v54  ;;  %v4068_v54 = vld [vmem:[%s10198_s17 + $0x80] sm:$0xff]  ;;  %v4070_v61 = vld [vmem:[%s10198_s17 + $0x90] sm:$0xff] }
 0xaed   :  { %v7042_v25 = vpack.c.bf16 %v4070_v61, %v4068_v54  ;;  %v6087_v54 = vld [vmem:[%s10198_s17 + $0x310] sm:$0xff]  ;;  %v6090_v61 = vld [vmem:[%s10198_s17 + $0x328] sm:$0xff] }
 0xaef   :  { %6020 = vmatmul.mubr.msk.f32.vlgmr.msra.gmra.mrb[44].mxu1 %vm1202_vm5, %v6015_v29  ;;  %v6065_v29 = vld [vmem:[%s10198_s17 + $0x2d0] sm:$0xff] }
 0xaf0   :  { %4183 = vmatprep.mubr.f32.mxu1 %v7364_v28  ;;  %6979 = vmatpush1.bf16.msra.mxu1 %v6978_v30  ;;  %v7018_v30 = vpack.c.bf16 %v6065_v29, %v6063_v27  ;;  %v4072_v27 = vld [vmem:[%s10198_s17 + $0xa0] sm:$0xff]  ;;  %v4074_v29 = vld [vmem:[%s10198_s17 + $0xb0] sm:$0xff] }
 0xaf1   :  { %6981 = vmatprep.subr.bf16.mxu1 %v6980_v60  ;;  %v6068_v60 = vld [vmem:[%s10198_s17 + $0x2e8] sm:$0xff] }
 0xaf2   :  { %v7020_v32 = vpack.c.bf16 %v6070_v31, %v6068_v60  ;;  %v4079_v60 = vld [vmem:[%s10198_s17 + $0xd8] sm:$0xff]  ;;  %v7046_v31 = vpack.c.bf16 %v4074_v29, %v4072_v27  ;;  %v6091_v27 = vld [vmem:[%s10198_s17 + $0x330] sm:$0xff]  ;;  %v6094_v29 = vld [vmem:[%s10198_s17 + $0x348] sm:$0xff] }
 0xaf3   :  { %6021 = vmatmul.mubr.msk.f32.gmra.mrb[46].mxu1 %vm1202_vm5, %v6016_v35  ;;  %v7022_v35 = vpack.c.bf16 %v6069_v34, %v6067_v33  ;;  %v4076_v33 = vld [vmem:[%s10198_s17 + $0xc0] sm:$0xff]  ;;  %v4078_v34 = vld [vmem:[%s10198_s17 + $0xd0] sm:$0xff] }
 0xaf4   :  { %4189 = vmatprep.mubr.f32.mxu1 %v7364_v28  ;;  %6983 = vmatpush1.bf16.msra.mxu1 %v6982_v36  ;;  %v4053_v36 = vld [vmem:[%s10198_s17 + $0x8] sm:$0xff] }
 0xaf5   :  { %6985 = vmatprep.subr.bf16.mxu1 %v6984_v39  ;;  %v4055_v39 = vld [vmem:[%s10198_s17 + $0x18] sm:$0xff] }
 0xaf6   :  { %v7024_v41 = vpack.c.bf16 %v4055_v39, %v4053_v36  ;;  %v4083_v36 = vld [vmem:[%s10198_s17 + $0xf8] sm:$0xff]  ;;  %v7050_v39 = vpack.c.bf16 %v4078_v34, %v4076_v33  ;;  %v6095_v33 = vld [vmem:[%s10198_s17 + $0x350] sm:$0xff]  ;;  %v6098_v34 = vld [vmem:[%s10198_s17 + $0x368] sm:$0xff] }
 0xaf7   :  { %6022 = vmatmul.mubr.msk.f32.gmra.mrb[48].mxu1 %vm1202_vm5, %v6017_v14 }
 0xaf8   :  { %6987 = vmatpush1.bf16.msra.mxu1 %v6986_v47 }
 0xaf9   :  { %6989 = vmatprep.subr.bf16.mxu1 %v6988_v48 }
 0xafc   :  { %6991 = vmatpush1.bf16.msra.mxu1 %v6990_v55 }
 0xafd   :  { %6993 = vmatprep.subr.bf16.mxu1 %v6992_v56  ;;  %v4052_v56 = vld [vmem:[%s10198_s17] sm:$0xff] }
 0xb00   :  { %6995 = vmatpush1.bf16.msra.mxu1 %v6994_v0 }
 0xb01   :  { %6997 = vmatprep.subr.bf16.mxu1 %v6996_v21  ;;  %v7026_v21 = vpack.c.bf16 %v4054_v57, %v4052_v56  ;;  %v4082_v56 = vld [vmem:[%s10198_s17 + $0xf0] sm:$0xff]  ;;  %v4085_v57 = vld [vmem:[%s10198_s17 + $0x108] sm:$0xff] }
 0xb04   :  { %6999 = vmatpush1.bf16.msra.mxu1 %v6998_v5  ;;  %v4061_v5 = vld [vmem:[%s10198_s17 + $0x48] sm:$0xff] }
 0xb05   :  { %7001 = vmatprep.subr.bf16.mxu1 %v7000_v7  ;;  %v4063_v7 = vld [vmem:[%s10198_s17 + $0x58] sm:$0xff] }
 0xb06   :  { %v7032_v11 = vpack.c.bf16 %v4063_v7, %v4061_v5  ;;  %v4088_v7 = vld [vmem:[%s10198_s17 + $0x120] sm:$0xff] }
 0xb08   :  { %7003 = vmatpush1.bf16.msra.mxu1 %v7002_v12  ;;  %v4060_v12 = vld [vmem:[%s10198_s17 + $0x40] sm:$0xff] }
 0xb09   :  { %7005 = vmatprep.subr.bf16.mxu1 %v7004_v45  ;;  %v4062_v45 = vld [vmem:[%s10198_s17 + $0x50] sm:$0xff] }
 0xb0a   :  { %v7034_v13 = vpack.c.bf16 %v4062_v45, %v4060_v12  ;;  %v4092_v45 = vld [vmem:[%s10198_s17 + $0x140] sm:$0xff] }
 0xb0c   :  { %7007 = vmatpush1.bf16.msra.mxu1 %v7006_v15 }
 0xb0d   :  { %7009 = vmatprep.subr.bf16.mxu1 %v7008_v16  ;;  %v7036_v16 = vpack.c.bf16 %v4067_v40, %v4065_v62  ;;  %v4094_v62 = vld [vmem:[%s10198_s17 + $0x150] sm:$0xff]  ;;  %v4097_v40 = vld [vmem:[%s10198_s17 + $0x168] sm:$0xff] }
 0xb10   :  { %7011 = vmatpush1.bf16.msra.mxu1 %v7010_v19  ;;  %v4069_v19 = vld [vmem:[%s10198_s17 + $0x88] sm:$0xff] }
 0xb11   :  { %7013 = vmatprep.subr.bf16.mxu1 %v7012_v53  ;;  %v7040_v53 = vpack.c.bf16 %v4071_v20, %v4069_v19  ;;  %v6088_v19 = vld [vmem:[%s10198_s17 + $0x318] sm:$0xff] }
 0xb14   :  { %7015 = vmatpush1.bf16.msra.mxu1 %v7014_v23  ;;  %v4073_v23 = vld [vmem:[%s10198_s17 + $0xa8] sm:$0xff] }
 0xb15   :  { %7017 = vmatprep.subr.bf16.mxu1 %v7016_v26  ;;  %v7044_v26 = vpack.c.bf16 %v4075_v24, %v4073_v23  ;;  %v6092_v23 = vld [vmem:[%s10198_s17 + $0x338] sm:$0xff] }
 0xb18   :  { %7019 = vmatpush1.bf16.msra.mxu1 %v7018_v30  ;;  %v4077_v30 = vld [vmem:[%s10198_s17 + $0xc8] sm:$0xff] }
 0xb19   :  { %7021 = vmatprep.subr.bf16.mxu1 %v7020_v32  ;;  %v7048_v32 = vpack.c.bf16 %v4079_v60, %v4077_v30  ;;  %v6096_v30 = vld [vmem:[%s10198_s17 + $0x358] sm:$0xff] }
 0xb1c   :  { %7023 = vmatpush1.bf16.msra.mxu1 %v7022_v35  ;;  %v4081_v35 = vld [vmem:[%s10198_s17 + $0xe8] sm:$0xff] }
 0xb1d   :  { %7025 = vmatprep.subr.bf16.mxu1 %v7024_v41  ;;  %v7052_v41 = vpack.c.bf16 %v4083_v36, %v4081_v35  ;;  %v6097_v36 = vld [vmem:[%s10198_s17 + $0x360] sm:$0xff] }
 0xbb6   :  { %v9384_v42 = vpop.f32.mrb[38].mxu1  ;;  %v9386_v44 = vpop.f32.mrb[32].mxu0 }
 0xbb7   :  { %v4037_v46 = vpop.f32.mrb[39].mxu1  ;;  %v9388_v14 = vpop.f32.mrb[33].mxu0 }
 0xbba   :  { %v9390_v47 = vpop.f32.mrb[40].mxu1  ;;  %v9392_v48 = vpop.f32.mrb[34].mxu0 }
 0xbbb   :  { %v9394_v49 = vpop.f32.mrb[41].mxu1  ;;  %v9396_v51 = vpop.f32.mrb[35].mxu0 }
 0xbbe   :  { %v9398_v52 = vpop.f32.mrb[42].mxu1  ;;  %v9400_v37 = vpop.f32.mrb[36].mxu0 }
 0xbbf   :  { %v9402_v55 = vpop.f32.mrb[43].mxu1  ;;  %v9410_v58 = vpop.f32.mrb[37].mxu0 }
 0xbc2   :  { %v4179_v0 = vpop.f32.mrb[44].mxu1 }
 0xbc3   :  { %v4181_v1 = vpop.f32.mrb[45].mxu1 }
 0xbc4   :  { %6071 = vmatprep.mubr.msk.f32.mxu1 %vm1433_vm6, %v4181_v1  ;;  %v4086_v1 = vld [vmem:[%s10198_s17 + $0x110] sm:$0xff] }
 0xbc5   :  { %4319 = vmatmul.mubr.f32.vlgmr.msra.gmra.mrb[50].mxu1 %v4179_v0  ;;  %v7056_v0 = vpack.c.bf16 %v4087_v59, %v4085_v57  ;;  %v6103_v57 = vld [vmem:[%s10198_s17 + $0x390] sm:$0xff]  ;;  %v6106_v59 = vld [vmem:[%s10198_s17 + $0x3a8] sm:$0xff] }
 0xbc6   :  { %7027 = vmatpush1.bf16.msra.mxu1 %v7026_v21  ;;  %v4185_v8 = vpop.f32.mrb[46].mxu1  ;;  %v4084_v21 = vld [vmem:[%s10198_s17 + $0x100] sm:$0xff] }
 0xbc7   :  { %v4187_v10 = vpop.f32.mrb[47].mxu1  ;;  %7029 = vmatprep.subr.bf16.mxu1 %v7028_v2  ;;  %v4089_v2 = vld [vmem:[%s10198_s17 + $0x128] sm:$0xff]  ;;  %v7058_v4 = vpack.c.bf16 %v4086_v1, %v4084_v21  ;;  %v6107_v21 = vld [vmem:[%s10198_s17 + $0x3b0] sm:$0xff] }
 0xbc8   :  { %6072 = vmatprep.mubr.msk.f32.mxu1 %vm1433_vm6, %v4187_v10  ;;  %v7060_v5 = vpack.c.bf16 %v4091_v3, %v4089_v2  ;;  %v4095_v10 = vld [vmem:[%s10198_s17 + $0x158] sm:$0xff]  ;;  %v6110_v1 = vld [vmem:[%s10198_s17 + $0x3c8] sm:$0xff] }
 0xbc9   :  { %4325 = vmatmul.mubr.f32.gmra.mrb[52].mxu1 %v4185_v8  ;;  %v4090_v8 = vld [vmem:[%s10198_s17 + $0x130] sm:$0xff]  ;;  %v6112_v2 = vld [vmem:[%s10198_s17 + $0x3d8] sm:$0xff] }
 0xbca   :  { %7031 = vmatpush1.bf16.msra.mxu1 %v7030_v9  ;;  %v4191_v50 = vpop.f32.mrb[48].mxu1  ;;  %v4093_v9 = vld [vmem:[%s10198_s17 + $0x148] sm:$0xff] }
 0xbcb   :  { %v4193_v15 = vpop.f32.mrb[49].mxu1  ;;  %7033 = vmatprep.subr.bf16.mxu1 %v7032_v11  ;;  %v7062_v11 = vpack.c.bf16 %v4090_v8, %v4088_v7  ;;  %v7064_v12 = vpack.c.bf16 %v4095_v10, %v4093_v9  ;;  %v6111_v7 = vld [vmem:[%s10198_s17 + $0x3d0] sm:$0xff]  ;;  %v6114_v8 = vld [vmem:[%s10198_s17 + $0x3e8] sm:$0xff]  ;;  %v6116_v9 = vld [vmem:[%s10198_s17 + $0x3f8] sm:$0xff] }
 0xbcc   :  { %6073 = vmatprep.mubr.msk.f32.mxu1 %vm1433_vm6, %v4193_v15 }
 0xbcd   :  { %4331 = vmatmul.mubr.f32.gmra.mrb[54].mxu1 %v4191_v50  ;;  %v4099_v50 = vld [vmem:[%s10198_s17 + $0x178] sm:$0xff] }
 0xbce   :  { %7035 = vmatpush1.bf16.msra.mxu1 %v7034_v13  ;;  %6074 = vmatprep.mubr.msk.f32.mxu1 %vm1433_vm6, %v4037_v46  ;;  %v4080_v46 = vld [vmem:[%s10198_s17 + $0xe0] sm:$0xff]  ;;  %v7066_v13 = vpack.c.bf16 %v4094_v62, %v4092_v45  ;;  %v7068_v15 = vpack.c.bf16 %v4099_v50, %v4097_v40  ;;  %v6115_v45 = vld [vmem:[%s10198_s17 + $0x3f0] sm:$0xff]  ;;  %v6118_v62 = vld [vmem:[%s10198_s17 + $0x408] sm:$0xff] }
 0xbcf   :  { %7037 = vmatprep.subr.bf16.mxu1 %v7036_v16  ;;  %v7054_v63 = vpack.c.bf16 %v4082_v56, %v4080_v46  ;;  %v4096_v16 = vld [vmem:[%s10198_s17 + $0x160] sm:$0xff]  ;;  %v6120_v40 = vld [vmem:[%s10198_s17 + $0x418] sm:$0xff] }
 0xbd0   :  { %v7070_v20 = vpack.c.bf16 %v4098_v17, %v4096_v16  ;;  %v6101_v56 = vld [vmem:[%s10198_s17 + $0x380] sm:$0xff]  ;;  %v6119_v16 = vld [vmem:[%s10198_s17 + $0x410] sm:$0xff]  ;;  %v6122_v17 = vld [vmem:[%s10198_s17 + $0x428] sm:$0xff] }
 0xbd2   :  { %7039 = vmatpush1.bf16.msra.mxu1 %v7038_v22  ;;  %v7078_v22 = vpack.c.bf16 %v6088_v19, %v6086_v18  ;;  %v6124_v18 = vld [vmem:[%s10198_s17 + $0x438] sm:$0xff] }
 0xbd3   :  { %7041 = vmatprep.subr.bf16.mxu1 %v7040_v53  ;;  %v6085_v53 = vld [vmem:[%s10198_s17 + $0x300] sm:$0xff] }
 0xbd4   :  { %v7080_v24 = vpack.c.bf16 %v6087_v54, %v6085_v53  ;;  %v6123_v53 = vld [vmem:[%s10198_s17 + $0x430] sm:$0xff]  ;;  %v6126_v54 = vld [vmem:[%s10198_s17 + $0x448] sm:$0xff] }
 0xbd6   :  { %7043 = vmatpush1.bf16.msra.mxu1 %v7042_v25  ;;  %v7082_v25 = vpack.c.bf16 %v6092_v23, %v6090_v61  ;;  %v6128_v61 = vld [vmem:[%s10198_s17 + $0x458] sm:$0xff] }
 0xbd7   :  { %7045 = vmatprep.subr.bf16.mxu1 %v7044_v26  ;;  %v6089_v26 = vld [vmem:[%s10198_s17 + $0x320] sm:$0xff] }
 0xbd8   :  { %v7084_v60 = vpack.c.bf16 %v6091_v27, %v6089_v26  ;;  %v6127_v26 = vld [vmem:[%s10198_s17 + $0x450] sm:$0xff]  ;;  %v6130_v27 = vld [vmem:[%s10198_s17 + $0x468] sm:$0xff] }
 0xbda   :  { %7047 = vmatpush1.bf16.msra.mxu1 %v7046_v31  ;;  %v7086_v31 = vpack.c.bf16 %v6096_v30, %v6094_v29  ;;  %v6132_v29 = vld [vmem:[%s10198_s17 + $0x478] sm:$0xff] }
 0xbdb   :  { %7049 = vmatprep.subr.bf16.mxu1 %v7048_v32  ;;  %v6093_v32 = vld [vmem:[%s10198_s17 + $0x340] sm:$0xff] }
 0xbde   :  { %7051 = vmatpush1.bf16.msra.mxu1 %v7050_v39  ;;  %v6099_v39 = vld [vmem:[%s10198_s17 + $0x370] sm:$0xff] }
 0xbdf   :  { %7053 = vmatprep.subr.bf16.mxu1 %v7052_v41  ;;  %v6102_v41 = vld [vmem:[%s10198_s17 + $0x388] sm:$0xff] }
 0xbe2   :  { %7055 = vmatpush1.bf16.msra.mxu1 %v7054_v63 }
 0xbe3   :  { %7057 = vmatprep.subr.bf16.mxu1 %v7056_v0  ;;  %v6105_v0 = vld [vmem:[%s10198_s17 + $0x3a0] sm:$0xff] }
 0xbe4   :  { %v7100_v3 = vpack.c.bf16 %v6107_v21, %v6105_v0  ;;  %v4696_v0 = vld [vmem:[%s10200_s19] sm:$0xff]  ;;  %v4698_v21 = vld [vmem:[%s10200_s19 + $0x10] sm:$0xff] }
 0xbe6   :  { %7059 = vmatpush1.bf16.msra.mxu1 %v7058_v4  ;;  %v7102_v4 = vpack.c.bf16 %v6112_v2, %v6110_v1  ;;  %v4697_v1 = vld [vmem:[%s10200_s19 + $0x8] sm:$0xff]  ;;  %v4699_v2 = vld [vmem:[%s10200_s19 + $0x18] sm:$0xff] }
 0xbe7   :  { %7061 = vmatprep.subr.bf16.mxu1 %v7060_v5  ;;  %v6109_v5 = vld [vmem:[%s10198_s17 + $0x3c0] sm:$0xff] }
 0xbe8   :  { %v7104_v10 = vpack.c.bf16 %v6111_v7, %v6109_v5  ;;  %v6144_v5 = vld [vmem:[%s10200_s19 + $0x30] sm:$0xff]  ;;  %v4700_v7 = vld [vmem:[%s10200_s19 + $0x20] sm:$0xff] }
 0xbea   :  { %7063 = vmatpush1.bf16.msra.mxu1 %v7062_v11  ;;  %v7106_v11 = vpack.c.bf16 %v6116_v9, %v6114_v8  ;;  %v6160_v9 = vld [vmem:[%s10201_s20 + $0xc0] sm:$0xff] }
 0xbeb   :  { %7065 = vmatprep.subr.bf16.mxu1 %v7064_v12  ;;  %v6113_v12 = vld [vmem:[%s10198_s17 + $0x3e0] sm:$0xff] }
 0xbec   :  { %v7108_v50 = vpack.c.bf16 %v6115_v45, %v6113_v12  ;;  %v4701_v12 = vld [vmem:[%s10200_s19 + $0x28] sm:$0xf] }
 0xbee   :  { %7067 = vmatpush1.bf16.msra.mxu1 %v7066_v13  ;;  %v7110_v13 = vpack.c.bf16 %v6120_v40, %v6118_v62  ;;  %v6162_v62 = vld [vmem:[%s10201_s20 + $0xd0] sm:$0xff]  ;;  %v6163_v40 = vld [vmem:[%s10201_s20 + $0xd8] sm:$0xff] }
 0xbef   :  { %7069 = vmatprep.subr.bf16.mxu1 %v7068_v15  ;;  %v6117_v15 = vld [vmem:[%s10198_s17 + $0x400] sm:$0xff] }
 0xbf0   :  { %v7112_v19 = vpack.c.bf16 %v6119_v16, %v6117_v15  ;;  %v7141_v15 = vpack.c.bf16 %v6163_v40, %v6162_v62  ;;  %v6164_v16 = vld [vmem:[%s10201_s20 + $0xe0] sm:$0xff] }
 0xbf2   :  { %7071 = vmatpush1.bf16.msra.mxu1 %v7070_v20  ;;  %v7114_v20 = vpack.c.bf16 %v6124_v18, %v6122_v17  ;;  %v6165_v17 = vld [vmem:[%s10201_s20 + $0xe8] sm:$0xff] }
 0xbf3   :  { %7079 = vmatprep.subr.bf16.mxu1 %v7078_v22  ;;  %v6121_v22 = vld [vmem:[%s10198_s17 + $0x420] sm:$0xff]  ;;  %v6147_v18 = vld [vmem:[%s10200_s19 + $0x48] sm:$0xff] }
 0xbf4   :  { %v7116_v23 = vpack.c.bf16 %v6123_v53, %v6121_v22  ;;  %v6166_v22 = vld [vmem:[%s10201_s20 + $0xf0] sm:$0xff]  ;;  %v6167_v53 = vld [vmem:[%s10201_s20 + $0xf8] sm:$0xff] }
 0xbf5   :  { %4411 = vmatmul.mubr.f32.vlgmr.msra.gmra.mrb[50].mxu1 %v9384_v42  ;;  %v6100_v42 = vld [vmem:[%s10198_s17 + $0x378] sm:$0xff] }
 0xbf6   :  { %6075 = vmatprep.mubr.msk.f32.mxu1 %vm1433_vm6, %v9394_v49  ;;  %7081 = vmatpush1.bf16.msra.mxu1 %v7080_v24  ;;  %v7088_v49 = vpack.c.bf16 %v6095_v33, %v6093_v32  ;;  %v7090_v35 = vpack.c.bf16 %v6100_v42, %v6098_v34  ;;  %v7118_v24 = vpack.c.bf16 %v6128_v61, %v6126_v54  ;;  %v6131_v32 = vld [vmem:[%s10198_s17 + $0x470] sm:$0xff]  ;;  %v4672_v34 = vld [vmem:[%s10199_s18] sm:$0x3] }
 0xbf7   :  { %7083 = vmatprep.subr.bf16.mxu1 %v7082_v25  ;;  %v6125_v25 = vld [vmem:[%s10198_s17 + $0x440] sm:$0xff]  ;;  %v4677_v42 = vrot.slane %v4672_v34, %v7972_v38  ;;  %v6148_v54 = vld [vmem:[%s10200_s19 + $0x50] sm:$0xff] }
 0xbf8   :  { %v7120_v30 = vpack.c.bf16 %v6127_v26, %v6125_v25  ;;  %v6194_v61 = vld [vmem:[%s10200_s19 + $0x70] sm:$0xff]  ;;  %v6169_v25 = vld [vmem:[%s10201_s20 + $0x108] sm:$0xff]  ;;  %v6149_v26 = vld [vmem:[%s10200_s19 + $0x58] sm:$0xf] }
 0xbf9   :  { %4417 = vmatmul.mubr.f32.gmra.mrb[52].mxu1 %v9390_v47  ;;  %v6104_v47 = vld [vmem:[%s10198_s17 + $0x398] sm:$0xff] }
 0xbfa   :  { %6076 = vmatprep.mubr.msk.f32.mxu1 %vm1433_vm6, %v9402_v55  ;;  %7085 = vmatpush1.bf16.msra.mxu1 %v7084_v60  ;;  %v7092_v55 = vpack.c.bf16 %v6099_v39, %v6097_v36  ;;  %v7094_v46 = vpack.c.bf16 %v6104_v47, %v6102_v41  ;;  %v7122_v60 = vpack.c.bf16 %v6132_v29, %v6130_v27  ;;  %v6195_v27 = vld [vmem:[%s10200_s19 + $0x78] sm:$0xff] }
 0xbfb   :  { %7087 = vmatprep.subr.bf16.mxu1 %v7086_v31  ;;  %v6129_v31 = vld [vmem:[%s10198_s17 + $0x460] sm:$0xff] }
 0xbfc   :  { %v7124_v33 = vpack.c.bf16 %v6131_v32, %v6129_v31  ;;  %v6196_v31 = vld [vmem:[%s10200_s19 + $0x80] sm:$0xff] }
 0xbfd   :  { %4423 = vmatmul.mubr.f32.gmra.mrb[54].mxu1 %v9398_v52  ;;  %v6108_v52 = vld [vmem:[%s10198_s17 + $0x3b8] sm:$0xff] }
 0xbfe   :  { %7089 = vmatpush1.bf16.msra.mxu1 %v7088_v49  ;;  %6133 = vmatprep.mubr.msk.f32.mxu1 %vm1433_vm6, %v9388_v14  ;;  %v7096_v14 = vpack.c.bf16 %v6103_v57, %v6101_v56  ;;  %v7098_v63 = vpack.c.bf16 %v6108_v52, %v6106_v59 }
 0xbff   :  { %7091 = vmatprep.subr.bf16.mxu1 %v7090_v35 }
 0xc02   :  { %7093 = vmatpush1.bf16.msra.mxu1 %v7092_v55 }
 0xc03   :  { %7095 = vmatprep.subr.bf16.mxu1 %v7094_v46 }
 0xc06   :  { %7097 = vmatpush1.bf16.msra.mxu1 %v7096_v14 }
 0xc07   :  { %7099 = vmatprep.subr.bf16.mxu1 %v7098_v63 }
 0xc0a   :  { %7101 = vmatpush1.bf16.msra.mxu1 %v7100_v3  ;;  %v6158_v3 = vld [vmem:[%s10201_s20 + $0xb0] sm:$0xff] }
 0xc0b   :  { %7103 = vmatprep.subr.bf16.mxu1 %v7102_v4  ;;  %v6159_v4 = vld [vmem:[%s10201_s20 + $0xb8] sm:$0xff] }
 0xc0c   :  { %v7135_v8 = vpack.c.bf16 %v6159_v4, %v6158_v3 }
 0xc0e   :  { %7105 = vmatpush1.bf16.msra.mxu1 %v7104_v10  ;;  %v6161_v10 = vld [vmem:[%s10201_s20 + $0xc8] sm:$0xff] }
 0xc0f   :  { %7107 = vmatprep.subr.bf16.mxu1 %v7106_v11  ;;  %v6145_v11 = vld [vmem:[%s10200_s19 + $0x38] sm:$0xff]  ;;  %v7138_v45 = vpack.c.bf16 %v6161_v10, %v6160_v9  ;;  %v4833_v9 = vld [vmem:[%s10201_s20 + $0x20] sm:$0xff]  ;;  %v4834_v10 = vld [vmem:[%s10201_s20 + $0x28] sm:$0xff] }
 0xc12   :  { %7109 = vmatpush1.bf16.msra.mxu1 %v7108_v50  ;;  %v6146_v50 = vld [vmem:[%s10200_s19 + $0x40] sm:$0xff] }
 0xc13   :  { %7111 = vmatprep.subr.bf16.mxu1 %v7110_v13  ;;  %v6192_v13 = vld [vmem:[%s10200_s19 + $0x60] sm:$0xff] }
 0xc16   :  { %7113 = vmatpush1.bf16.msra.mxu1 %v7112_v19  ;;  %v6193_v19 = vld [vmem:[%s10200_s19 + $0x68] sm:$0xff] }
 0xc17   :  { %7115 = vmatprep.subr.bf16.mxu1 %v7114_v20  ;;  %v7144_v20 = vpack.c.bf16 %v6165_v17, %v6164_v16 }
 0xc1a   :  { %7117 = vmatpush1.bf16.msra.mxu1 %v7116_v23  ;;  %v7147_v23 = vpack.c.bf16 %v6167_v53, %v6166_v22  ;;  %v4838_v22 = vld [vmem:[%s10201_s20 + $0x48] sm:$0xff] }
 0xc1b   :  { %7119 = vmatprep.subr.bf16.mxu1 %v7118_v24  ;;  %v6168_v24 = vld [vmem:[%s10201_s20 + $0x100] sm:$0xff] }
 0xc1c   :  { %v7150_v29 = vpack.c.bf16 %v6169_v25, %v6168_v24  ;;  %v4839_v25 = vld [vmem:[%s10201_s20 + $0x50] sm:$0xff] }
 0xc1e   :  { %7121 = vmatpush1.bf16.msra.mxu1 %v7120_v30  ;;  %v6170_v30 = vld [vmem:[%s10201_s20 + $0x110] sm:$0xff] }
 0xc1f   :  { %7123 = vmatprep.subr.bf16.mxu1 %v7122_v60  ;;  %v6171_v60 = vld [vmem:[%s10201_s20 + $0x118] sm:$0xff] }
 0xc20   :  { %v7153_v32 = vpack.c.bf16 %v6171_v60, %v6170_v30 }
 0xc22   :  { %7125 = vmatpush1.bf16.msra.mxu1 %v7124_v33  ;;  %v6172_v33 = vld [vmem:[%s10201_s20 + $0x120] sm:$0xff] }
 0xc25   :  { %4648 = vmatmul.mubr.f32.vlgmr.msra.gmra.mrb[50].mxu1 %v9386_v44  ;;  %v4681_v44 = vrot.slane %v4672_v34, %v7977_v43  ;;  %v6173_v34 = vld [vmem:[%s10201_s20 + $0x128] sm:$0xff] }
 0xc26   :  { %6134 = vmatprep.mubr.msk.f32.mxu1 %vm1433_vm6, %v9396_v51 }
 0xc29   :  { %4654 = vmatmul.mubr.f32.gmra.mrb[52].mxu1 %v9392_v48 }
 0xc2a   :  { %6135 = vmatprep.mubr.msk.f32.mxu1 %vm1433_vm6, %v9410_v58 }
 0xc2d   :  { %4660 = vmatmul.mubr.f32.gmra.mrb[54].mxu1 %v9400_v37 }
 0xc2e   :  { %4804 = vmatprep.mubr.f32.mxu1 %v7364_v28 }
 0xcf8   :  { %v4649_v49 = vpop.f32.mrb[50].mxu1 }
 0xcf9   :  { %v4651_v35 = vpop.f32.mrb[51].mxu1  ;;  %v4684_v51 = vadd.f32 %v4677_v42, %v4649_v49  ;;  %v7156_v49 = vpack.c.bf16 %v6173_v34, %v6172_v33  ;;  %v4842_v33 = vld [vmem:[%s10201_s20 + $0x68] sm:$0xff] }
 0xcfa   :  { %v4685_v36 = vadd.f32 %v4681_v44, %v4651_v35  ;;  %v6175_v35 = vld [vmem:[%s10201_s20 + $0x138] sm:$0xff] }
 0xcfb   :  { %v4690_v47 = vmax.f32 %v4684_v51, 0.0  ;;  %v6176_v51 = vld [vmem:[%s10201_s20 + $0x140] sm:$0xff] }
 0xcfc   :  { %v4655_v48 = vpop.f32.mrb[52].mxu1  ;;  %v4691_v55 = vmax.f32 %v4685_v36, 0.0  ;;  %v6177_v36 = vld [vmem:[%s10201_s20 + $0x148] sm:$0xff] }
 0xcfd   :  { %v4686_v39 = vadd.f32 %v4677_v42, %v4655_v48  ;;  %v4657_v41 = vpop.f32.mrb[53].mxu1  ;;  %v7162_v48 = vpack.c.bf16 %v6177_v36, %v6176_v51 }
 0xcfe   :  { %v4687_v58 = vadd.f32 %v4681_v44, %v4657_v41  ;;  %v6179_v41 = vld [vmem:[%s10201_s20 + $0x158] sm:$0xff] }
 0xcff   :  { %v4692_v37 = vmax.f32 %v4686_v39, 0.0  ;;  %v6178_v39 = vld [vmem:[%s10201_s20 + $0x150] sm:$0xff] }
 0xd00   :  { %v4693_v46 = vmax.f32 %v4687_v58, 0.0  ;;  %v4661_v56 = vpop.f32.mrb[54].mxu1  ;;  %v7165_v58 = vpack.c.bf16 %v6179_v41, %v6178_v39  ;;  %v4846_v39 = vld [vmem:[%s10201_s20 + $0x88] sm:$0xff] }
 0xd01   :  { %v7128_v57 = vpack.c.bf16 %v4692_v37, %v4690_v47  ;;  %v4663_v59 = vpop.f32.mrb[55].mxu1  ;;  %v4688_v38 = vadd.f32 %v4677_v42, %v4661_v56  ;;  %v6197_v42 = vld [vmem:[%s10200_s19 + $0x88] sm:$0xf] }
 0xd02   :  { %v7126_v52 = vpack.c.bf16 %v4693_v46, %v4691_v55  ;;  %v4689_v14 = vadd.f32 %v4681_v44, %v4663_v59  ;;  %v6174_v44 = vld [vmem:[%s10201_s20 + $0x130] sm:$0xff] }
 0xd03   :  { %v4694_v43 = vmax.f32 %v4688_v38, 0.0 }
 0xd04   :  { %v4695_v63 = vmax.f32 %v4689_v14, 0.0  ;;  %7127 = vmatprep.subr.bf16.mxu0 %v7126_v52  ;;  %7237 = vmatprep.subr.bf16.mxu1 %v7126_v52  ;;  %v4830_v14 = vld [vmem:[%s10201_s20 + $0x8] sm:$0xff] }
 0xd05   :  { %7129 = vmatpush1.bf16.msra.mxu0 %v7128_v57  ;;  %7239 = vmatpush1.bf16.msra.mxu1 %v7128_v57 }
 0xd06   :  { %6136 = vmatprep.subr.msk.mxu0 %vm4721_vm11, %v4695_v63  ;;  %7238 = vmatprep.subr.msk.mxu1 %vm4721_vm11, %v4695_v63 }
 0xd09   :  { %6137 = vmatpush1.msk.msra.mxu0 %vm4721_vm11, %v4694_v43  ;;  %7240 = vmatpush1.msk.msra.mxu1 %vm4721_vm11, %v4694_v43 }
 0xd0a   :  { %6138 = vmatmul.mubr.msk.f32.vlgmr.msra.gmra.mrb[38].mxu0 %vm4702_vm12, %v4696_v0  ;;  %7131 = vmatprep.subr.bf16.mxu0 %v7126_v52 }
 0xd0b   :  { %7201 = vmatprep.subr.bf16.mxu1 %v7126_v52  ;;  %6140 = vmatmul.mubr.msk.f32.vlgmr.msra.gmra.mrb[56].mxu1 %vm4702_vm12, %v4698_v21  ;;  %v4829_v52 = vld [vmem:[%s10201_s20] sm:$0xff] }
 0xd0c   :  { %7133 = vmatpush1.bf16.msra.mxu0 %v7128_v57  ;;  %7203 = vmatpush1.bf16.msra.mxu1 %v7128_v57 }
 0xd0d   :  { %6150 = vmatprep.subr.msk.mxu0 %vm4721_vm11, %v4695_v63  ;;  %6198 = vmatprep.subr.msk.mxu1 %vm4721_vm11, %v4695_v63 }
 0xd0e   :  { %4798 = vmatprep.mubr.f32.mxu0 %v7364_v28  ;;  %4810 = vmatprep.mubr.f32.mxu1 %v7364_v28 }
 0xd0f   :  { %6139 = vmatmul.mubr.msk.f32.gmra.mrb[40].mxu0 %vm4702_vm12, %v4697_v1  ;;  %6141 = vmatmul.mubr.msk.f32.gmra.mrb[58].mxu1 %vm4702_vm12, %v4699_v2  ;;  %v4831_v1 = vld [vmem:[%s10201_s20 + $0x10] sm:$0xff]  ;;  %v4832_v2 = vld [vmem:[%s10201_s20 + $0x18] sm:$0xff] }
 0xd10   :  { %6151 = vmatpush1.msk.msra.mxu0 %vm4721_vm11, %v4694_v43  ;;  %6199 = vmatpush1.msk.msra.mxu1 %vm4721_vm11, %v4694_v43  ;;  %v7168_v43 = vpack.c.bf16 %v4830_v14, %v4829_v52  ;;  %v4848_v52 = vld [vmem:[%s10201_s20 + $0x98] sm:$0xff] }
 0xd11   :  { %4940 = vmatprep.mubr.f32.mxu0 %v7364_v28  ;;  %4816 = vmatprep.mubr.f32.mxu1 %v7364_v28 }
 0xd12   :  { %7134 = vmatprep.subr.bf16.mxu0 %v7365_v6 }
 0xd13   :  { %6152 = vmatmul.mubr.msk.f32.vlgmr.msra.gmra.mrb[42].mxu0 %vm4702_vm12, %v6144_v5  ;;  %6142 = vmatmul.mubr.msk.f32.gmra.mrb[60].mxu1 %vm4702_vm12, %v4700_v7  ;;  %v7171_v5 = vpack.c.bf16 %v4832_v2, %v4831_v1  ;;  %v6206_v1 = vld [vmem:[%s10201_s20 + $0x160] sm:$0xff]  ;;  %v6207_v2 = vld [vmem:[%s10201_s20 + $0x168] sm:$0xff] }
 0xd14   :  { %4946 = vmatprep.mubr.f32.mxu0 %v7364_v28  ;;  %4822 = vmatprep.mubr.f32.mxu1 %v7364_v28 }
 0xd15   :  { %7136 = vmatpush1.bf16.msra.mxu0 %v7135_v8 }
 0xd16   :  { %7137 = vmatprep.subr.bf16.mxu0 %v7365_v6 }
 0xd17   :  { %6153 = vmatmul.mubr.msk.f32.gmra.mrb[44].mxu0 %vm4702_vm12, %v6145_v11  ;;  %6143 = vmatmul.mubr.msk.f32.gmra.mrb[62].mxu1 %vm4702_vm12, %v4701_v12 }
 0xd18   :  { %4952 = vmatprep.mubr.f32.mxu0 %v7364_v28  ;;  %5316 = vmatprep.mubr.f32.mxu1 %v7364_v28 }
 0xd19   :  { %7139 = vmatpush1.bf16.msra.mxu0 %v7138_v45  ;;  %v7174_v45 = vpack.c.bf16 %v4834_v10, %v4833_v9  ;;  %v6210_v10 = vld [vmem:[%s10201_s20 + $0x180] sm:$0xff] }
 0xd1a   :  { %7140 = vmatprep.subr.bf16.mxu0 %v7365_v6 }
 0xd1b   :  { %6154 = vmatmul.mubr.msk.f32.gmra.mrb[46].mxu0 %vm4702_vm12, %v6146_v50  ;;  %6200 = vmatmul.mubr.msk.f32.vlgmr.msra.gmra.mrb[64].mxu1 %vm4702_vm12, %v6192_v13  ;;  %v4835_v50 = vld [vmem:[%s10201_s20 + $0x30] sm:$0xff]  ;;  %v4836_v13 = vld [vmem:[%s10201_s20 + $0x38] sm:$0xff] }
 0xd1c   :  { %4958 = vmatprep.mubr.f32.mxu0 %v7364_v28  ;;  %5322 = vmatprep.mubr.f32.mxu1 %v7364_v28  ;;  %v7177_v17 = vpack.c.bf16 %v4836_v13, %v4835_v50  ;;  %v6217_v50 = vld [vmem:[%s10201_s20 + $0x1b8] sm:$0xff]  ;;  %v6219_v13 = vld [vmem:[%s10201_s20 + $0x1c8] sm:$0xff] }
 0xd1d   :  { %7142 = vmatpush1.bf16.msra.mxu0 %v7141_v15 }
 0xd1e   :  { %7143 = vmatprep.subr.bf16.mxu0 %v7365_v6 }
 0xd1f   :  { %6155 = vmatmul.mubr.msk.f32.gmra.mrb[48].mxu0 %vm4702_vm12, %v6147_v18  ;;  %6201 = vmatmul.mubr.msk.f32.gmra.mrb[66].mxu1 %vm4702_vm12, %v6193_v19 }
 0xd20   :  { %4964 = vmatprep.mubr.f32.mxu0 %v7364_v28  ;;  %5328 = vmatprep.mubr.f32.mxu1 %v7364_v28 }
 0xd21   :  { %7145 = vmatpush1.bf16.msra.mxu0 %v7144_v20  ;;  %v4837_v20 = vld [vmem:[%s10201_s20 + $0x40] sm:$0xff] }
 0xd22   :  { %7146 = vmatprep.subr.bf16.mxu0 %v7365_v6 }
 0xd23   :  { %6156 = vmatmul.mubr.msk.f32.gmra.mrb[50].mxu0 %vm4702_vm12, %v6148_v54  ;;  %6202 = vmatmul.mubr.msk.f32.gmra.mrb[68].mxu1 %vm4702_vm12, %v6194_v61  ;;  %v7180_v61 = vpack.c.bf16 %v4838_v22, %v4837_v20  ;;  %v6224_v20 = vld [vmem:[%s10201_s20 + $0x1f0] sm:$0xff]  ;;  %v6225_v22 = vld [vmem:[%s10201_s20 + $0x1f8] sm:$0xff] }
 0xd24   :  { %4970 = vmatprep.mubr.f32.mxu0 %v7364_v28  ;;  %5334 = vmatprep.mubr.f32.mxu1 %v7364_v28 }
 0xd25   :  { %7148 = vmatpush1.bf16.msra.mxu0 %v7147_v23 }
 0xd26   :  { %7149 = vmatprep.subr.bf16.mxu0 %v7365_v6 }
 0xd27   :  { %6157 = vmatmul.mubr.msk.f32.gmra.mrb[52].mxu0 %vm4702_vm12, %v6149_v26  ;;  %6203 = vmatmul.mubr.msk.f32.gmra.mrb[70].mxu1 %vm4702_vm12, %v6195_v27  ;;  %v4840_v26 = vld [vmem:[%s10201_s20 + $0x58] sm:$0xff] }
 0xd28   :  { %5340 = vmatprep.mubr.f32.mxu1 %v7364_v28  ;;  %v7183_v30 = vpack.c.bf16 %v4840_v26, %v4839_v25 }
 0xd29   :  { %7151 = vmatpush1.bf16.msra.mxu0 %v7150_v29 }
 0xd2a   :  { %7152 = vmatprep.subr.bf16.mxu0 %v7365_v6 }
 0xd2b   :  { %6204 = vmatmul.mubr.msk.f32.gmra.mrb[72].mxu1 %vm4702_vm12, %v6196_v31 }
 0xd2c   :  { %5346 = vmatprep.mubr.f32.mxu1 %v7364_v28  ;;  %v7159_v28 = vpack.c.bf16 %v6175_v35, %v6174_v44  ;;  %v4843_v44 = vld [vmem:[%s10201_s20 + $0x70] sm:$0xff]  ;;  %v4844_v35 = vld [vmem:[%s10201_s20 + $0x78] sm:$0xff] }
 0xd2d   :  { %7154 = vmatpush1.bf16.msra.mxu0 %v7153_v32  ;;  %v4841_v32 = vld [vmem:[%s10201_s20 + $0x60] sm:$0xff]  ;;  %v7189_v51 = vpack.c.bf16 %v4844_v35, %v4843_v44 }
 0xd2e   :  { %7155 = vmatprep.subr.bf16.mxu0 %v7365_v6 }
 0xd2f   :  { %6205 = vmatmul.mubr.msk.f32.gmra.mrb[74].mxu1 %vm4702_vm12, %v6197_v42  ;;  %v7186_v42 = vpack.c.bf16 %v4842_v33, %v4841_v32 }
 0xd31   :  { %7157 = vmatpush1.bf16.msra.mxu0 %v7156_v49 }
 0xd32   :  { %7158 = vmatprep.subr.bf16.mxu0 %v7365_v6 }
 0xd35   :  { %7160 = vmatpush1.bf16.msra.mxu0 %v7159_v28 }
 0xd36   :  { %7161 = vmatprep.subr.bf16.mxu0 %v7365_v6 }
 0xd39   :  { %7163 = vmatpush1.bf16.msra.mxu0 %v7162_v48  ;;  %v4845_v48 = vld [vmem:[%s10201_s20 + $0x80] sm:$0xff] }
 0xd3a   :  { %7164 = vmatprep.subr.bf16.mxu0 %v7365_v6 }
 0xd3d   :  { %7166 = vmatpush1.bf16.msra.mxu0 %v7165_v58  ;;  %v7192_v58 = vpack.c.bf16 %v4846_v39, %v4845_v48 }
 0xd3e   :  { %7167 = vmatprep.subr.bf16.mxu0 %v7365_v6 }
 0xddd   :  { %v9888_v47 = vpop.f32.mrb[38].mxu0 }
 0xdde   :  { %v9890_v37 = vpop.f32.mrb[39].mxu0  ;;  %v9892_v55 = vpop.f32.mrb[56].mxu1 }
 0xddf   :  { %v9894_v46 = vpop.f32.mrb[57].mxu1 }
 0xde2   :  { %v9896_v56 = vpop.f32.mrb[40].mxu0  ;;  %v9898_v57 = vpop.f32.mrb[58].mxu1 }
 0xde3   :  { %v9900_v59 = vpop.f32.mrb[41].mxu0  ;;  %v9908_v38 = vpop.f32.mrb[59].mxu1 }
 0xde6   :  { %v4942_v63 = vpop.f32.mrb[42].mxu0  ;;  %v9910_v0 = vpop.f32.mrb[60].mxu1 }
 0xde7   :  { %v4944_v21 = vpop.f32.mrb[43].mxu0  ;;  %v9918_v3 = vpop.f32.mrb[61].mxu1 }
 0xde8   :  { %6180 = vmatprep.mubr.msk.f32.mxu0 %vm5000_vm13, %v4944_v21 }
 0xde9   :  { %5084 = vmatmul.mubr.f32.vlgmr.msra.gmra.mrb[54].mxu0 %v4942_v63  ;;  %v4849_v63 = vld [vmem:[%s10201_s20 + $0xa0] sm:$0xff] }
 0xdea   :  { %7169 = vmatpush1.bf16.msra.mxu0 %v7168_v43  ;;  %v4948_v4 = vpop.f32.mrb[44].mxu0  ;;  %v9921_v7 = vpop.f32.mrb[62].mxu1  ;;  %v4850_v43 = vld [vmem:[%s10201_s20 + $0xa8] sm:$0xff] }
 0xdeb   :  { %v4950_v8 = vpop.f32.mrb[45].mxu0  ;;  %7170 = vmatprep.subr.bf16.mxu0 %v7365_v6  ;;  %v9930_v11 = vpop.f32.mrb[63].mxu1  ;;  %v7198_v21 = vpack.c.bf16 %v4850_v43, %v4849_v63 }
 0xdec   :  { %6181 = vmatprep.mubr.msk.f32.mxu0 %vm5000_vm13, %v4950_v8  ;;  %v6209_v8 = vld [vmem:[%s10201_s20 + $0x178] sm:$0xff] }
 0xded   :  { %5089 = vmatmul.mubr.f32.gmra.mrb[56].mxu0 %v4948_v4  ;;  %v7205_v4 = vpack.c.bf16 %v6207_v2, %v6206_v1 }
 0xdee   :  { %7172 = vmatpush1.bf16.msra.mxu0 %v7171_v5  ;;  %v4954_v12 = vpop.f32.mrb[46].mxu0  ;;  %v9933_v62 = vpop.f32.mrb[64].mxu1  ;;  %v6208_v5 = vld [vmem:[%s10201_s20 + $0x170] sm:$0xff] }
 0xdef   :  { %v4956_v40 = vpop.f32.mrb[47].mxu0  ;;  %7173 = vmatprep.subr.bf16.mxu0 %v7365_v6  ;;  %v9942_v15 = vpop.f32.mrb[65].mxu1  ;;  %v7208_v9 = vpack.c.bf16 %v6209_v8, %v6208_v5 }
 0xdf0   :  { %6182 = vmatprep.mubr.msk.f32.mxu0 %vm5000_vm13, %v4956_v40  ;;  %v6215_v40 = vld [vmem:[%s10201_s20 + $0x1a8] sm:$0xff] }
 0xdf1   :  { %5094 = vmatmul.mubr.f32.gmra.mrb[58].mxu0 %v4954_v12  ;;  %v6211_v12 = vld [vmem:[%s10201_s20 + $0x188] sm:$0xff] }
 0xdf2   :  { %7175 = vmatpush1.bf16.msra.mxu0 %v7174_v45  ;;  %v4960_v16 = vpop.f32.mrb[48].mxu0  ;;  %v9945_v18 = vpop.f32.mrb[66].mxu1  ;;  %v6213_v45 = vld [vmem:[%s10201_s20 + $0x198] sm:$0xff] }
 0xdf3   :  { %v4962_v19 = vpop.f32.mrb[49].mxu0  ;;  %7176 = vmatprep.subr.bf16.mxu0 %v7365_v6  ;;  %v9954_v53 = vpop.f32.mrb[67].mxu1 }
 0xdf4   :  { %6183 = vmatprep.mubr.msk.f32.mxu0 %vm5000_vm13, %v4962_v19 }
 0xdf5   :  { %5099 = vmatmul.mubr.f32.gmra.mrb[60].mxu0 %v4960_v16 }
 0xdf6   :  { %7178 = vmatpush1.bf16.msra.mxu0 %v7177_v17  ;;  %v4966_v54 = vpop.f32.mrb[50].mxu0  ;;  %v9957_v23 = vpop.f32.mrb[68].mxu1 }
 0xdf7   :  { %v4968_v24 = vpop.f32.mrb[51].mxu0  ;;  %7179 = vmatprep.subr.bf16.mxu0 %v7365_v6  ;;  %v9966_v27 = vpop.f32.mrb[69].mxu1 }
 0xdf8   :  { %6184 = vmatprep.mubr.msk.f32.mxu0 %vm5000_vm13, %v4968_v24  ;;  %v6227_v24 = vld [vmem:[%s10201_s20 + $0x208] sm:$0xff] }
 0xdf9   :  { %5104 = vmatmul.mubr.f32.gmra.mrb[62].mxu0 %v4966_v54  ;;  %v7232_v54 = vpack.c.bf16 %v6225_v22, %v6224_v20 }
 0xdfa   :  { %7181 = vmatpush1.bf16.msra.mxu0 %v7180_v61  ;;  %v4972_v29 = vpop.f32.mrb[52].mxu0  ;;  %v9969_v60 = vpop.f32.mrb[70].mxu1  ;;  %v6226_v61 = vld [vmem:[%s10201_s20 + $0x200] sm:$0xff] }
 0xdfb   :  { %v4974_v31 = vpop.f32.mrb[53].mxu0  ;;  %7182 = vmatprep.subr.bf16.mxu0 %v7365_v6  ;;  %v9978_v34 = vpop.f32.mrb[71].mxu1  ;;  %v7235_v25 = vpack.c.bf16 %v6227_v24, %v6226_v61 }
 0xdfc   :  { %6185 = vmatprep.mubr.msk.f32.mxu0 %vm5000_vm13, %v4974_v31 }
 0xdfd   :  { %5109 = vmatmul.mubr.f32.gmra.mrb[64].mxu0 %v4972_v29 }
 0xdfe   :  { %7184 = vmatpush1.bf16.msra.mxu0 %v7183_v30  ;;  %6186 = vmatprep.mubr.msk.f32.mxu0 %vm5000_vm13, %v9890_v37  ;;  %v9983_v49 = vpop.f32.mrb[72].mxu1  ;;  %v4847_v37 = vld [vmem:[%s10201_s20 + $0x90] sm:$0xff] }
 0xdff   :  { %7185 = vmatprep.subr.bf16.mxu0 %v7365_v6  ;;  %v9992_v28 = vpop.f32.mrb[73].mxu1  ;;  %v7195_v14 = vpack.c.bf16 %v4848_v52, %v4847_v37 }
 0xe02   :  { %7187 = vmatpush1.bf16.msra.mxu0 %v7186_v42  ;;  %v9994_v36 = vpop.f32.mrb[74].mxu1 }
 0xe03   :  { %7188 = vmatprep.subr.bf16.mxu0 %v7365_v6  ;;  %v10003_v41 = vpop.f32.mrb[75].mxu1 }
 0xe06   :  { %7190 = vmatpush1.bf16.msra.mxu0 %v7189_v51 }
 0xe07   :  { %7191 = vmatprep.subr.bf16.mxu0 %v7365_v6 }
 0xe0a   :  { %7193 = vmatpush1.bf16.msra.mxu0 %v7192_v58 }
 0xe0b   :  { %7194 = vmatprep.subr.bf16.mxu0 %v7365_v6 }
 0xe0e   :  { %7196 = vmatpush1.bf16.msra.mxu0 %v7195_v14 }
 0xe0f   :  { %7197 = vmatprep.subr.bf16.mxu0 %v7365_v6 }
 0xe12   :  { %7199 = vmatpush1.bf16.msra.mxu0 %v7198_v21 }
 0xe13   :  { %7204 = vmatprep.subr.bf16.mxu0 %v7365_v6 }
 0xe15   :  { %5197 = vmatmul.mubr.f32.vlgmr.msra.gmra.mrb[66].mxu0 %v9888_v47  ;;  %v7211_v47 = vpack.c.bf16 %v6211_v12, %v6210_v10 }
 0xe16   :  { %6187 = vmatprep.mubr.msk.f32.mxu0 %vm5000_vm13, %v9900_v59  ;;  %7206 = vmatpush1.bf16.msra.mxu0 %v7205_v4  ;;  %v6212_v59 = vld [vmem:[%s10201_s20 + $0x190] sm:$0xff] }
 0xe17   :  { %7207 = vmatprep.subr.bf16.mxu0 %v7365_v6 }
 0xe19   :  { %5202 = vmatmul.mubr.f32.gmra.mrb[68].mxu0 %v9896_v56  ;;  %v7214_v56 = vpack.c.bf16 %v6213_v45, %v6212_v59 }
 0xe1a   :  { %7209 = vmatpush1.bf16.msra.mxu0 %v7208_v9  ;;  %6188 = vmatprep.mubr.msk.f32.mxu0 %vm5000_vm13, %v9894_v46  ;;  %v6214_v46 = vld [vmem:[%s10201_s20 + $0x1a0] sm:$0xff] }
 0xe1b   :  { %7210 = vmatprep.subr.bf16.mxu0 %v7365_v6 }
 0xe1d   :  { %5207 = vmatmul.mubr.f32.gmra.mrb[70].mxu0 %v9892_v55  ;;  %v7217_v55 = vpack.c.bf16 %v6215_v40, %v6214_v46 }
 0xe1e   :  { %7212 = vmatpush1.bf16.msra.mxu0 %v7211_v47  ;;  %6189 = vmatprep.mubr.msk.f32.mxu0 %vm5000_vm13, %v9908_v38  ;;  %v6216_v38 = vld [vmem:[%s10201_s20 + $0x1b0] sm:$0xff] }
 0xe1f   :  { %7213 = vmatprep.subr.bf16.mxu0 %v7365_v6 }
 0xe21   :  { %5212 = vmatmul.mubr.f32.gmra.mrb[72].mxu0 %v9898_v57  ;;  %v7220_v57 = vpack.c.bf16 %v6217_v50, %v6216_v38 }
 0xe22   :  { %7215 = vmatpush1.bf16.msra.mxu0 %v7214_v56  ;;  %6190 = vmatprep.mubr.msk.f32.mxu0 %vm5000_vm13, %v9918_v3  ;;  %v6218_v3 = vld [vmem:[%s10201_s20 + $0x1c0] sm:$0xff] }
 0xe23   :  { %7216 = vmatprep.subr.bf16.mxu0 %v7365_v6  ;;  %v7223_v16 = vpack.c.bf16 %v6219_v13, %v6218_v3 }
 0xe25   :  { %5217 = vmatmul.mubr.f32.gmra.mrb[74].mxu0 %v9910_v0  ;;  %v6220_v0 = vld [vmem:[%s10201_s20 + $0x1d0] sm:$0xff] }
 0xe26   :  { %7218 = vmatpush1.bf16.msra.mxu0 %v7217_v55  ;;  %6191 = vmatprep.mubr.msk.f32.mxu0 %vm5000_vm13, %v9930_v11  ;;  %v6221_v11 = vld [vmem:[%s10201_s20 + $0x1d8] sm:$0xff] }
 0xe27   :  { %7219 = vmatprep.subr.bf16.mxu0 %v7365_v6  ;;  %v7226_v17 = vpack.c.bf16 %v6221_v11, %v6220_v0 }
 0xe29   :  { %5222 = vmatmul.mubr.f32.gmra.mrb[76].mxu0 %v9921_v7  ;;  %v6222_v7 = vld [vmem:[%s10201_s20 + $0x1e0] sm:$0xff] }
 0xe2a   :  { %7221 = vmatpush1.bf16.msra.mxu0 %v7220_v57  ;;  %6228 = vmatprep.mubr.msk.f32.mxu0 %vm5000_vm13, %v9942_v15  ;;  %v6223_v15 = vld [vmem:[%s10201_s20 + $0x1e8] sm:$0xff]  ;;  %s7367_s20 = smov [#allocation2]  }
 0xe2b   :  { %7222 = vmatprep.subr.bf16.mxu0 %v7365_v6  ;;  %v7229_v19 = vpack.c.bf16 %v6223_v15, %v6222_v7  ;;  %s5559_s29 = sshll.u32 %s7367_s20, 4  ;;  %s5560_s29 = int_to_ptr.vmem [resolvable:$true] %s5559_s29 }
 0xe2c   :  { %s7316_s13 = scalar_lea.vmem %s5560_s29, 32  ;;  %p7321_p1 = scmp.lt.s32.totalorder %s5560_s29, %s5560_s29 }
 0xe2d   :  { %p7317_p0 = scmp.ne.s32.totalorder %s5560_s29, %s7316_s13  ;;  %p7322_p2 = scmp.lt.s32.totalorder %s7316_s13, %s7316_s13 }
 0xe2e   :  { %7224 = vmatpush1.bf16.msra.mxu0 %v7223_v16 }
 0xe2f   :  { %7225 = vmatprep.subr.bf16.mxu0 %v7365_v6  ;;  %p7323_p3 = por %p7322_p2, %p7321_p1 }
 0xe31   :  { %p7324_p4 = pnand %p7323_p3, %p7317_p0 }
 0xe32   :  { %7227 = vmatpush1.bf16.msra.mxu0 %v7226_v17 }
 0xe33   :  { %7228 = vmatprep.subr.bf16.mxu0 %v7365_v6 }
 0xe36   :  { %7230 = vmatpush1.bf16.msra.mxu0 %v7229_v19 }
 0xe37   :  { %7231 = vmatprep.subr.bf16.mxu0 %v7365_v6 }
 0xe3a   :  { %7233 = vmatpush1.bf16.msra.mxu0 %v7232_v54 }
 0xe3b   :  { %7234 = vmatprep.subr.bf16.mxu0 %v7365_v6 }
 0xe3e   :  { %7236 = vmatpush1.bf16.msra.mxu0 %v7235_v25 }
 0xe41   :  { %5459 = vmatmul.mubr.f32.vlgmr.msra.gmra.mrb[78].mxu0 %v9933_v62 }
 0xe42   :  { %6229 = vmatprep.mubr.msk.f32.mxu0 %vm5000_vm13, %v9954_v53 }
 0xe45   :  { %5464 = vmatmul.mubr.f32.gmra.mrb[80].mxu0 %v9945_v18 }
 0xe46   :  { %6230 = vmatprep.mubr.msk.f32.mxu0 %vm5000_vm13, %v9966_v27 }
 0xe49   :  { %5469 = vmatmul.mubr.f32.gmra.mrb[82].mxu0 %v9957_v23 }
 0xe4a   :  { %6231 = vmatprep.mubr.msk.f32.mxu0 %vm5000_vm13, %v9978_v34 }
 0xe4d   :  { %5474 = vmatmul.mubr.f32.gmra.mrb[84].mxu0 %v9969_v60 }
 0xe4e   :  { %6232 = vmatprep.mubr.msk.f32.mxu0 %vm5000_vm13, %v9992_v28 }
 0xe51   :  { %5479 = vmatmul.mubr.f32.gmra.mrb[86].mxu0 %v9983_v49 }
 0xe52   :  { %6233 = vmatprep.mubr.msk.f32.mxu0 %vm5000_vm13, %v10003_v41 }
 0xe55   :  { %5484 = vmatmul.mubr.f32.gmra.mrb[88].mxu0 %v9994_v36 }
 0xebc   :  { %v5085_v6 = vpop.f32.mrb[54].mxu0 }
 0xebd   :  { %v5087_v62 = vpop.f32.mrb[55].mxu0 }
 0xec0   :  { %v5090_v18 = vpop.f32.mrb[56].mxu0 }
 0xec1   :  { %v5092_v53 = vpop.f32.mrb[57].mxu0 }
 0xec4   :  { %v5095_v23 = vpop.f32.mrb[58].mxu0 }
 0xec5   :  { %v5097_v26 = vpop.f32.mrb[59].mxu0 }
 0xec8   :  { %v5100_v27 = vpop.f32.mrb[60].mxu0 }
 0xec9   :  { %v5102_v29 = vpop.f32.mrb[61].mxu0 }
 0xeca   :  { %7327 = shalt.err (!%p7324_p4)
}
 0xecb   :  { %s7328_s30 = scalar_lea.hbm %s10204_s23, 32 }
 0xecc   :  { %p7329_p5 = scmp.ne.s32.totalorder %s10204_s23, %s7328_s30  ;;  %p7332_p6 = scmp.lt.u32.totalorder %s7328_s30, %s10204_s23 }
 0xece   :  { %p7334_p7 = pnand %p7332_p6, %p7329_p5 }
 0xed0   :  { %7337 = shalt.err (!%p7334_p7)
}
 0xed1   :  { %5562 = dma.vmem_to_hbm [thread:$0]  %s5560_s29, 32, %s10204_s23, [#allocation3]  }
 0xed2   :  { %s7338_s16 = scalar_lea.vmem %s5570_s26, 32  ;;  %p7343_p9 = scmp.lt.s32.totalorder %s5570_s26, %s5570_s26 }
 0xed3   :  { %p7339_p8 = scmp.ne.s32.totalorder %s5570_s26, %s7338_s16  ;;  %p7344_p10 = scmp.lt.s32.totalorder %s7338_s16, %s7338_s16 }
 0xed5   :  { %p7345_p11 = por %p7344_p10, %p7343_p9 }
 0xed7   :  { %p7346_p12 = pnand %p7345_p11, %p7339_p8 }
 0xed9   :  { %7349 = shalt.err (!%p7346_p12)
}
 0xeda   :  { %s7350_s11 = scalar_lea.hbm %s10205_s24, 32 }
 0xedb   :  { %p7351_p13 = scmp.ne.s32.totalorder %s10205_s24, %s7350_s11  ;;  %p7354_p0 = scmp.lt.u32.totalorder %s7350_s11, %s10205_s24 }
 0xedd   :  { %p7356_p1 = pnand %p7354_p0, %p7351_p13 }
 0xedf   :  { %7359 = shalt.err (!%p7356_p1)
}
 0xee0   :  { %5572 = dma.vmem_to_hbm [thread:$0]  %s5570_s26, 32, %s10205_s24, [#allocation5]   ;;  %v5105_v30 = vpop.f32.mrb[62].mxu0  ;;  %v6234_v1 = vld [vmem:[%s10202_s21] ss:$0 sm:$0xff]  ;;  %vm5549_vm14 = vcmask 175104  }
 0xee1   :  { %v5107_v60 = vpop.f32.mrb[63].mxu0 }
 0xee2   :  { %v5110_v31 = vpop.f32.mrb[64].mxu0 }
 0xee3   :  { %v5112_v32 = vpop.f32.mrb[65].mxu0 }
 0xee8   :  { %v5198_v33 = vpop.f32.mrb[66].mxu0 }
 0xee9   :  { %v5199_v34 = vadd.f32 %v5198_v33, %v5085_v6  ;;  %v5200_v42 = vpop.f32.mrb[67].mxu0 }
 0xeec   :  { %v5203_v49 = vpop.f32.mrb[68].mxu0 }
 0xeed   :  { %v5204_v44 = vadd.f32 %v5203_v49, %v5090_v18  ;;  %v5205_v35 = vpop.f32.mrb[69].mxu0 }
 0xef0   :  { %v5208_v28 = vpop.f32.mrb[70].mxu0 }
 0xef1   :  { %v5209_v51 = vadd.f32 %v5208_v28, %v5095_v23  ;;  %v5210_v36 = vpop.f32.mrb[71].mxu0 }
 0xef4   :  { %v5213_v48 = vpop.f32.mrb[72].mxu0 }
 0xef5   :  { %v5214_v39 = vadd.f32 %v5213_v48, %v5100_v27  ;;  %v5215_v41 = vpop.f32.mrb[73].mxu0 }
 0xef8   :  { %v5218_v58 = vpop.f32.mrb[74].mxu0 }
 0xef9   :  { %v5219_v37 = vadd.f32 %v5218_v58, %v5105_v30  ;;  %v5220_v52 = vpop.f32.mrb[75].mxu0 }
 0xefc   :  { %v5223_v14 = vpop.f32.mrb[76].mxu0 }
 0xefd   :  { %v5224_v63 = vadd.f32 %v5223_v14, %v5110_v31  ;;  %v5225_v43 = vpop.f32.mrb[77].mxu0 }
 0xf14   :  { %v5460_v21 = vpop.f32.mrb[78].mxu0 }
 0xf15   :  { %v5489_v2 = vadd.f32 %v5460_v21, %v5199_v34  ;;  %v5462_v4 = vpop.f32.mrb[79].mxu0 }
 0xf17   :  { %v5502_v5 = vadd.f32 %v6234_v1, %v5489_v2 }
 0xf18   :  { %v5465_v8 = vpop.f32.mrb[80].mxu0 }
 0xf19   :  { %v5508_v9 = vsub.f32 0.0, %v5502_v5  ;;  %v5490_v10 = vadd.f32 %v5465_v8, %v5204_v44  ;;  %v5467_v12 = vpop.f32.mrb[81].mxu0 }
 0xf1b   :  { %v5514_v47 = vmul.f32 1.442695, %v5508_v9  ;;  %v5503_v59 = vadd.f32 %v6234_v1, %v5490_v10 }
 0xf1c   :  { %v5470_v45 = vpop.f32.mrb[82].mxu0 }
 0xf1d   :  { %7292 = vpow2.f32 %v5514_v47  ;;  %v5509_v56 = vsub.f32 0.0, %v5503_v59  ;;  %v5491_v46 = vadd.f32 %v5470_v45, %v5209_v51  ;;  %v5472_v40 = vpop.f32.mrb[83].mxu0 }
 0xf1f   :  { %v5516_v55 = vmul.f32 1.442695, %v5509_v56  ;;  %v5504_v38 = vadd.f32 %v6234_v1, %v5491_v46 }
 0xf20   :  { %v5475_v50 = vpop.f32.mrb[84].mxu0 }
 0xf21   :  { %7294 = vpow2.f32 %v5516_v55  ;;  %v5510_v57 = vsub.f32 0.0, %v5504_v38  ;;  %v5492_v3 = vadd.f32 %v5475_v50, %v5214_v39  ;;  %v5477_v13 = vpop.f32.mrb[85].mxu0 }
 0xf23   :  { %v5518_v16 = vmul.f32 1.442695, %v5510_v57  ;;  %v5505_v0 = vadd.f32 %v6234_v1, %v5492_v3 }
 0xf24   :  { %v5480_v11 = vpop.f32.mrb[86].mxu0 }
 0xf25   :  { %7296 = vpow2.f32 %v5518_v16  ;;  %v5511_v17 = vsub.f32 0.0, %v5505_v0  ;;  %v5493_v7 = vadd.f32 %v5480_v11, %v5219_v37  ;;  %v5482_v15 = vpop.f32.mrb[87].mxu0 }
 0xf27   :  { %v7293_v19 = vpop.eup %7292  ;;  %v5520_v20 = vmul.f32 1.442695, %v5511_v17  ;;  %v5506_v22 = vadd.f32 %v6234_v1, %v5493_v7 }
 0xf28   :  { %v5526_v54 = vadd.f32 1.0, %v7293_v19  ;;  %v5485_v61 = vpop.f32.mrb[88].mxu0 }
 0xf29   :  { %7298 = vpow2.f32 %v5520_v20  ;;  %v5512_v24 = vsub.f32 0.0, %v5506_v22  ;;  %v5494_v25 = vadd.f32 %v5485_v61, %v5224_v63  ;;  %v5487_v6 = vpop.f32.mrb[89].mxu0 }
 0xf2a   :  { %7300 = vrcp.f32 %v5526_v54 }
 0xf2b   :  { %v7295_v62 = vpop.eup %7294  ;;  %v5522_v18 = vmul.f32 1.442695, %v5512_v24  ;;  %v5507_v53 = vadd.f32 %v6234_v1, %v5494_v25 }
 0xf2c   :  { %v5527_v23 = vadd.f32 1.0, %v7295_v62 }
 0xf2d   :  { %7302 = vpow2.f32 %v5522_v18  ;;  %v5513_v26 = vsub.f32 0.0, %v5507_v53 }
 0xf2e   :  { %7304 = vrcp.f32 %v5527_v23 }
 0xf2f   :  { %v7297_v27 = vpop.eup %7296  ;;  %v5524_v29 = vmul.f32 1.442695, %v5513_v26 }
 0xf30   :  { %v5528_v30 = vadd.f32 1.0, %v7297_v27 }
 0xf31   :  { %7306 = vpow2.f32 %v5524_v29 }
 0xf32   :  { %7308 = vrcp.f32 %v5528_v30 }
 0xf33   :  { %v7299_v60 = vpop.eup %7298 }
 0xf34   :  { %v7301_v31 = vpop.eup %7300  ;;  %v5529_v32 = vadd.f32 1.0, %v7299_v60 }
 0xf35   :  { %5544 = vst.msk [vmem:[%s10203_s22] sm:$0xff] %vm4702_vm12, %v7301_v31 }
 0xf36   :  { %7310 = vrcp.f32 %v5529_v32 }
 0xf37   :  { %v7303_v33 = vpop.eup %7302 }
 0xf38   :  { %v7305_v34 = vpop.eup %7304  ;;  %v5530_v42 = vadd.f32 1.0, %v7303_v33 }
 0xf39   :  { %5545 = vst.msk [vmem:[%s10203_s22 + $0x8] sm:$0xff] %vm4702_vm12, %v7305_v34 }
 0xf3a   :  { %7312 = vrcp.f32 %v5530_v42 }
 0xf3b   :  { %v7307_v49 = vpop.eup %7306 }
 0xf3c   :  { %v7309_v44 = vpop.eup %7308  ;;  %v5531_v35 = vadd.f32 1.0, %v7307_v49 }
 0xf3d   :  { %5546 = vst.msk [vmem:[%s10203_s22 + $0x10] sm:$0xff] %vm4702_vm12, %v7309_v44 }
 0xf3e   :  { %7314 = vrcp.f32 %v5531_v35 }
 0xf40   :  { %v7311_v28 = vpop.eup %7310 }
 0xf41   :  { %5547 = vst.msk [vmem:[%s10203_s22 + $0x18] sm:$0xff] %vm4702_vm12, %v7311_v28 }
 0xf44   :  { %v7313_v51 = vpop.eup %7312 }
 0xf45   :  { %5548 = vst.msk [vmem:[%s10203_s22 + $0x20] sm:$0xff] %vm4702_vm12, %v7313_v51 }
 0xf48   :  { %v7315_v36 = vpop.eup %7314 }
 0xf49   :  { %5550 = vst.msk [vmem:[%s10203_s22 + $0x28] sm:$0xf] %vm5549_vm14, %v7315_v36 }
 0xf4a   :  { %7360 = dma.done.wait [#allocation3], 32  }
 0xf4b   :  { %7361 = vsyncadd [#allocation3], 4294967264 }
 0xf4c   :  { %7362 = dma.done.wait [#allocation5], 32  }
 0xf4d   :  { %7363 = vsyncadd [#allocation5], 4294967264 }
 0xf4e   :  { %5581 = vsyncpa [#allocation3], 1 }
 0xf4f   :  { %5582 = vsyncpa [#allocation5], 1 }

</bundles_post_ra>
